<compile_context>
chip_gen: v7x
topology: tpu7x:2x2x1
jax: 0.10.0
libtpu: 0.0.40
codegen_flags: <defaults>
</compile_context>

<pallas_src>
import functools

import jax
import jax.numpy as jnp
from jax.experimental import pallas as pl
from jax.experimental.pallas import tpu as pltpu


def _leaky(x):
    return jnp.where(x > 0, x, 0.2 * x)


def _choose_tile(n, target):
    """Largest multiple-of-32 divisor of n that is <= target, else n itself."""
    if n <= target:
        return n
    t = (target // 32) * 32
    while t >= 32:
        if n % t == 0:
            return t
        t -= 32
    return n


# ---------------------------------------------------------------------------
# Kernel 1: pairwise negative squared distances (knn metric), row-tiled over N
# ---------------------------------------------------------------------------
def _pdist_kernel(q_ref, x_ref, qsq_ref, xsq_ref, out_ref):
    # bf16 inner products on the MXU, f32 accumulation; contraction on the last
    # dims of both operands avoids any in-kernel transpose.
    d = jax.lax.dot_general(
        q_ref[0], x_ref[0], (((1,), (1,)), ((), ())),
        preferred_element_type=jnp.float32)                 # (TN, N)
    out_ref[0] = 2.0 * d - qsq_ref[0] - xsq_ref[0]          # -||xi - xj||^2


def pairwise_neg_sqdist(x, *, tile_n=256):
    B, N, C = x.shape
    x_bf = x.astype(jnp.bfloat16)
    xsq = jnp.sum(x * x, axis=-1)                           # (B, N) f32, tiny
    TN = _choose_tile(N, tile_n)                            # v7x: keep TN modest (64 MiB VMEM)
    return pl.pallas_call(
        _pdist_kernel,
        out_shape=jax.ShapeDtypeStruct((B, N, N), jnp.float32),
        grid=(B, N // TN),
        in_specs=[
            pl.BlockSpec((1, TN, C), lambda b, n: (b, n, 0)),   # query rows tile
            pl.BlockSpec((1, N, C), lambda b, n: (b, 0, 0)),    # full point set
            pl.BlockSpec((1, TN, 1), lambda b, n: (b, n, 0)),   # ||xi||^2 (rows)
            pl.BlockSpec((1, 1, N), lambda b, n: (b, 0, 0)),    # ||xj||^2 (cols)
        ],
        out_specs=pl.BlockSpec((1, TN, N), lambda b, n: (b, n, 0)),
        compiler_params=pltpu.CompilerParams(
            dimension_semantics=("parallel", "parallel")),
    )(x_bf, x_bf, xsq[..., None], xsq[:, None, :])


def knn_idx(x, k):
    # TODO(synk): top-k selection + the data-dependent index gather have no clean
    # single-kernel Pallas equivalent here; done in plain JAX (== torch.topk).
    pd = pairwise_neg_sqdist(x)                             # (B, N, N)
    _, idx = jax.lax.top_k(pd, k)                           # (B, N, k)
    return idx


# ---------------------------------------------------------------------------
# Kernel 2: fused EdgeConv block, tiled over points
#   y_j = leaky( nbr_j @ Wd' + ctr @ (Wc' - Wd') + shift ),  out = max_j y_j
# ---------------------------------------------------------------------------
def _edgeconv_kernel(nbr_ref, ctr_ref, wd_ref, wb_ref, shift_ref, out_ref, *, k):
    tn, cin = nbr_ref.shape[2], nbr_ref.shape[3]
    base = jnp.dot(ctr_ref[0], wb_ref[...],
                   preferred_element_type=jnp.float32) + shift_ref[...]      # (TN, Cout)
    nbr_flat = nbr_ref[0].reshape(k * tn, cin)                               # (k*TN, Cin)
    z = jnp.dot(nbr_flat, wd_ref[...],
                preferred_element_type=jnp.float32)                          # (k*TN, Cout)
    y = _leaky(z.reshape(k, tn, -1) + base[None, :, :])                      # (k, TN, Cout)
    out_ref[0] = jnp.max(y, axis=0)


def edge_conv(x, idx, w, scale, shift, *, tile_n=256):
    """x: (B, N, Cin); idx: (B, N, k); w: (2*Cin, Cout) with rows [diff | center]."""
    B, N, Cin = x.shape
    k = idx.shape[-1]
    Cout = w.shape[-1]
    # Fold BN scale into the conv weights (inference) and the diff split into
    # two effective weight matrices (see identity above). Done once, on host.
    w_s = w * scale                                         # (2*Cin, Cout) f32
    wd = w_s[:Cin].astype(jnp.bfloat16)                     # applied to neighbors
    wb = (w_s[Cin:] - w_s[:Cin]).astype(jnp.bfloat16)       # applied to the center
    x_bf = x.astype(jnp.bfloat16)
    # Gather neighbors directly into the (B, k, N, Cin) layout the kernel wants
    # (no HBM transpose of the k-amplified tensor) and store in bf16.
    # TODO(synk): gathering inside the kernel from a VMEM-resident x with a
    # scalar-prefetched idx would remove the k-x HBM amplification entirely.
    nbr = jax.vmap(lambda xb, ib: xb[ib])(x_bf, jnp.transpose(idx, (0, 2, 1)))
    TN = _choose_tile(N, tile_n)                            # v7x budget: keep nbr tile small
    kernel = functools.partial(_edgeconv_kernel, k=k)
    return pl.pallas_call(
        kernel,
        out_shape=jax.ShapeDtypeStruct((B, N, Cout), jnp.float32),
        grid=(B, N // TN),
        in_specs=[
            pl.BlockSpec((1, k, TN, Cin), lambda b, n: (b, 0, n, 0)),
            pl.BlockSpec((1, TN, Cin), lambda b, n: (b, n, 0)),
            pl.BlockSpec((Cin, Cout), lambda b, n: (0, 0)),
            pl.BlockSpec((Cin, Cout), lambda b, n: (0, 0)),
            pl.BlockSpec((1, Cout), lambda b, n: (0, 0)),
        ],
        out_specs=pl.BlockSpec((1, TN, Cout), lambda b, n: (b, n, 0)),
        compiler_params=pltpu.CompilerParams(
            dimension_semantics=("parallel", "parallel")),
    )(nbr, x_bf, wd, wb, shift)


# ---------------------------------------------------------------------------
# Kernel 3: conv5 with the channel concat fused in, + BN + lrelu + max/avg pool
# ---------------------------------------------------------------------------
def _conv5_pool_kernel(x1_ref, x2_ref, x3_ref, x4_ref,
                       w1_ref, w2_ref, w3_ref, w4_ref, shift_ref,
                       max_ref, avg_ref):
    y = jnp.dot(x1_ref[0], w1_ref[...], preferred_element_type=jnp.float32)
    y = y + jnp.dot(x2_ref[0], w2_ref[...], preferred_element_type=jnp.float32)
    y = y + jnp.dot(x3_ref[0], w3_ref[...], preferred_element_type=jnp.float32)
    y = y + jnp.dot(x4_ref[0], w4_ref[...], preferred_element_type=jnp.float32)
    y = _leaky(y + shift_ref[...])                          # (N, E)
    # Full points axis kept in one block, so mean over the block == true mean.
    max_ref[0] = jnp.max(y, axis=0, keepdims=True)
    avg_ref[0] = jnp.mean(y, axis=0, keepdims=True)


def conv5_pool(feats, w, scale, shift):
    """feats: [d1, d2, d3, d4] each (B, N, Ci); w: (sum(Ci), E)."""
    B, N, _ = feats[0].shape
    E = w.shape[-1]
    w_s = w * scale                                         # fold BN scale
    splits, off = [], 0
    for f in feats:
        c = f.shape[-1]
        splits.append(w_s[off:off + c].astype(jnp.bfloat16))
        off += c
    feats_bf = [f.astype(jnp.bfloat16) for f in feats]
    in_specs = (
        [pl.BlockSpec((1, N, f.shape[-1]), lambda b: (b, 0, 0)) for f in feats]
        + [pl.BlockSpec((s.shape[0], E), lambda b: (0, 0)) for s in splits]
        + [pl.BlockSpec((1, E), lambda b: (0, 0))]
    )
    return pl.pallas_call(
        _conv5_pool_kernel,
        out_shape=(jax.ShapeDtypeStruct((B, 1, E), jnp.float32),
                   jax.ShapeDtypeStruct((B, 1, E), jnp.float32)),
        grid=(B,),
        in_specs=in_specs,
        out_specs=(pl.BlockSpec((1, 1, E), lambda b: (b, 0, 0)),
                   pl.BlockSpec((1, 1, E), lambda b: (b, 0, 0))),
        compiler_params=pltpu.CompilerParams(dimension_semantics=("parallel",)),
    )(*feats_bf, *splits, shift)


# ---------------------------------------------------------------------------
# Kernel 4: classification head (fc1 -> bn1 -> lrelu -> fc2 -> bn2 -> lrelu -> fc3)
# ---------------------------------------------------------------------------
def _head_kernel(x_ref, w1_ref, s1_ref, t1_ref,
                 w2_ref, b2_ref, s2_ref, t2_ref,
                 w3_ref, b3_ref, out_ref):
    x = x_ref[...]                                                     # (B, 2E)
    h = jnp.dot(x, w1_ref[...], preferred_element_type=jnp.float32)    # fc1 (no bias)
    h = _leaky(h * s1_ref[...] + t1_ref[...])                          # bn1 + lrelu
    # TODO(synk): dropout layers (dp1/dp2) are identity here (inference mode).
    h = jnp.dot(h, w2_ref[...], preferred_element_type=jnp.float32) + b2_ref[...]
    h = _leaky(h * s2_ref[...] + t2_ref[...])                          # bn2 + lrelu
    h = jnp.dot(h, w3_ref[...], preferred_element_type=jnp.float32) + b3_ref[...]
    out_ref[...] = h


def head(x, p):
    B = x.shape[0]
    num_class = p["w8"].shape[-1]
    return pl.pallas_call(
        _head_kernel,
        out_shape=jax.ShapeDtypeStruct((B, num_class), jnp.float32),
    )(x, p["w6"], p["s6"], p["t6"],
      p["w7"], p["b7"], p["s7"], p["t7"],
      p["w8"], p["b8"])


# ---------------------------------------------------------------------------
# Parameters (deterministic synthetic init; BatchNorm folded to scale/shift)
# ---------------------------------------------------------------------------
def _fold_bn(gamma, beta, mean, var, eps=1e-5):
    scale = gamma / jnp.sqrt(var + eps)
    shift = beta - mean * scale
    return scale[None, :].astype(jnp.float32), shift[None, :].astype(jnp.float32)


def init_params(key, emb_dims, num_class):
    ks = jax.random.split(key, 20)

    def conv_w(kk, cin, cout):
        return (jax.random.normal(kk, (cin, cout), jnp.float32) /
                jnp.sqrt(jnp.float32(cin)))

    def bn(kk, c):
        k1, k2, k3, k4 = jax.random.split(kk, 4)
        gamma = 1.0 + 0.1 * jax.random.normal(k1, (c,), jnp.float32)
        beta = 0.1 * jax.random.normal(k2, (c,), jnp.float32)
        mean = 0.1 * jax.random.normal(k3, (c,), jnp.float32)
        var = 1.0 + 0.1 * jax.random.uniform(k4, (c,), jnp.float32)
        return _fold_bn(gamma, beta, mean, var)

    p = {}
    p["w1"] = conv_w(ks[0], 6, 64);              p["s1"], p["t1"] = bn(ks[1], 64)
    p["w2"] = conv_w(ks[2], 128, 64);            p["s2"], p["t2"] = bn(ks[3], 64)
    p["w3"] = conv_w(ks[4], 128, 128);           p["s3"], p["t3"] = bn(ks[5], 128)
    p["w4"] = conv_w(ks[6], 256, 256);           p["s4"], p["t4"] = bn(ks[7], 256)
    p["w5"] = conv_w(ks[8], 512, emb_dims);      p["s5"], p["t5"] = bn(ks[9], emb_dims)
    p["w6"] = conv_w(ks[10], emb_dims * 2, 512); p["s6"], p["t6"] = bn(ks[11], 512)
    p["w7"] = conv_w(ks[12], 512, 256)
    p["b7"] = 0.1 * jax.random.normal(ks[13], (1, 256), jnp.float32)
    p["s7"], p["t7"] = bn(ks[14], 256)
    p["w8"] = conv_w(ks[15], 256, num_class)
    p["b8"] = 0.1 * jax.random.normal(ks[16], (1, num_class), jnp.float32)
    return p


# ---------------------------------------------------------------------------
# Full forward pass (mirrors DGCNN.forward)
# ---------------------------------------------------------------------------
def dgcnn_forward(params, x_bnc, *, k):
    """x_bnc: (B, N, 3) point cloud (== torch input (B, 3, N) transposed)."""
    d1 = edge_conv(x_bnc, knn_idx(x_bnc, k),
                   params["w1"], params["s1"], params["t1"])   # (B, N, 64)
    d2 = edge_conv(d1, knn_idx(d1, k),
                   params["w2"], params["s2"], params["t2"])   # (B, N, 64)
    d3 = edge_conv(d2, knn_idx(d2, k),
                   params["w3"], params["s3"], params["t3"])   # (B, N, 128)
    d4 = edge_conv(d3, knn_idx(d3, k),
                   params["w4"], params["s4"], params["t4"])   # (B, N, 256)
    # channel concat of d1..d4 is fused into the conv5_pool kernel
    mx, av = conv5_pool([d1, d2, d3, d4],
                        params["w5"], params["s5"], params["t5"])
    feat = jnp.concatenate([mx[:, 0, :], av[:, 0, :]], axis=-1)  # (B, 2*emb_dims)
    return head(feat, params)                                    # (B, numClass)


if __name__ == "__main__":
    B, N, K = 2, 32, 4
    EMB_DIMS, NUM_CLASS = 64, 8

    key = jax.random.PRNGKey(0)
    kx, kp = jax.random.split(key)
    # torch-style input layout (B, 3, N); transpose to kernel layout (B, N, 3)
    pts_torch_layout = jax.random.normal(kx, (B, 3, N), jnp.float32)
    x = jnp.transpose(pts_torch_layout, (0, 2, 1))

    params = init_params(kp, EMB_DIMS, NUM_CLASS)

    fwd = jax.jit(functools.partial(dgcnn_forward, k=K))
    logits = fwd(params, x)
    jax.block_until_ready(logits)
    assert logits.shape == (B, NUM_CLASS)
    assert bool(jnp.all(jnp.isfinite(logits)))
    print("KERNEL_OK")
</pallas_src>

<mosaic_0001>
module attributes {stable_mosaic.version = 11 : i64} {
  func.func @_pdist_kernel(%arg0: i32, %arg1: i32, %arg2: memref<1x32x3xbf16, #tpu.memory_space<vmem>>, %arg3: memref<1x32x3xbf16, #tpu.memory_space<vmem>>, %arg4: memref<1x32x1xf32, #tpu.memory_space<vmem>>, %arg5: memref<1x1x32xf32, #tpu.memory_space<vmem>>, %arg6: memref<1x32x32xf32, #tpu.memory_space<vmem>>) attributes {dimension_semantics = [#tpu.dimension_semantics<parallel>, #tpu.dimension_semantics<parallel>], iteration_bounds = array<i64: 2, 1>, scalar_prefetch = 0 : i64, scratch_operands = 0 : i64, tpu.core_type = #tpu.core_type<tc>, window_params = [{transform_indices = @transform_0, window_bounds = array<i64: 1, 32, 3>}, {transform_indices = @transform_1, window_bounds = array<i64: 1, 32, 3>}, {transform_indices = @transform_2, window_bounds = array<i64: 1, 32, 1>}, {transform_indices = @transform_3, window_bounds = array<i64: 1, 1, 32>}, {transform_indices = @transform_4, window_bounds = array<i64: 1, 32, 32>}]} {
    %c0 = arith.constant 0 : index
    %c0_0 = arith.constant 0 : index
    %c0_1 = arith.constant 0 : index
    %0 = vector.load %arg2[%c0, %c0_0, %c0_1] : memref<1x32x3xbf16, #tpu.memory_space<vmem>>, vector<1x32x3xbf16>
    %1 = vector.shape_cast %0 : vector<1x32x3xbf16> to vector<32x3xbf16>
    %c0_2 = arith.constant 0 : index
    %c0_3 = arith.constant 0 : index
    %c0_4 = arith.constant 0 : index
    %2 = vector.load %arg3[%c0_2, %c0_3, %c0_4] : memref<1x32x3xbf16, #tpu.memory_space<vmem>>, vector<1x32x3xbf16>
    %3 = vector.shape_cast %2 : vector<1x32x3xbf16> to vector<32x3xbf16>
    %cst = arith.constant dense<0.000000e+00> : vector<32x32xf32>
    %4 = tpu.matmul %1, %3, %cst {dimension_numbers = #tpu.dot_dimension_numbers<[1], [1], [0], [0], [0, 0, 1, 0], [], []>} : vector<32x3xbf16>, vector<32x3xbf16>, vector<32x32xf32> -> vector<32x32xf32>
    %cst_5 = arith.constant 2.000000e+00 : f32
    %5 = vector.broadcast %cst_5 : f32 to vector<32x32xf32>
    %6 = arith.mulf %5, %4 : vector<32x32xf32>
    %c0_6 = arith.constant 0 : index
    %c0_7 = arith.constant 0 : index
    %c0_8 = arith.constant 0 : index
    %7 = vector.load %arg4[%c0_6, %c0_7, %c0_8] : memref<1x32x1xf32, #tpu.memory_space<vmem>>, vector<1x32x1xf32>
    %8 = vector.shape_cast %7 : vector<1x32x1xf32> to vector<32x1xf32>
    %9 = vector.broadcast %8 : vector<32x1xf32> to vector<32x32xf32>
    %10 = arith.subf %6, %9 : vector<32x32xf32>
    %c0_9 = arith.constant 0 : index
    %c0_10 = arith.constant 0 : index
    %c0_11 = arith.constant 0 : index
    %11 = vector.load %arg5[%c0_9, %c0_10, %c0_11] : memref<1x1x32xf32, #tpu.memory_space<vmem>>, vector<1x1x32xf32>
    %12 = vector.shape_cast %11 : vector<1x1x32xf32> to vector<1x32xf32>
    %13 = vector.broadcast %12 : vector<1x32xf32> to vector<32x32xf32>
    %14 = arith.subf %10, %13 : vector<32x32xf32>
    %c0_12 = arith.constant 0 : index
    %c0_13 = arith.constant 0 : index
    %c0_14 = arith.constant 0 : index
    %15 = vector.load %arg6[%c0_12, %c0_13, %c0_14] : memref<1x32x32xf32, #tpu.memory_space<vmem>>, vector<1x32x32xf32>
    %16 = vector.shape_cast %15 : vector<1x32x32xf32> to vector<32x32xf32>
    %17 = vector.shape_cast %14 : vector<32x32xf32> to vector<1x32x32xf32>
    tpu.vector_store %arg6[%c0_12, %c0_13, %c0_14], %17 {strides = array<i32>} : memref<1x32x32xf32, #tpu.memory_space<vmem>>, vector<1x32x32xf32>,
    return
  }
  func.func @transform_0(%arg0: i32, %arg1: i32) -> (i32, i32, i32) {
    %c0_i32 = arith.constant 0 : i32
    %c0_i32_0 = arith.constant 0 : i32
    return %arg0, %arg1, %c0_i32 : i32, i32, i32
  }
  func.func @transform_1(%arg0: i32, %arg1: i32) -> (i32, i32, i32) {
    %c0_i32 = arith.constant 0 : i32
    %c0_i32_0 = arith.constant 0 : i32
    %c0_i32_1 = arith.constant 0 : i32
    return %arg0, %c0_i32, %c0_i32_0 : i32, i32, i32
  }
  func.func @transform_2(%arg0: i32, %arg1: i32) -> (i32, i32, i32) {
    %c0_i32 = arith.constant 0 : i32
    %c0_i32_0 = arith.constant 0 : i32
    return %arg0, %arg1, %c0_i32 : i32, i32, i32
  }
  func.func @transform_3(%arg0: i32, %arg1: i32) -> (i32, i32, i32) {
    %c0_i32 = arith.constant 0 : i32
    %c0_i32_0 = arith.constant 0 : i32
    %c0_i32_1 = arith.constant 0 : i32
    return %arg0, %c0_i32, %c0_i32_0 : i32, i32, i32
  }
  func.func @transform_4(%arg0: i32, %arg1: i32) -> (i32, i32, i32) {
    %c0_i32 = arith.constant 0 : i32
    %c0_i32_0 = arith.constant 0 : i32
    return %arg0, %arg1, %c0_i32 : i32, i32, i32
  }
}

module attributes {stable_mosaic.version = 11 : i64} {
  func.func @_edgeconv_kernel(%arg0: i32, %arg1: i32, %arg2: memref<1x4x32x3xbf16, #tpu.memory_space<vmem>>, %arg3: memref<1x32x3xbf16, #tpu.memory_space<vmem>>, %arg4: memref<3x64xbf16, #tpu.memory_space<vmem>>, %arg5: memref<3x64xbf16, #tpu.memory_space<vmem>>, %arg6: memref<1x64xf32, #tpu.memory_space<vmem>>, %arg7: memref<1x32x64xf32, #tpu.memory_space<vmem>>) attributes {dimension_semantics = [#tpu.dimension_semantics<parallel>, #tpu.dimension_semantics<parallel>], iteration_bounds = array<i64: 2, 1>, scalar_prefetch = 0 : i64, scratch_operands = 0 : i64, tpu.core_type = #tpu.core_type<tc>, window_params = [{transform_indices = @transform_0, window_bounds = array<i64: 1, 4, 32, 3>}, {transform_indices = @transform_1, window_bounds = array<i64: 1, 32, 3>}, {pipeline_mode = #tpu.pipeline_mode<synchronous>, transform_indices = @transform_2, window_bounds = array<i64: 3, 64>}, {pipeline_mode = #tpu.pipeline_mode<synchronous>, transform_indices = @transform_3, window_bounds = array<i64: 3, 64>}, {pipeline_mode = #tpu.pipeline_mode<synchronous>, transform_indices = @transform_4, window_bounds = array<i64: 1, 64>}, {transform_indices = @transform_5, window_bounds = array<i64: 1, 32, 64>}]} {
    %c0 = arith.constant 0 : index
    %c0_0 = arith.constant 0 : index
    %c0_1 = arith.constant 0 : index
    %0 = vector.load %arg3[%c0, %c0_0, %c0_1] : memref<1x32x3xbf16, #tpu.memory_space<vmem>>, vector<1x32x3xbf16>
    %1 = vector.shape_cast %0 : vector<1x32x3xbf16> to vector<32x3xbf16>
    %c0_2 = arith.constant 0 : index
    %c0_3 = arith.constant 0 : index
    %2 = vector.load %arg5[%c0_2, %c0_3] : memref<3x64xbf16, #tpu.memory_space<vmem>>, vector<3x64xbf16>
    %cst = arith.constant dense<0.000000e+00> : vector<32x64xf32>
    %3 = tpu.matmul %1, %2, %cst {dimension_numbers = #tpu.dot_dimension_numbers<[1], [0], [0], [1], [0, 0, 1, 1], [], []>} : vector<32x3xbf16>, vector<3x64xbf16>, vector<32x64xf32> -> vector<32x64xf32>
    %c0_4 = arith.constant 0 : index
    %c0_5 = arith.constant 0 : index
    %4 = vector.load %arg6[%c0_4, %c0_5] : memref<1x64xf32, #tpu.memory_space<vmem>>, vector<1x64xf32>
    %5 = vector.broadcast %4 : vector<1x64xf32> to vector<32x64xf32>
    %6 = arith.addf %3, %5 : vector<32x64xf32>
    %c0_6 = arith.constant 0 : index
    %c0_7 = arith.constant 0 : index
    %c0_8 = arith.constant 0 : index
    %c0_9 = arith.constant 0 : index
    %7 = vector.load %arg2[%c0_6, %c0_7, %c0_8, %c0_9] : memref<1x4x32x3xbf16, #tpu.memory_space<vmem>>, vector<1x4x32x3xbf16>
    %8 = vector.shape_cast %7 : vector<1x4x32x3xbf16> to vector<4x32x3xbf16>
    %9 = vector.shape_cast %8 : vector<4x32x3xbf16> to vector<128x3xbf16>
    %c0_10 = arith.constant 0 : index
    %c0_11 = arith.constant 0 : index
    %10 = vector.load %arg4[%c0_10, %c0_11] : memref<3x64xbf16, #tpu.memory_space<vmem>>, vector<3x64xbf16>
    %cst_12 = arith.constant dense<0.000000e+00> : vector<128x64xf32>
    %11 = tpu.matmul %9, %10, %cst_12 {dimension_numbers = #tpu.dot_dimension_numbers<[1], [0], [0], [1], [0, 0, 1, 1], [], []>} : vector<128x3xbf16>, vector<3x64xbf16>, vector<128x64xf32> -> vector<128x64xf32>
    %12 = vector.shape_cast %11 : vector<128x64xf32> to vector<4x32x64xf32>
    %13 = vector.shape_cast %6 : vector<32x64xf32> to vector<1x32x64xf32>
    %14 = vector.broadcast %13 : vector<1x32x64xf32> to vector<4x32x64xf32>
    %15 = arith.addf %12, %14 : vector<4x32x64xf32>
    %cst_13 = arith.constant 0.000000e+00 : f32
    %16 = vector.broadcast %cst_13 : f32 to vector<4x32x64xf32>
    %17 = arith.cmpf ogt, %15, %16 : vector<4x32x64xf32>
    %cst_14 = arith.constant 2.000000e-01 : f32
    %18 = vector.broadcast %cst_14 : f32 to vector<4x32x64xf32>
    %19 = arith.mulf %18, %15 : vector<4x32x64xf32>
    %20 = arith.select %17, %15, %19 : vector<4x32x64xi1>, vector<4x32x64xf32>
    %cst_15 = arith.constant dense<0xFF800000> : vector<32x64xf32>
    %21 = vector.multi_reduction <maximumf>, %20, %cst_15 [0] : vector<4x32x64xf32> to vector<32x64xf32>
    %c0_16 = arith.constant 0 : index
    %c0_17 = arith.constant 0 : index
    %c0_18 = arith.constant 0 : index
    %22 = vector.load %arg7[%c0_16, %c0_17, %c0_18] : memref<1x32x64xf32, #tpu.memory_space<vmem>>, vector<1x32x64xf32>
    %23 = vector.shape_cast %22 : vector<1x32x64xf32> to vector<32x64xf32>
    %24 = vector.shape_cast %21 : vector<32x64xf32> to vector<1x32x64xf32>
    tpu.vector_store %arg7[%c0_16, %c0_17, %c0_18], %24 {strides = array<i32>} : memref<1x32x64xf32, #tpu.memory_space<vmem>>, vector<1x32x64xf32>,
    return
  }
  func.func @transform_0(%arg0: i32, %arg1: i32) -> (i32, i32, i32, i32) {
    %c0_i32 = arith.constant 0 : i32
    %c0_i32_0 = arith.constant 0 : i32
    %c0_i32_1 = arith.constant 0 : i32
    return %arg0, %c0_i32, %arg1, %c0_i32_0 : i32, i32, i32, i32
  }
  func.func @transform_1(%arg0: i32, %arg1: i32) -> (i32, i32, i32) {
    %c0_i32 = arith.constant 0 : i32
    %c0_i32_0 = arith.constant 0 : i32
    return %arg0, %arg1, %c0_i32 : i32, i32, i32
  }
  func.func @transform_2(%arg0: i32, %arg1: i32) -> (i32, i32) {
    %c0_i32 = arith.constant 0 : i32
    %c0_i32_0 = arith.constant 0 : i32
    %c0_i32_1 = arith.constant 0 : i32
    return %c0_i32, %c0_i32_0 : i32, i32
  }
  func.func @transform_3(%arg0: i32, %arg1: i32) -> (i32, i32) {
    %c0_i32 = arith.constant 0 : i32
    %c0_i32_0 = arith.constant 0 : i32
    %c0_i32_1 = arith.constant 0 : i32
    return %c0_i32, %c0_i32_0 : i32, i32
  }
  func.func @transform_4(%arg0: i32, %arg1: i32) -> (i32, i32) {
    %c0_i32 = arith.constant 0 : i32
    %c0_i32_0 = arith.constant 0 : i32
    %c0_i32_1 = arith.constant 0 : i32
    return %c0_i32, %c0_i32_0 : i32, i32
  }
  func.func @transform_5(%arg0: i32, %arg1: i32) -> (i32, i32, i32) {
    %c0_i32 = arith.constant 0 : i32
    %c0_i32_0 = arith.constant 0 : i32
    return %arg0, %arg1, %c0_i32 : i32, i32, i32
  }
}

module attributes {stable_mosaic.version = 11 : i64} {
  func.func @_pdist_kernel(%arg0: i32, %arg1: i32, %arg2: memref<1x32x64xbf16, #tpu.memory_space<vmem>>, %arg3: memref<1x32x64xbf16, #tpu.memory_space<vmem>>, %arg4: memref<1x32x1xf32, #tpu.memory_space<vmem>>, %arg5: memref<1x1x32xf32, #tpu.memory_space<vmem>>, %arg6: memref<1x32x32xf32, #tpu.memory_space<vmem>>) attributes {dimension_semantics = [#tpu.dimension_semantics<parallel>, #tpu.dimension_semantics<parallel>], iteration_bounds = array<i64: 2, 1>, scalar_prefetch = 0 : i64, scratch_operands = 0 : i64, tpu.core_type = #tpu.core_type<tc>, window_params = [{transform_indices = @transform_0, window_bounds = array<i64: 1, 32, 64>}, {transform_indices = @transform_1, window_bounds = array<i64: 1, 32, 64>}, {transform_indices = @transform_2, window_bounds = array<i64: 1, 32, 1>}, {transform_indices = @transform_3, window_bounds = array<i64: 1, 1, 32>}, {transform_indices = @transform_4, window_bounds = array<i64: 1, 32, 32>}]} {
    %c0 = arith.constant 0 : index
    %c0_0 = arith.constant 0 : index
    %c0_1 = arith.constant 0 : index
    %0 = vector.load %arg2[%c0, %c0_0, %c0_1] : memref<1x32x64xbf16, #tpu.memory_space<vmem>>, vector<1x32x64xbf16>
    %1 = vector.shape_cast %0 : vector<1x32x64xbf16> to vector<32x64xbf16>
    %c0_2 = arith.constant 0 : index
    %c0_3 = arith.constant 0 : index
    %c0_4 = arith.constant 0 : index
    %2 = vector.load %arg3[%c0_2, %c0_3, %c0_4] : memref<1x32x64xbf16, #tpu.memory_space<vmem>>, vector<1x32x64xbf16>
    %3 = vector.shape_cast %2 : vector<1x32x64xbf16> to vector<32x64xbf16>
    %cst = arith.constant dense<0.000000e+00> : vector<32x32xf32>
    %4 = tpu.matmul %1, %3, %cst {dimension_numbers = #tpu.dot_dimension_numbers<[1], [1], [0], [0], [0, 0, 1, 0], [], []>} : vector<32x64xbf16>, vector<32x64xbf16>, vector<32x32xf32> -> vector<32x32xf32>
    %cst_5 = arith.constant 2.000000e+00 : f32
    %5 = vector.broadcast %cst_5 : f32 to vector<32x32xf32>
    %6 = arith.mulf %5, %4 : vector<32x32xf32>
    %c0_6 = arith.constant 0 : index
    %c0_7 = arith.constant 0 : index
    %c0_8 = arith.constant 0 : index
    %7 = vector.load %arg4[%c0_6, %c0_7, %c0_8] : memref<1x32x1xf32, #tpu.memory_space<vmem>>, vector<1x32x1xf32>
    %8 = vector.shape_cast %7 : vector<1x32x1xf32> to vector<32x1xf32>
    %9 = vector.broadcast %8 : vector<32x1xf32> to vector<32x32xf32>
    %10 = arith.subf %6, %9 : vector<32x32xf32>
    %c0_9 = arith.constant 0 : index
    %c0_10 = arith.constant 0 : index
    %c0_11 = arith.constant 0 : index
    %11 = vector.load %arg5[%c0_9, %c0_10, %c0_11] : memref<1x1x32xf32, #tpu.memory_space<vmem>>, vector<1x1x32xf32>
    %12 = vector.shape_cast %11 : vector<1x1x32xf32> to vector<1x32xf32>
    %13 = vector.broadcast %12 : vector<1x32xf32> to vector<32x32xf32>
    %14 = arith.subf %10, %13 : vector<32x32xf32>
    %c0_12 = arith.constant 0 : index
    %c0_13 = arith.constant 0 : index
    %c0_14 = arith.constant 0 : index
    %15 = vector.load %arg6[%c0_12, %c0_13, %c0_14] : memref<1x32x32xf32, #tpu.memory_space<vmem>>, vector<1x32x32xf32>
    %16 = vector.shape_cast %15 : vector<1x32x32xf32> to vector<32x32xf32>
    %17 = vector.shape_cast %14 : vector<32x32xf32> to vector<1x32x32xf32>
    tpu.vector_store %arg6[%c0_12, %c0_13, %c0_14], %17 {strides = array<i32>} : memref<1x32x32xf32, #tpu.memory_space<vmem>>, vector<1x32x32xf32>,
    return
  }
  func.func @transform_0(%arg0: i32, %arg1: i32) -> (i32, i32, i32) {
    %c0_i32 = arith.constant 0 : i32
    %c0_i32_0 = arith.constant 0 : i32
    return %arg0, %arg1, %c0_i32 : i32, i32, i32
  }
  func.func @transform_1(%arg0: i32, %arg1: i32) -> (i32, i32, i32) {
    %c0_i32 = arith.constant 0 : i32
    %c0_i32_0 = arith.constant 0 : i32
    %c0_i32_1 = arith.constant 0 : i32
    return %arg0, %c0_i32, %c0_i32_0 : i32, i32, i32
  }
  func.func @transform_2(%arg0: i32, %arg1: i32) -> (i32, i32, i32) {
    %c0_i32 = arith.constant 0 : i32
    %c0_i32_0 = arith.constant 0 : i32
    return %arg0, %arg1, %c0_i32 : i32, i32, i32
  }
  func.func @transform_3(%arg0: i32, %arg1: i32) -> (i32, i32, i32) {
    %c0_i32 = arith.constant 0 : i32
    %c0_i32_0 = arith.constant 0 : i32
    %c0_i32_1 = arith.constant 0 : i32
    return %arg0, %c0_i32, %c0_i32_0 : i32, i32, i32
  }
  func.func @transform_4(%arg0: i32, %arg1: i32) -> (i32, i32, i32) {
    %c0_i32 = arith.constant 0 : i32
    %c0_i32_0 = arith.constant 0 : i32
    return %arg0, %arg1, %c0_i32 : i32, i32, i32
  }
}

module attributes {stable_mosaic.version = 11 : i64} {
  func.func @_edgeconv_kernel(%arg0: i32, %arg1: i32, %arg2: memref<1x4x32x64xbf16, #tpu.memory_space<vmem>>, %arg3: memref<1x32x64xbf16, #tpu.memory_space<vmem>>, %arg4: memref<64x64xbf16, #tpu.memory_space<vmem>>, %arg5: memref<64x64xbf16, #tpu.memory_space<vmem>>, %arg6: memref<1x64xf32, #tpu.memory_space<vmem>>, %arg7: memref<1x32x64xf32, #tpu.memory_space<vmem>>) attributes {dimension_semantics = [#tpu.dimension_semantics<parallel>, #tpu.dimension_semantics<parallel>], iteration_bounds = array<i64: 2, 1>, scalar_prefetch = 0 : i64, scratch_operands = 0 : i64, tpu.core_type = #tpu.core_type<tc>, window_params = [{transform_indices = @transform_0, window_bounds = array<i64: 1, 4, 32, 64>}, {transform_indices = @transform_1, window_bounds = array<i64: 1, 32, 64>}, {pipeline_mode = #tpu.pipeline_mode<synchronous>, transform_indices = @transform_2, window_bounds = array<i64: 64, 64>}, {pipeline_mode = #tpu.pipeline_mode<synchronous>, transform_indices = @transform_3, window_bounds = array<i64: 64, 64>}, {pipeline_mode = #tpu.pipeline_mode<synchronous>, transform_indices = @transform_4, window_bounds = array<i64: 1, 64>}, {transform_indices = @transform_5, window_bounds = array<i64: 1, 32, 64>}]} {
    %c0 = arith.constant 0 : index
    %c0_0 = arith.constant 0 : index
    %c0_1 = arith.constant 0 : index
    %0 = vector.load %arg3[%c0, %c0_0, %c0_1] : memref<1x32x64xbf16, #tpu.memory_space<vmem>>, vector<1x32x64xbf16>
    %1 = vector.shape_cast %0 : vector<1x32x64xbf16> to vector<32x64xbf16>
    %c0_2 = arith.constant 0 : index
    %c0_3 = arith.constant 0 : index
    %2 = vector.load %arg5[%c0_2, %c0_3] : memref<64x64xbf16, #tpu.memory_space<vmem>>, vector<64x64xbf16>
    %cst = arith.constant dense<0.000000e+00> : vector<32x64xf32>
    %3 = tpu.matmul %1, %2, %cst {dimension_numbers = #tpu.dot_dimension_numbers<[1], [0], [0], [1], [0, 0, 1, 1], [], []>} : vector<32x64xbf16>, vector<64x64xbf16>, vector<32x64xf32> -> vector<32x64xf32>
    %c0_4 = arith.constant 0 : index
    %c0_5 = arith.constant 0 : index
    %4 = vector.load %arg6[%c0_4, %c0_5] : memref<1x64xf32, #tpu.memory_space<vmem>>, vector<1x64xf32>
    %5 = vector.broadcast %4 : vector<1x64xf32> to vector<32x64xf32>
    %6 = arith.addf %3, %5 : vector<32x64xf32>
    %c0_6 = arith.constant 0 : index
    %c0_7 = arith.constant 0 : index
    %c0_8 = arith.constant 0 : index
    %c0_9 = arith.constant 0 : index
    %7 = vector.load %arg2[%c0_6, %c0_7, %c0_8, %c0_9] : memref<1x4x32x64xbf16, #tpu.memory_space<vmem>>, vector<1x4x32x64xbf16>
    %8 = vector.shape_cast %7 : vector<1x4x32x64xbf16> to vector<4x32x64xbf16>
    %9 = vector.shape_cast %8 : vector<4x32x64xbf16> to vector<128x64xbf16>
    %c0_10 = arith.constant 0 : index
    %c0_11 = arith.constant 0 : index
    %10 = vector.load %arg4[%c0_10, %c0_11] : memref<64x64xbf16, #tpu.memory_space<vmem>>, vector<64x64xbf16>
    %cst_12 = arith.constant dense<0.000000e+00> : vector<128x64xf32>
    %11 = tpu.matmul %9, %10, %cst_12 {dimension_numbers = #tpu.dot_dimension_numbers<[1], [0], [0], [1], [0, 0, 1, 1], [], []>} : vector<128x64xbf16>, vector<64x64xbf16>, vector<128x64xf32> -> vector<128x64xf32>
    %12 = vector.shape_cast %11 : vector<128x64xf32> to vector<4x32x64xf32>
    %13 = vector.shape_cast %6 : vector<32x64xf32> to vector<1x32x64xf32>
    %14 = vector.broadcast %13 : vector<1x32x64xf32> to vector<4x32x64xf32>
    %15 = arith.addf %12, %14 : vector<4x32x64xf32>
    %cst_13 = arith.constant 0.000000e+00 : f32
    %16 = vector.broadcast %cst_13 : f32 to vector<4x32x64xf32>
    %17 = arith.cmpf ogt, %15, %16 : vector<4x32x64xf32>
    %cst_14 = arith.constant 2.000000e-01 : f32
    %18 = vector.broadcast %cst_14 : f32 to vector<4x32x64xf32>
    %19 = arith.mulf %18, %15 : vector<4x32x64xf32>
    %20 = arith.select %17, %15, %19 : vector<4x32x64xi1>, vector<4x32x64xf32>
    %cst_15 = arith.constant dense<0xFF800000> : vector<32x64xf32>
    %21 = vector.multi_reduction <maximumf>, %20, %cst_15 [0] : vector<4x32x64xf32> to vector<32x64xf32>
    %c0_16 = arith.constant 0 : index
    %c0_17 = arith.constant 0 : index
    %c0_18 = arith.constant 0 : index
    %22 = vector.load %arg7[%c0_16, %c0_17, %c0_18] : memref<1x32x64xf32, #tpu.memory_space<vmem>>, vector<1x32x64xf32>
    %23 = vector.shape_cast %22 : vector<1x32x64xf32> to vector<32x64xf32>
    %24 = vector.shape_cast %21 : vector<32x64xf32> to vector<1x32x64xf32>
    tpu.vector_store %arg7[%c0_16, %c0_17, %c0_18], %24 {strides = array<i32>} : memref<1x32x64xf32, #tpu.memory_space<vmem>>, vector<1x32x64xf32>,
    return
  }
  func.func @transform_0(%arg0: i32, %arg1: i32) -> (i32, i32, i32, i32) {
    %c0_i32 = arith.constant 0 : i32
    %c0_i32_0 = arith.constant 0 : i32
    %c0_i32_1 = arith.constant 0 : i32
    return %arg0, %c0_i32, %arg1, %c0_i32_0 : i32, i32, i32, i32
  }
  func.func @transform_1(%arg0: i32, %arg1: i32) -> (i32, i32, i32) {
    %c0_i32 = arith.constant 0 : i32
    %c0_i32_0 = arith.constant 0 : i32
    return %arg0, %arg1, %c0_i32 : i32, i32, i32
  }
  func.func @transform_2(%arg0: i32, %arg1: i32) -> (i32, i32) {
    %c0_i32 = arith.constant 0 : i32
    %c0_i32_0 = arith.constant 0 : i32
    %c0_i32_1 = arith.constant 0 : i32
    return %c0_i32, %c0_i32_0 : i32, i32
  }
  func.func @transform_3(%arg0: i32, %arg1: i32) -> (i32, i32) {
    %c0_i32 = arith.constant 0 : i32
    %c0_i32_0 = arith.constant 0 : i32
    %c0_i32_1 = arith.constant 0 : i32
    return %c0_i32, %c0_i32_0 : i32, i32
  }
  func.func @transform_4(%arg0: i32, %arg1: i32) -> (i32, i32) {
    %c0_i32 = arith.constant 0 : i32
    %c0_i32_0 = arith.constant 0 : i32
    %c0_i32_1 = arith.constant 0 : i32
    return %c0_i32, %c0_i32_0 : i32, i32
  }
  func.func @transform_5(%arg0: i32, %arg1: i32) -> (i32, i32, i32) {
    %c0_i32 = arith.constant 0 : i32
    %c0_i32_0 = arith.constant 0 : i32
    return %arg0, %arg1, %c0_i32 : i32, i32, i32
  }
}

module attributes {stable_mosaic.version = 11 : i64} {
  func.func @_edgeconv_kernel(%arg0: i32, %arg1: i32, %arg2: memref<1x4x32x64xbf16, #tpu.memory_space<vmem>>, %arg3: memref<1x32x64xbf16, #tpu.memory_space<vmem>>, %arg4: memref<64x128xbf16, #tpu.memory_space<vmem>>, %arg5: memref<64x128xbf16, #tpu.memory_space<vmem>>, %arg6: memref<1x128xf32, #tpu.memory_space<vmem>>, %arg7: memref<1x32x128xf32, #tpu.memory_space<vmem>>) attributes {dimension_semantics = [#tpu.dimension_semantics<parallel>, #tpu.dimension_semantics<parallel>], iteration_bounds = array<i64: 2, 1>, scalar_prefetch = 0 : i64, scratch_operands = 0 : i64, tpu.core_type = #tpu.core_type<tc>, window_params = [{transform_indices = @transform_0, window_bounds = array<i64: 1, 4, 32, 64>}, {transform_indices = @transform_1, window_bounds = array<i64: 1, 32, 64>}, {pipeline_mode = #tpu.pipeline_mode<synchronous>, transform_indices = @transform_2, window_bounds = array<i64: 64, 128>}, {pipeline_mode = #tpu.pipeline_mode<synchronous>, transform_indices = @transform_3, window_bounds = array<i64: 64, 128>}, {pipeline_mode = #tpu.pipeline_mode<synchronous>, transform_indices = @transform_4, window_bounds = array<i64: 1, 128>}, {transform_indices = @transform_5, window_bounds = array<i64: 1, 32, 128>}]} {
    %c0 = arith.constant 0 : index
    %c0_0 = arith.constant 0 : index
    %c0_1 = arith.constant 0 : index
    %0 = vector.load %arg3[%c0, %c0_0, %c0_1] : memref<1x32x64xbf16, #tpu.memory_space<vmem>>, vector<1x32x64xbf16>
    %1 = vector.shape_cast %0 : vector<1x32x64xbf16> to vector<32x64xbf16>
    %c0_2 = arith.constant 0 : index
    %c0_3 = arith.constant 0 : index
    %2 = vector.load %arg5[%c0_2, %c0_3] : memref<64x128xbf16, #tpu.memory_space<vmem>>, vector<64x128xbf16>
    %cst = arith.constant dense<0.000000e+00> : vector<32x128xf32>
    %3 = tpu.matmul %1, %2, %cst {dimension_numbers = #tpu.dot_dimension_numbers<[1], [0], [0], [1], [0, 0, 1, 1], [], []>} : vector<32x64xbf16>, vector<64x128xbf16>, vector<32x128xf32> -> vector<32x128xf32>
    %c0_4 = arith.constant 0 : index
    %c0_5 = arith.constant 0 : index
    %4 = vector.load %arg6[%c0_4, %c0_5] : memref<1x128xf32, #tpu.memory_space<vmem>>, vector<1x128xf32>
    %5 = vector.broadcast %4 : vector<1x128xf32> to vector<32x128xf32>
    %6 = arith.addf %3, %5 : vector<32x128xf32>
    %c0_6 = arith.constant 0 : index
    %c0_7 = arith.constant 0 : index
    %c0_8 = arith.constant 0 : index
    %c0_9 = arith.constant 0 : index
    %7 = vector.load %arg2[%c0_6, %c0_7, %c0_8, %c0_9] : memref<1x4x32x64xbf16, #tpu.memory_space<vmem>>, vector<1x4x32x64xbf16>
    %8 = vector.shape_cast %7 : vector<1x4x32x64xbf16> to vector<4x32x64xbf16>
    %9 = vector.shape_cast %8 : vector<4x32x64xbf16> to vector<128x64xbf16>
    %c0_10 = arith.constant 0 : index
    %c0_11 = arith.constant 0 : index
    %10 = vector.load %arg4[%c0_10, %c0_11] : memref<64x128xbf16, #tpu.memory_space<vmem>>, vector<64x128xbf16>
    %cst_12 = arith.constant dense<0.000000e+00> : vector<128x128xf32>
    %11 = tpu.matmul %9, %10, %cst_12 {dimension_numbers = #tpu.dot_dimension_numbers<[1], [0], [0], [1], [0, 0, 1, 1], [], []>} : vector<128x64xbf16>, vector<64x128xbf16>, vector<128x128xf32> -> vector<128x128xf32>
    %12 = vector.shape_cast %11 : vector<128x128xf32> to vector<4x32x128xf32>
    %13 = vector.shape_cast %6 : vector<32x128xf32> to vector<1x32x128xf32>
    %14 = vector.broadcast %13 : vector<1x32x128xf32> to vector<4x32x128xf32>
    %15 = arith.addf %12, %14 : vector<4x32x128xf32>
    %cst_13 = arith.constant 0.000000e+00 : f32
    %16 = vector.broadcast %cst_13 : f32 to vector<4x32x128xf32>
    %17 = arith.cmpf ogt, %15, %16 : vector<4x32x128xf32>
    %cst_14 = arith.constant 2.000000e-01 : f32
    %18 = vector.broadcast %cst_14 : f32 to vector<4x32x128xf32>
    %19 = arith.mulf %18, %15 : vector<4x32x128xf32>
    %20 = arith.select %17, %15, %19 : vector<4x32x128xi1>, vector<4x32x128xf32>
    %cst_15 = arith.constant dense<0xFF800000> : vector<32x128xf32>
    %21 = vector.multi_reduction <maximumf>, %20, %cst_15 [0] : vector<4x32x128xf32> to vector<32x128xf32>
    %c0_16 = arith.constant 0 : index
    %c0_17 = arith.constant 0 : index
    %c0_18 = arith.constant 0 : index
    %22 = vector.load %arg7[%c0_16, %c0_17, %c0_18] : memref<1x32x128xf32, #tpu.memory_space<vmem>>, vector<1x32x128xf32>
    %23 = vector.shape_cast %22 : vector<1x32x128xf32> to vector<32x128xf32>
    %24 = vector.shape_cast %21 : vector<32x128xf32> to vector<1x32x128xf32>
    tpu.vector_store %arg7[%c0_16, %c0_17, %c0_18], %24 {strides = array<i32>} : memref<1x32x128xf32, #tpu.memory_space<vmem>>, vector<1x32x128xf32>,
    return
  }
  func.func @transform_0(%arg0: i32, %arg1: i32) -> (i32, i32, i32, i32) {
    %c0_i32 = arith.constant 0 : i32
    %c0_i32_0 = arith.constant 0 : i32
    %c0_i32_1 = arith.constant 0 : i32
    return %arg0, %c0_i32, %arg1, %c0_i32_0 : i32, i32, i32, i32
  }
  func.func @transform_1(%arg0: i32, %arg1: i32) -> (i32, i32, i32) {
    %c0_i32 = arith.constant 0 : i32
    %c0_i32_0 = arith.constant 0 : i32
    return %arg0, %arg1, %c0_i32 : i32, i32, i32
  }
  func.func @transform_2(%arg0: i32, %arg1: i32) -> (i32, i32) {
    %c0_i32 = arith.constant 0 : i32
    %c0_i32_0 = arith.constant 0 : i32
    %c0_i32_1 = arith.constant 0 : i32
    return %c0_i32, %c0_i32_0 : i32, i32
  }
  func.func @transform_3(%arg0: i32, %arg1: i32) -> (i32, i32) {
    %c0_i32 = arith.constant 0 : i32
    %c0_i32_0 = arith.constant 0 : i32
    %c0_i32_1 = arith.constant 0 : i32
    return %c0_i32, %c0_i32_0 : i32, i32
  }
  func.func @transform_4(%arg0: i32, %arg1: i32) -> (i32, i32) {
    %c0_i32 = arith.constant 0 : i32
    %c0_i32_0 = arith.constant 0 : i32
    %c0_i32_1 = arith.constant 0 : i32
    return %c0_i32, %c0_i32_0 : i32, i32
  }
  func.func @transform_5(%arg0: i32, %arg1: i32) -> (i32, i32, i32) {
    %c0_i32 = arith.constant 0 : i32
    %c0_i32_0 = arith.constant 0 : i32
    return %arg0, %arg1, %c0_i32 : i32, i32, i32
  }
}

module attributes {stable_mosaic.version = 11 : i64} {
  func.func @_pdist_kernel(%arg0: i32, %arg1: i32, %arg2: memref<1x32x128xbf16, #tpu.memory_space<vmem>>, %arg3: memref<1x32x128xbf16, #tpu.memory_space<vmem>>, %arg4: memref<1x32x1xf32, #tpu.memory_space<vmem>>, %arg5: memref<1x1x32xf32, #tpu.memory_space<vmem>>, %arg6: memref<1x32x32xf32, #tpu.memory_space<vmem>>) attributes {dimension_semantics = [#tpu.dimension_semantics<parallel>, #tpu.dimension_semantics<parallel>], iteration_bounds = array<i64: 2, 1>, scalar_prefetch = 0 : i64, scratch_operands = 0 : i64, tpu.core_type = #tpu.core_type<tc>, window_params = [{transform_indices = @transform_0, window_bounds = array<i64: 1, 32, 128>}, {transform_indices = @transform_1, window_bounds = array<i64: 1, 32, 128>}, {transform_indices = @transform_2, window_bounds = array<i64: 1, 32, 1>}, {transform_indices = @transform_3, window_bounds = array<i64: 1, 1, 32>}, {transform_indices = @transform_4, window_bounds = array<i64: 1, 32, 32>}]} {
    %c0 = arith.constant 0 : index
    %c0_0 = arith.constant 0 : index
    %c0_1 = arith.constant 0 : index
    %0 = vector.load %arg2[%c0, %c0_0, %c0_1] : memref<1x32x128xbf16, #tpu.memory_space<vmem>>, vector<1x32x128xbf16>
    %1 = vector.shape_cast %0 : vector<1x32x128xbf16> to vector<32x128xbf16>
    %c0_2 = arith.constant 0 : index
    %c0_3 = arith.constant 0 : index
    %c0_4 = arith.constant 0 : index
    %2 = vector.load %arg3[%c0_2, %c0_3, %c0_4] : memref<1x32x128xbf16, #tpu.memory_space<vmem>>, vector<1x32x128xbf16>
    %3 = vector.shape_cast %2 : vector<1x32x128xbf16> to vector<32x128xbf16>
    %cst = arith.constant dense<0.000000e+00> : vector<32x32xf32>
    %4 = tpu.matmul %1, %3, %cst {dimension_numbers = #tpu.dot_dimension_numbers<[1], [1], [0], [0], [0, 0, 1, 0], [], []>} : vector<32x128xbf16>, vector<32x128xbf16>, vector<32x32xf32> -> vector<32x32xf32>
    %cst_5 = arith.constant 2.000000e+00 : f32
    %5 = vector.broadcast %cst_5 : f32 to vector<32x32xf32>
    %6 = arith.mulf %5, %4 : vector<32x32xf32>
    %c0_6 = arith.constant 0 : index
    %c0_7 = arith.constant 0 : index
    %c0_8 = arith.constant 0 : index
    %7 = vector.load %arg4[%c0_6, %c0_7, %c0_8] : memref<1x32x1xf32, #tpu.memory_space<vmem>>, vector<1x32x1xf32>
    %8 = vector.shape_cast %7 : vector<1x32x1xf32> to vector<32x1xf32>
    %9 = vector.broadcast %8 : vector<32x1xf32> to vector<32x32xf32>
    %10 = arith.subf %6, %9 : vector<32x32xf32>
    %c0_9 = arith.constant 0 : index
    %c0_10 = arith.constant 0 : index
    %c0_11 = arith.constant 0 : index
    %11 = vector.load %arg5[%c0_9, %c0_10, %c0_11] : memref<1x1x32xf32, #tpu.memory_space<vmem>>, vector<1x1x32xf32>
    %12 = vector.shape_cast %11 : vector<1x1x32xf32> to vector<1x32xf32>
    %13 = vector.broadcast %12 : vector<1x32xf32> to vector<32x32xf32>
    %14 = arith.subf %10, %13 : vector<32x32xf32>
    %c0_12 = arith.constant 0 : index
    %c0_13 = arith.constant 0 : index
    %c0_14 = arith.constant 0 : index
    %15 = vector.load %arg6[%c0_12, %c0_13, %c0_14] : memref<1x32x32xf32, #tpu.memory_space<vmem>>, vector<1x32x32xf32>
    %16 = vector.shape_cast %15 : vector<1x32x32xf32> to vector<32x32xf32>
    %17 = vector.shape_cast %14 : vector<32x32xf32> to vector<1x32x32xf32>
    tpu.vector_store %arg6[%c0_12, %c0_13, %c0_14], %17 {strides = array<i32>} : memref<1x32x32xf32, #tpu.memory_space<vmem>>, vector<1x32x32xf32>,
    return
  }
  func.func @transform_0(%arg0: i32, %arg1: i32) -> (i32, i32, i32) {
    %c0_i32 = arith.constant 0 : i32
    %c0_i32_0 = arith.constant 0 : i32
    return %arg0, %arg1, %c0_i32 : i32, i32, i32
  }
  func.func @transform_1(%arg0: i32, %arg1: i32) -> (i32, i32, i32) {
    %c0_i32 = arith.constant 0 : i32
    %c0_i32_0 = arith.constant 0 : i32
    %c0_i32_1 = arith.constant 0 : i32
    return %arg0, %c0_i32, %c0_i32_0 : i32, i32, i32
  }
  func.func @transform_2(%arg0: i32, %arg1: i32) -> (i32, i32, i32) {
    %c0_i32 = arith.constant 0 : i32
    %c0_i32_0 = arith.constant 0 : i32
    return %arg0, %arg1, %c0_i32 : i32, i32, i32
  }
  func.func @transform_3(%arg0: i32, %arg1: i32) -> (i32, i32, i32) {
    %c0_i32 = arith.constant 0 : i32
    %c0_i32_0 = arith.constant 0 : i32
    %c0_i32_1 = arith.constant 0 : i32
    return %arg0, %c0_i32, %c0_i32_0 : i32, i32, i32
  }
  func.func @transform_4(%arg0: i32, %arg1: i32) -> (i32, i32, i32) {
    %c0_i32 = arith.constant 0 : i32
    %c0_i32_0 = arith.constant 0 : i32
    return %arg0, %arg1, %c0_i32 : i32, i32, i32
  }
}

module attributes {stable_mosaic.version = 11 : i64} {
  func.func @_edgeconv_kernel(%arg0: i32, %arg1: i32, %arg2: memref<1x4x32x128xbf16, #tpu.memory_space<vmem>>, %arg3: memref<1x32x128xbf16, #tpu.memory_space<vmem>>, %arg4: memref<128x256xbf16, #tpu.memory_space<vmem>>, %arg5: memref<128x256xbf16, #tpu.memory_space<vmem>>, %arg6: memref<1x256xf32, #tpu.memory_space<vmem>>, %arg7: memref<1x32x256xf32, #tpu.memory_space<vmem>>) attributes {dimension_semantics = [#tpu.dimension_semantics<parallel>, #tpu.dimension_semantics<parallel>], iteration_bounds = array<i64: 2, 1>, scalar_prefetch = 0 : i64, scratch_operands = 0 : i64, tpu.core_type = #tpu.core_type<tc>, window_params = [{transform_indices = @transform_0, window_bounds = array<i64: 1, 4, 32, 128>}, {transform_indices = @transform_1, window_bounds = array<i64: 1, 32, 128>}, {pipeline_mode = #tpu.pipeline_mode<synchronous>, transform_indices = @transform_2, window_bounds = array<i64: 128, 256>}, {pipeline_mode = #tpu.pipeline_mode<synchronous>, transform_indices = @transform_3, window_bounds = array<i64: 128, 256>}, {pipeline_mode = #tpu.pipeline_mode<synchronous>, transform_indices = @transform_4, window_bounds = array<i64: 1, 256>}, {transform_indices = @transform_5, window_bounds = array<i64: 1, 32, 256>}]} {
    %c0 = arith.constant 0 : index
    %c0_0 = arith.constant 0 : index
    %c0_1 = arith.constant 0 : index
    %0 = vector.load %arg3[%c0, %c0_0, %c0_1] : memref<1x32x128xbf16, #tpu.memory_space<vmem>>, vector<1x32x128xbf16>
    %1 = vector.shape_cast %0 : vector<1x32x128xbf16> to vector<32x128xbf16>
    %c0_2 = arith.constant 0 : index
    %c0_3 = arith.constant 0 : index
    %2 = vector.load %arg5[%c0_2, %c0_3] : memref<128x256xbf16, #tpu.memory_space<vmem>>, vector<128x256xbf16>
    %cst = arith.constant dense<0.000000e+00> : vector<32x256xf32>
    %3 = tpu.matmul %1, %2, %cst {dimension_numbers = #tpu.dot_dimension_numbers<[1], [0], [0], [1], [0, 0, 1, 1], [], []>} : vector<32x128xbf16>, vector<128x256xbf16>, vector<32x256xf32> -> vector<32x256xf32>
    %c0_4 = arith.constant 0 : index
    %c0_5 = arith.constant 0 : index
    %4 = vector.load %arg6[%c0_4, %c0_5] : memref<1x256xf32, #tpu.memory_space<vmem>>, vector<1x256xf32>
    %5 = vector.broadcast %4 : vector<1x256xf32> to vector<32x256xf32>
    %6 = arith.addf %3, %5 : vector<32x256xf32>
    %c0_6 = arith.constant 0 : index
    %c0_7 = arith.constant 0 : index
    %c0_8 = arith.constant 0 : index
    %c0_9 = arith.constant 0 : index
    %7 = vector.load %arg2[%c0_6, %c0_7, %c0_8, %c0_9] : memref<1x4x32x128xbf16, #tpu.memory_space<vmem>>, vector<1x4x32x128xbf16>
    %8 = vector.shape_cast %7 : vector<1x4x32x128xbf16> to vector<4x32x128xbf16>
    %9 = vector.shape_cast %8 : vector<4x32x128xbf16> to vector<128x128xbf16>
    %c0_10 = arith.constant 0 : index
    %c0_11 = arith.constant 0 : index
    %10 = vector.load %arg4[%c0_10, %c0_11] : memref<128x256xbf16, #tpu.memory_space<vmem>>, vector<128x256xbf16>
    %cst_12 = arith.constant dense<0.000000e+00> : vector<128x256xf32>
    %11 = tpu.matmul %9, %10, %cst_12 {dimension_numbers = #tpu.dot_dimension_numbers<[1], [0], [0], [1], [0, 0, 1, 1], [], []>} : vector<128x128xbf16>, vector<128x256xbf16>, vector<128x256xf32> -> vector<128x256xf32>
    %12 = vector.shape_cast %11 : vector<128x256xf32> to vector<4x32x256xf32>
    %13 = vector.shape_cast %6 : vector<32x256xf32> to vector<1x32x256xf32>
    %14 = vector.broadcast %13 : vector<1x32x256xf32> to vector<4x32x256xf32>
    %15 = arith.addf %12, %14 : vector<4x32x256xf32>
    %cst_13 = arith.constant 0.000000e+00 : f32
    %16 = vector.broadcast %cst_13 : f32 to vector<4x32x256xf32>
    %17 = arith.cmpf ogt, %15, %16 : vector<4x32x256xf32>
    %cst_14 = arith.constant 2.000000e-01 : f32
    %18 = vector.broadcast %cst_14 : f32 to vector<4x32x256xf32>
    %19 = arith.mulf %18, %15 : vector<4x32x256xf32>
    %20 = arith.select %17, %15, %19 : vector<4x32x256xi1>, vector<4x32x256xf32>
    %cst_15 = arith.constant dense<0xFF800000> : vector<32x256xf32>
    %21 = vector.multi_reduction <maximumf>, %20, %cst_15 [0] : vector<4x32x256xf32> to vector<32x256xf32>
    %c0_16 = arith.constant 0 : index
    %c0_17 = arith.constant 0 : index
    %c0_18 = arith.constant 0 : index
    %22 = vector.load %arg7[%c0_16, %c0_17, %c0_18] : memref<1x32x256xf32, #tpu.memory_space<vmem>>, vector<1x32x256xf32>
    %23 = vector.shape_cast %22 : vector<1x32x256xf32> to vector<32x256xf32>
    %24 = vector.shape_cast %21 : vector<32x256xf32> to vector<1x32x256xf32>
    tpu.vector_store %arg7[%c0_16, %c0_17, %c0_18], %24 {strides = array<i32>} : memref<1x32x256xf32, #tpu.memory_space<vmem>>, vector<1x32x256xf32>,
    return
  }
  func.func @transform_0(%arg0: i32, %arg1: i32) -> (i32, i32, i32, i32) {
    %c0_i32 = arith.constant 0 : i32
    %c0_i32_0 = arith.constant 0 : i32
    %c0_i32_1 = arith.constant 0 : i32
    return %arg0, %c0_i32, %arg1, %c0_i32_0 : i32, i32, i32, i32
  }
  func.func @transform_1(%arg0: i32, %arg1: i32) -> (i32, i32, i32) {
    %c0_i32 = arith.constant 0 : i32
    %c0_i32_0 = arith.constant 0 : i32
    return %arg0, %arg1, %c0_i32 : i32, i32, i32
  }
  func.func @transform_2(%arg0: i32, %arg1: i32) -> (i32, i32) {
    %c0_i32 = arith.constant 0 : i32
    %c0_i32_0 = arith.constant 0 : i32
    %c0_i32_1 = arith.constant 0 : i32
    return %c0_i32, %c0_i32_0 : i32, i32
  }
  func.func @transform_3(%arg0: i32, %arg1: i32) -> (i32, i32) {
    %c0_i32 = arith.constant 0 : i32
    %c0_i32_0 = arith.constant 0 : i32
    %c0_i32_1 = arith.constant 0 : i32
    return %c0_i32, %c0_i32_0 : i32, i32
  }
  func.func @transform_4(%arg0: i32, %arg1: i32) -> (i32, i32) {
    %c0_i32 = arith.constant 0 : i32
    %c0_i32_0 = arith.constant 0 : i32
    %c0_i32_1 = arith.constant 0 : i32
    return %c0_i32, %c0_i32_0 : i32, i32
  }
  func.func @transform_5(%arg0: i32, %arg1: i32) -> (i32, i32, i32) {
    %c0_i32 = arith.constant 0 : i32
    %c0_i32_0 = arith.constant 0 : i32
    return %arg0, %arg1, %c0_i32 : i32, i32, i32
  }
}

module attributes {stable_mosaic.version = 11 : i64} {
  func.func @_head_kernel(%arg0: memref<2x128xf32, #tpu.memory_space<vmem>>, %arg1: memref<128x512xf32, #tpu.memory_space<vmem>>, %arg2: memref<1x512xf32, #tpu.memory_space<vmem>>, %arg3: memref<1x512xf32, #tpu.memory_space<vmem>>, %arg4: memref<512x256xf32, #tpu.memory_space<vmem>>, %arg5: memref<1x256xf32, #tpu.memory_space<vmem>>, %arg6: memref<1x256xf32, #tpu.memory_space<vmem>>, %arg7: memref<1x256xf32, #tpu.memory_space<vmem>>, %arg8: memref<256x8xf32, #tpu.memory_space<vmem>>, %arg9: memref<1x8xf32, #tpu.memory_space<vmem>>, %arg10: memref<2x8xf32, #tpu.memory_space<vmem>>) attributes {dimension_semantics = [], scalar_prefetch = 0 : i64, scratch_operands = 0 : i64, tpu.core_type = #tpu.core_type<tc>} {
    %c0 = arith.constant 0 : index
    %c0_0 = arith.constant 0 : index
    %0 = vector.load %arg0[%c0, %c0_0] : memref<2x128xf32, #tpu.memory_space<vmem>>, vector<2x128xf32>
    %c0_1 = arith.constant 0 : index
    %c0_2 = arith.constant 0 : index
    %1 = vector.load %arg1[%c0_1, %c0_2] : memref<128x512xf32, #tpu.memory_space<vmem>>, vector<128x512xf32>
    %cst = arith.constant dense<0.000000e+00> : vector<2x512xf32>
    %2 = tpu.matmul %0, %1, %cst {dimension_numbers = #tpu.dot_dimension_numbers<[1], [0], [0], [1], [0, 0, 1, 1], [], []>} : vector<2x128xf32>, vector<128x512xf32>, vector<2x512xf32> -> vector<2x512xf32>
    %c0_3 = arith.constant 0 : index
    %c0_4 = arith.constant 0 : index
    %3 = vector.load %arg2[%c0_3, %c0_4] : memref<1x512xf32, #tpu.memory_space<vmem>>, vector<1x512xf32>
    %4 = vector.broadcast %3 : vector<1x512xf32> to vector<2x512xf32>
    %5 = arith.mulf %2, %4 : vector<2x512xf32>
    %c0_5 = arith.constant 0 : index
    %c0_6 = arith.constant 0 : index
    %6 = vector.load %arg3[%c0_5, %c0_6] : memref<1x512xf32, #tpu.memory_space<vmem>>, vector<1x512xf32>
    %7 = vector.broadcast %6 : vector<1x512xf32> to vector<2x512xf32>
    %8 = arith.addf %5, %7 : vector<2x512xf32>
    %cst_7 = arith.constant 0.000000e+00 : f32
    %9 = vector.broadcast %cst_7 : f32 to vector<2x512xf32>
    %10 = arith.cmpf ogt, %8, %9 : vector<2x512xf32>
    %cst_8 = arith.constant 2.000000e-01 : f32
    %11 = vector.broadcast %cst_8 : f32 to vector<2x512xf32>
    %12 = arith.mulf %11, %8 : vector<2x512xf32>
    %13 = arith.select %10, %8, %12 : vector<2x512xi1>, vector<2x512xf32>
    %c0_9 = arith.constant 0 : index
    %c0_10 = arith.constant 0 : index
    %14 = vector.load %arg4[%c0_9, %c0_10] : memref<512x256xf32, #tpu.memory_space<vmem>>, vector<512x256xf32>
    %cst_11 = arith.constant dense<0.000000e+00> : vector<2x256xf32>
    %15 = tpu.matmul %13, %14, %cst_11 {dimension_numbers = #tpu.dot_dimension_numbers<[1], [0], [0], [1], [0, 0, 1, 1], [], []>} : vector<2x512xf32>, vector<512x256xf32>, vector<2x256xf32> -> vector<2x256xf32>
    %c0_12 = arith.constant 0 : index
    %c0_13 = arith.constant 0 : index
    %16 = vector.load %arg5[%c0_12, %c0_13] : memref<1x256xf32, #tpu.memory_space<vmem>>, vector<1x256xf32>
    %17 = vector.broadcast %16 : vector<1x256xf32> to vector<2x256xf32>
    %18 = arith.addf %15, %17 : vector<2x256xf32>
    %c0_14 = arith.constant 0 : index
    %c0_15 = arith.constant 0 : index
    %19 = vector.load %arg6[%c0_14, %c0_15] : memref<1x256xf32, #tpu.memory_space<vmem>>, vector<1x256xf32>
    %20 = vector.broadcast %19 : vector<1x256xf32> to vector<2x256xf32>
    %21 = arith.mulf %18, %20 : vector<2x256xf32>
    %c0_16 = arith.constant 0 : index
    %c0_17 = arith.constant 0 : index
    %22 = vector.load %arg7[%c0_16, %c0_17] : memref<1x256xf32, #tpu.memory_space<vmem>>, vector<1x256xf32>
    %23 = vector.broadcast %22 : vector<1x256xf32> to vector<2x256xf32>
    %24 = arith.addf %21, %23 : vector<2x256xf32>
    %cst_18 = arith.constant 0.000000e+00 : f32
    %25 = vector.broadcast %cst_18 : f32 to vector<2x256xf32>
    %26 = arith.cmpf ogt, %24, %25 : vector<2x256xf32>
    %cst_19 = arith.constant 2.000000e-01 : f32
    %27 = vector.broadcast %cst_19 : f32 to vector<2x256xf32>
    %28 = arith.mulf %27, %24 : vector<2x256xf32>
    %29 = arith.select %26, %24, %28 : vector<2x256xi1>, vector<2x256xf32>
    %c0_20 = arith.constant 0 : index
    %c0_21 = arith.constant 0 : index
    %30 = vector.load %arg8[%c0_20, %c0_21] : memref<256x8xf32, #tpu.memory_space<vmem>>, vector<256x8xf32>
    %cst_22 = arith.constant dense<0.000000e+00> : vector<2x8xf32>
    %31 = tpu.matmul %29, %30, %cst_22 {dimension_numbers = #tpu.dot_dimension_numbers<[1], [0], [0], [1], [0, 0, 1, 1], [], []>} : vector<2x256xf32>, vector<256x8xf32>, vector<2x8xf32> -> vector<2x8xf32>
    %c0_23 = arith.constant 0 : index
    %c0_24 = arith.constant 0 : index
    %32 = vector.load %arg9[%c0_23, %c0_24] : memref<1x8xf32, #tpu.memory_space<vmem>>, vector<1x8xf32>
    %33 = vector.broadcast %32 : vector<1x8xf32> to vector<2x8xf32>
    %34 = arith.addf %31, %33 : vector<2x8xf32>
    %c0_25 = arith.constant 0 : index
    %c0_26 = arith.constant 0 : index
    %35 = vector.load %arg10[%c0_25, %c0_26] : memref<2x8xf32, #tpu.memory_space<vmem>>, vector<2x8xf32>
    tpu.vector_store %arg10[%c0_25, %c0_26], %34 {strides = array<i32>} : memref<2x8xf32, #tpu.memory_space<vmem>>, vector<2x8xf32>,
    return
  }
}

module attributes {stable_mosaic.version = 11 : i64} {
  func.func @_conv5_pool_kernel(%arg0: i32, %arg1: memref<1x32x64xbf16, #tpu.memory_space<vmem>>, %arg2: memref<1x32x64xbf16, #tpu.memory_space<vmem>>, %arg3: memref<1x32x128xbf16, #tpu.memory_space<vmem>>, %arg4: memref<1x32x256xbf16, #tpu.memory_space<vmem>>, %arg5: memref<64x64xbf16, #tpu.memory_space<vmem>>, %arg6: memref<64x64xbf16, #tpu.memory_space<vmem>>, %arg7: memref<128x64xbf16, #tpu.memory_space<vmem>>, %arg8: memref<256x64xbf16, #tpu.memory_space<vmem>>, %arg9: memref<1x64xf32, #tpu.memory_space<vmem>>, %arg10: memref<1x1x64xf32, #tpu.memory_space<vmem>>, %arg11: memref<1x1x64xf32, #tpu.memory_space<vmem>>) attributes {dimension_semantics = [#tpu.dimension_semantics<parallel>], iteration_bounds = array<i64: 2>, scalar_prefetch = 0 : i64, scratch_operands = 0 : i64, tpu.core_type = #tpu.core_type<tc>, window_params = [{transform_indices = @transform_0, window_bounds = array<i64: 1, 32, 64>}, {transform_indices = @transform_1, window_bounds = array<i64: 1, 32, 64>}, {transform_indices = @transform_2, window_bounds = array<i64: 1, 32, 128>}, {transform_indices = @transform_3, window_bounds = array<i64: 1, 32, 256>}, {pipeline_mode = #tpu.pipeline_mode<synchronous>, transform_indices = @transform_4, window_bounds = array<i64: 64, 64>}, {pipeline_mode = #tpu.pipeline_mode<synchronous>, transform_indices = @transform_5, window_bounds = array<i64: 64, 64>}, {pipeline_mode = #tpu.pipeline_mode<synchronous>, transform_indices = @transform_6, window_bounds = array<i64: 128, 64>}, {pipeline_mode = #tpu.pipeline_mode<synchronous>, transform_indices = @transform_7, window_bounds = array<i64: 256, 64>}, {pipeline_mode = #tpu.pipeline_mode<synchronous>, transform_indices = @transform_8, window_bounds = array<i64: 1, 64>}, {transform_indices = @transform_9, window_bounds = array<i64: 1, 1, 64>}, {transform_indices = @transform_10, window_bounds = array<i64: 1, 1, 64>}]} {
    %c0 = arith.constant 0 : index
    %c0_0 = arith.constant 0 : index
    %c0_1 = arith.constant 0 : index
    %0 = vector.load %arg1[%c0, %c0_0, %c0_1] : memref<1x32x64xbf16, #tpu.memory_space<vmem>>, vector<1x32x64xbf16>
    %1 = vector.shape_cast %0 : vector<1x32x64xbf16> to vector<32x64xbf16>
    %c0_2 = arith.constant 0 : index
    %c0_3 = arith.constant 0 : index
    %2 = vector.load %arg5[%c0_2, %c0_3] : memref<64x64xbf16, #tpu.memory_space<vmem>>, vector<64x64xbf16>
    %cst = arith.constant dense<0.000000e+00> : vector<32x64xf32>
    %3 = tpu.matmul %1, %2, %cst {dimension_numbers = #tpu.dot_dimension_numbers<[1], [0], [0], [1], [0, 0, 1, 1], [], []>} : vector<32x64xbf16>, vector<64x64xbf16>, vector<32x64xf32> -> vector<32x64xf32>
    %c0_4 = arith.constant 0 : index
    %c0_5 = arith.constant 0 : index
    %c0_6 = arith.constant 0 : index
    %4 = vector.load %arg2[%c0_4, %c0_5, %c0_6] : memref<1x32x64xbf16, #tpu.memory_space<vmem>>, vector<1x32x64xbf16>
    %5 = vector.shape_cast %4 : vector<1x32x64xbf16> to vector<32x64xbf16>
    %c0_7 = arith.constant 0 : index
    %c0_8 = arith.constant 0 : index
    %6 = vector.load %arg6[%c0_7, %c0_8] : memref<64x64xbf16, #tpu.memory_space<vmem>>, vector<64x64xbf16>
    %cst_9 = arith.constant dense<0.000000e+00> : vector<32x64xf32>
    %7 = tpu.matmul %5, %6, %cst_9 {dimension_numbers = #tpu.dot_dimension_numbers<[1], [0], [0], [1], [0, 0, 1, 1], [], []>} : vector<32x64xbf16>, vector<64x64xbf16>, vector<32x64xf32> -> vector<32x64xf32>
    %8 = arith.addf %3, %7 : vector<32x64xf32>
    %c0_10 = arith.constant 0 : index
    %c0_11 = arith.constant 0 : index
    %c0_12 = arith.constant 0 : index
    %9 = vector.load %arg3[%c0_10, %c0_11, %c0_12] : memref<1x32x128xbf16, #tpu.memory_space<vmem>>, vector<1x32x128xbf16>
    %10 = vector.shape_cast %9 : vector<1x32x128xbf16> to vector<32x128xbf16>
    %c0_13 = arith.constant 0 : index
    %c0_14 = arith.constant 0 : index
    %11 = vector.load %arg7[%c0_13, %c0_14] : memref<128x64xbf16, #tpu.memory_space<vmem>>, vector<128x64xbf16>
    %cst_15 = arith.constant dense<0.000000e+00> : vector<32x64xf32>
    %12 = tpu.matmul %10, %11, %cst_15 {dimension_numbers = #tpu.dot_dimension_numbers<[1], [0], [0], [1], [0, 0, 1, 1], [], []>} : vector<32x128xbf16>, vector<128x64xbf16>, vector<32x64xf32> -> vector<32x64xf32>
    %13 = arith.addf %8, %12 : vector<32x64xf32>
    %c0_16 = arith.constant 0 : index
    %c0_17 = arith.constant 0 : index
    %c0_18 = arith.constant 0 : index
    %14 = vector.load %arg4[%c0_16, %c0_17, %c0_18] : memref<1x32x256xbf16, #tpu.memory_space<vmem>>, vector<1x32x256xbf16>
    %15 = vector.shape_cast %14 : vector<1x32x256xbf16> to vector<32x256xbf16>
    %c0_19 = arith.constant 0 : index
    %c0_20 = arith.constant 0 : index
    %16 = vector.load %arg8[%c0_19, %c0_20] : memref<256x64xbf16, #tpu.memory_space<vmem>>, vector<256x64xbf16>
    %cst_21 = arith.constant dense<0.000000e+00> : vector<32x64xf32>
    %17 = tpu.matmul %15, %16, %cst_21 {dimension_numbers = #tpu.dot_dimension_numbers<[1], [0], [0], [1], [0, 0, 1, 1], [], []>} : vector<32x256xbf16>, vector<256x64xbf16>, vector<32x64xf32> -> vector<32x64xf32>
    %18 = arith.addf %13, %17 : vector<32x64xf32>
    %c0_22 = arith.constant 0 : index
    %c0_23 = arith.constant 0 : index
    %19 = vector.load %arg9[%c0_22, %c0_23] : memref<1x64xf32, #tpu.memory_space<vmem>>, vector<1x64xf32>
    %20 = vector.broadcast %19 : vector<1x64xf32> to vector<32x64xf32>
    %21 = arith.addf %18, %20 : vector<32x64xf32>
    %cst_24 = arith.constant 0.000000e+00 : f32
    %22 = vector.broadcast %cst_24 : f32 to vector<32x64xf32>
    %23 = arith.cmpf ogt, %21, %22 : vector<32x64xf32>
    %cst_25 = arith.constant 2.000000e-01 : f32
    %24 = vector.broadcast %cst_25 : f32 to vector<32x64xf32>
    %25 = arith.mulf %24, %21 : vector<32x64xf32>
    %26 = arith.select %23, %21, %25 : vector<32x64xi1>, vector<32x64xf32>
    %cst_26 = arith.constant dense<0xFF800000> : vector<64xf32>
    %27 = vector.multi_reduction <maximumf>, %26, %cst_26 [0] : vector<32x64xf32> to vector<64xf32>
    %28 = vector.shape_cast %27 : vector<64xf32> to vector<1x64xf32>
    %c0_27 = arith.constant 0 : index
    %c0_28 = arith.constant 0 : index
    %c0_29 = arith.constant 0 : index
    %29 = vector.load %arg10[%c0_27, %c0_28, %c0_29] : memref<1x1x64xf32, #tpu.memory_space<vmem>>, vector<1x1x64xf32>
    %30 = vector.shape_cast %29 : vector<1x1x64xf32> to vector<1x64xf32>
    %31 = vector.shape_cast %28 : vector<1x64xf32> to vector<1x1x64xf32>
    tpu.vector_store %arg10[%c0_27, %c0_28, %c0_29], %31 {strides = array<i32>} : memref<1x1x64xf32, #tpu.memory_space<vmem>>, vector<1x1x64xf32>,
    %cst_30 = arith.constant dense<0.000000e+00> : vector<64xf32>
    %32 = vector.multi_reduction <add>, %26, %cst_30 [0] : vector<32x64xf32> to vector<64xf32>
    %33 = vector.shape_cast %32 : vector<64xf32> to vector<1x64xf32>
    %cst_31 = arith.constant 3.200000e+01 : f32
    %34 = vector.broadcast %cst_31 : f32 to vector<1x64xf32>
    %35 = arith.divf %33, %34 : vector<1x64xf32>
    %c0_32 = arith.constant 0 : index
    %c0_33 = arith.constant 0 : index
    %c0_34 = arith.constant 0 : index
    %36 = vector.load %arg11[%c0_32, %c0_33, %c0_34] : memref<1x1x64xf32, #tpu.memory_space<vmem>>, vector<1x1x64xf32>
    %37 = vector.shape_cast %36 : vector<1x1x64xf32> to vector<1x64xf32>
    %38 = vector.shape_cast %35 : vector<1x64xf32> to vector<1x1x64xf32>
    tpu.vector_store %arg11[%c0_32, %c0_33, %c0_34], %38 {strides = array<i32>} : memref<1x1x64xf32, #tpu.memory_space<vmem>>, vector<1x1x64xf32>,
    return
  }
  func.func @transform_0(%arg0: i32) -> (i32, i32, i32) {
    %c0_i32 = arith.constant 0 : i32
    %c0_i32_0 = arith.constant 0 : i32
    %c0_i32_1 = arith.constant 0 : i32
    return %arg0, %c0_i32, %c0_i32_0 : i32, i32, i32
  }
  func.func @transform_1(%arg0: i32) -> (i32, i32, i32) {
    %c0_i32 = arith.constant 0 : i32
    %c0_i32_0 = arith.constant 0 : i32
    %c0_i32_1 = arith.constant 0 : i32
    return %arg0, %c0_i32, %c0_i32_0 : i32, i32, i32
  }
  func.func @transform_2(%arg0: i32) -> (i32, i32, i32) {
    %c0_i32 = arith.constant 0 : i32
    %c0_i32_0 = arith.constant 0 : i32
    %c0_i32_1 = arith.constant 0 : i32
    return %arg0, %c0_i32, %c0_i32_0 : i32, i32, i32
  }
  func.func @transform_3(%arg0: i32) -> (i32, i32, i32) {
    %c0_i32 = arith.constant 0 : i32
    %c0_i32_0 = arith.constant 0 : i32
    %c0_i32_1 = arith.constant 0 : i32
    return %arg0, %c0_i32, %c0_i32_0 : i32, i32, i32
  }
  func.func @transform_4(%arg0: i32) -> (i32, i32) {
    %c0_i32 = arith.constant 0 : i32
    %c0_i32_0 = arith.constant 0 : i32
    %c0_i32_1 = arith.constant 0 : i32
    return %c0_i32, %c0_i32_0 : i32, i32
  }
  func.func @transform_5(%arg0: i32) -> (i32, i32) {
    %c0_i32 = arith.constant 0 : i32
    %c0_i32_0 = arith.constant 0 : i32
    %c0_i32_1 = arith.constant 0 : i32
    return %c0_i32, %c0_i32_0 : i32, i32
  }
  func.func @transform_6(%arg0: i32) -> (i32, i32) {
    %c0_i32 = arith.constant 0 : i32
    %c0_i32_0 = arith.constant 0 : i32
    %c0_i32_1 = arith.constant 0 : i32
    return %c0_i32, %c0_i32_0 : i32, i32
  }
  func.func @transform_7(%arg0: i32) -> (i32, i32) {
    %c0_i32 = arith.constant 0 : i32
    %c0_i32_0 = arith.constant 0 : i32
    %c0_i32_1 = arith.constant 0 : i32
    return %c0_i32, %c0_i32_0 : i32, i32
  }
  func.func @transform_8(%arg0: i32) -> (i32, i32) {
    %c0_i32 = arith.constant 0 : i32
    %c0_i32_0 = arith.constant 0 : i32
    %c0_i32_1 = arith.constant 0 : i32
    return %c0_i32, %c0_i32_0 : i32, i32
  }
  func.func @transform_9(%arg0: i32) -> (i32, i32, i32) {
    %c0_i32 = arith.constant 0 : i32
    %c0_i32_0 = arith.constant 0 : i32
    %c0_i32_1 = arith.constant 0 : i32
    return %arg0, %c0_i32, %c0_i32_0 : i32, i32, i32
  }
  func.func @transform_10(%arg0: i32) -> (i32, i32, i32) {
    %c0_i32 = arith.constant 0 : i32
    %c0_i32_0 = arith.constant 0 : i32
    %c0_i32_1 = arith.constant 0 : i32
    return %arg0, %c0_i32, %c0_i32_0 : i32, i32, i32
  }
}

</mosaic_0001>

<bundles_post_ra>
// kernel: dgcnn_forward.10
= control target key start
LH: loop header
LB: loop body
LE: loop exit
PB: predicated region body
PF: predicated region fallthrough
CT: control target
= control target key end

     0   :  { %s693_s15 = smov 0   ;;  %s695_s16 = smov 0   ;;  %s750_s0 = inlined_call_operand.vmem [shape: bf16[2,32,3], index: 0, kind: input, shape index: {}, may-alias: {0,1}]   ;;  %s751_s1 = inlined_call_operand.vmem [shape: bf16[2,32,3], index: 1, kind: input, shape index: {}, may-alias: {0,1}]   ;;  %s752_s2 = inlined_call_operand.vmem [shape: f32[2,32,1], index: 2, kind: input, shape index: {}]   ;;  %s753_s3 = inlined_call_operand.vmem [shape: f32[2,1,32], index: 3, kind: input, shape index: {}]   ;;  %s754_s4 = inlined_call_operand.vmem [shape: f32[2,32,32], index: 4, kind: output, shape index: {}]  }
   0x1   :  { %s697_s17 = smov 0  }
   0x2 LB: > { %s26_s18 = sadd.s32 1, %s661_s16  ;;  %p576_p0 = scmp.ge.s32.totalorder %s665_s17, 1  ;;  %s665_s17 = sphi %s697_s17, %s14_s17   ;;  %s661_s16 = sphi %s695_s16, %s756_s16   ;;  %s657_s15 = sphi %s693_s15, %s755_s15  }
   0x3   : > { %p28_p1 = scmp.ge.s32.totalorder %s26_s18, 2  ;;  %p218_p2 = scmp.lt.s32.totalorder %s665_s17, 3 }
   0x5   : > { %s758_s18 = smov (%p28_p1, %s26_s18), 0  ;;  %p219_p3 = pnand %p576_p0, %p218_p2 }
   0x6   : > { %p270_p4 = scmp.lt.s32.totalorder (!%p219_p3), %s657_s15, 1  ;;  %v667_v0 = vmov (!%p219_p3), 0   ;;  %vm336_vm0 = vcmask (!%p219_p3), 23552   ;;  %vm441_vm1 = vcmask (!%p219_p3), 261120  }
   0x7   : > { %222 = sbr.rel (%p219_p3) target bundleno = 256 (0x100), region = 36  ;;  %638 = vset.pattern.permute.xlu1 (!%p219_p3), %v667_v0  ;;  %637 = vset.pattern.permute.xlu0 (!%p219_p3), %v667_v0 }
   0xe   : > { %s760_s15 = smov (!%p270_p4, %s657_s15), 1 }
   0xf   : > { %s594_s19 = sshll.u32 %s760_s15, 4  ;;  %s596_s20 = sshll.u32 %s760_s15, 5 }
  0x10   : > { %s283_s23 = scalar_lea.vmem %s751_s1, %s594_s19  ;;  %s277_s26 = scalar_lea.vmem %s750_s0, %s594_s19 }
  0x11   : > { %v639_v1 = vld [vmem:[%s283_s23] sm:$0xff]   ;;  %v640_v2 = vld [vmem:[%s283_s23 + $0x8] sm:$0xff]   ;;  %s292_s29 = scalar_lea.vmem %s752_s2, %s596_s20  ;;  %s296_s6 = scalar_lea.vmem %s753_s3, %s760_s15 }
  0x12   : > { %610 = vmatprep.subr.msk.bf16.mxu0 %vm336_vm0, %v639_v1  ;;  %v344_v3 = vsel %vm336_vm0, %v639_v1, 0  ;;  %v641_v4 = vld [vmem:[%s277_s26] sm:$0xff]   ;;  %v404_v5 = vld [vmem:[%s292_s29 + $0x10] sm:$0xff]  ;;  %v405_v7 = vld [vmem:[%s292_s29 + $0x18] sm:$0xff]  ;;  %v347_v9 = vsel %vm336_vm0, %v640_v2, 0  ;;  %s305_s9 = scalar_lea.vmem %s754_s4, %s596_s20 }
  0x13   : > { %603 = vmatpush3.bf16.xpose.msra.mxu0 %v344_v3  ;;  %606 = vmatprep.mubr.msk.bf16.mxu0 %vm336_vm0, %v641_v4  ;;  %v402_v6 = vld [vmem:[%s292_s29] sm:$0xff]  ;;  %v403_v8 = vld [vmem:[%s292_s29 + $0x8] sm:$0xff] }
  0x14   : > { %611 = vmatprep.subr.msk.bf16.mxu0 %vm336_vm0, %v640_v2  ;;  %418 = vperm.xlu1 %638, %v404_v5   ;;  %v642_v10 = vld [vmem:[%s277_s26 + $0x8] sm:$0xff]   ;;  %v591_v16 = vld [vmem:[%s296_s6] ss:$0 sm:$0xff] }
  0x15   : > { %408 = vperm.xlu0 %637, %v402_v6  }
  0x18   : > { %423 = vperm.xlu1 %638, %v405_v7  }
  0x19   : > { %413 = vperm.xlu0 %637, %v403_v8  }
  0x1b   : > { %605 = vmatpush3.bf16.xpose.msra.mxu0 %v347_v9 }
  0x22   : > { %607 = vmatmul.mubr.msk.bf16.vlgmr.msra.gmra.mrb[0].mxu0 %vm336_vm0, %v642_v10 }
  0x93   : > { %v419_v11 = vpop.permute.xlu1 %418 }
  0x94   : > { %v409_v12 = vpop.permute.xlu0 %408 }
  0x97   : > { %v424_v22 = vpop.permute.xlu1 %423 }
  0x98   : > { %v414_v26 = vpop.permute.xlu0 %413 }
  0xf5   : > { %v608_v13 = vpop.f32.mrb[0].mxu0 }
  0xf6   : > { %v400_v14 = vmul.f32 2.0, %v608_v13  ;;  %v383_v15 = vpop.f32.mrb[1].mxu0 }
  0xf7   : > { %v398_v17 = vmul.f32 2.0, %v383_v15  ;;  %v609_v18 = vpop.f32.mrb[2].mxu0 }
  0xf8   : > { %v428_v19 = vsub.f32 %v400_v14, %v419_v11  ;;  %v401_v20 = vmul.f32 2.0, %v609_v18  ;;  %v386_v21 = vpop.f32.mrb[3].mxu0 }
  0xf9   : > { %v426_v23 = vsub.f32 %v398_v17, %v409_v12  ;;  %v399_v24 = vmul.f32 2.0, %v386_v21 }
  0xfa   : > { %v439_v25 = vsub.f32 %v428_v19, %v591_v16  ;;  %v429_v27 = vsub.f32 %v401_v20, %v424_v22 }
  0xfb   : > { %v437_v28 = vsub.f32 %v426_v23, %v591_v16  ;;  %v427_v29 = vsub.f32 %v399_v24, %v414_v26 }
  0xfc   : > { %444 = vst.msk [vmem:[%s305_s9 + $0x10] sm:$0xff] %vm441_vm1, %v439_v25  ;;  %v440_v30 = vsub.f32 %v429_v27, %v591_v16 }
  0xfd   : > { %442 = vst.msk [vmem:[%s305_s9] sm:$0xff] %vm441_vm1, %v437_v28  ;;  %v438_v31 = vsub.f32 %v427_v29, %v591_v16 }
  0xfe   : > { %445 = vst.msk [vmem:[%s305_s9 + $0x18] sm:$0xff] %vm441_vm1, %v440_v30 }
  0xff   : > { %443 = vst.msk [vmem:[%s305_s9 + $0x8] sm:$0xff] %vm441_vm1, %v438_v31 }
 0x100 PF: > { %s14_s17 = sadd.s32 1, %s665_s17   ;;  %s755_s15 = smov %s661_s16 }
 0x101   : > { %p11_p5 = scmp.ge.s32.totalorder %s14_s17, 4   ;;  %s756_s16 = smov %s758_s18 }
 0x103   :  { %13 = sbr.rel (!%p11_p5) target bundleno = 2 (0x2), region = 75 }

// kernel: dgcnn_forward.11
= control target key start
LH: loop header
LB: loop body
LE: loop exit
PB: predicated region body
PF: predicated region fallthrough
CT: control target
= control target key end

     0   :  { %s934_s18 = smov 0   ;;  %s936_s19 = smov 0   ;;  %s1041_s0 = inlined_call_operand.vmem [shape: bf16[2,4,32,3], index: 0, kind: input, shape index: {}]   ;;  %s1042_s1 = inlined_call_operand.vmem [shape: bf16[2,32,3], index: 1, kind: input, shape index: {}]   ;;  %s1043_s2 = inlined_call_operand.vmem [shape: bf16[3,64], index: 2, kind: input, shape index: {}]   ;;  %s1044_s3 = inlined_call_operand.vmem [shape: bf16[3,64], index: 3, kind: input, shape index: {}]   ;;  %s1045_s4 = inlined_call_operand.vmem [shape: f32[1,64], index: 4, kind: input, shape index: {}]   ;;  %s1046_s5 = inlined_call_operand.vmem [shape: f32[2,32,64], index: 5, kind: output, shape index: {}]  }
   0x1   :  { %s938_s20 = smov 0  }
   0x2 LB: > { %s27_s21 = sadd.s32 1, %s897_s19  ;;  %p773_p0 = scmp.ge.s32.totalorder %s901_s20, 1  ;;  %s901_s20 = sphi %s938_s20, %s15_s20   ;;  %s897_s19 = sphi %s936_s19, %s1048_s19   ;;  %s893_s18 = sphi %s934_s18, %s1047_s18  }
   0x3   : > { %p29_p1 = scmp.ge.s32.totalorder %s27_s21, 2  ;;  %p225_p2 = scmp.lt.s32.totalorder %s901_s20, 3 }
   0x5   : > { %s1050_s21 = smov (%p29_p1, %s27_s21), 0  ;;  %p226_p3 = pnand %p773_p0, %p225_p2 }
   0x6   : > { %v305_v0 = vld [vmem:[%s1044_s3] sm:$0x3] (!%p226_p3)  ;;  %vm330_vm0 = vcmask (!%p226_p3), 1040384   ;;  %vm331_vm1 = vcmask (!%p226_p3), 1041408   ;;  %p271_p4 = scmp.lt.s32.totalorder (!%p226_p3), %s893_s18, 1  ;;  %v903_v1 = vmov (!%p226_p3), 65535  }
   0x7   : > { %229 = sbr.rel (%p226_p3) target bundleno = 262 (0x106), region = 40  ;;  %v332_v2 = vsel (!%p226_p3), %vm330_vm0, 4294967295, %v903_v1  ;;  %v402_v3 = vld [vmem:[%s1043_s2] sm:$0x3] (!%p226_p3)  ;;  %vm323_vm2 = vcmask (!%p226_p3), 23552   ;;  %vm631_vm4 = vcmask (!%p226_p3), 523264  }
   0x8   : > { %v333_v4 = vsel (!%p226_p3), %vm331_vm1, %v332_v2, 0  ;;  %v780_v17 = vld [vmem:[%s1045_s4] ss:$0 sm:$0xff] (!%p226_p3) }
   0x9   : > { %v335_v5 = vand.u32 (!%p226_p3), %v333_v4, %v305_v0  ;;  %v468_v6 = vand.u32 (!%p226_p3), %v402_v3, %v333_v4 }
   0xb   : > { %818 = vmatprep.subr.bf16.mxu0 (!%p226_p3), %v335_v5  ;;  %842 = vmatprep.subr.bf16.mxu1 (!%p226_p3), %v468_v6 }
   0xc   : > { %819 = vmatpush3.bf16.msra.mxu0 (!%p226_p3), %v335_v5  ;;  %843 = vmatpush3.bf16.msra.mxu1 (!%p226_p3), %v468_v6 }
   0xd   : > { %824 = vmatprep.subr.bf16.mxu0 (!%p226_p3), %v468_v6 }
   0xe   : > { %s1052_s18 = smov (!%p271_p4, %s893_s18), 1 }
   0xf   : > { %s803_s26 = sshll.u32 %s1052_s18, 6  ;;  %s804_s27 = sshll.u32 %s1052_s18, 4 }
  0x10   : > { %s278_s30 = scalar_lea.vmem %s1041_s0, %s803_s26  ;;  %s288_s8 = scalar_lea.vmem %s1042_s1, %s804_s27 }
  0x11   : > { %v869_v7 = vld [vmem:[%s288_s8] sm:$0xff]   ;;  %v870_v8 = vld [vmem:[%s278_s30 + $0x10] sm:$0xff]   ;;  %v871_v9 = vld [vmem:[%s288_s8 + $0x8] sm:$0xff]   ;;  %s805_s11 = sshll.u32 %s1052_s18, 5 }
  0x12   : > { %820 = vmatprep.mubr.msk.bf16.mxu0 %vm323_vm2, %v869_v7  ;;  %830 = vmatprep.mubr.msk.bf16.mxu1 %vm323_vm2, %v870_v8  ;;  %v872_v10 = vld [vmem:[%s278_s30 + $0x18] sm:$0xff]   ;;  %v873_v11 = vld [vmem:[%s278_s30] sm:$0xff]   ;;  %v875_v13 = vld [vmem:[%s278_s30 + $0x8] sm:$0xff]   ;;  %s298_s14 = scalar_lea.vmem %s1046_s5, %s805_s11 }
  0x13   : > { %821 = vmatmul.mubr.msk.bf16.vlgmr.msra.gmra.mrb[0].mxu0 %vm323_vm2, %v871_v9  ;;  %831 = vmatmul.mubr.msk.bf16.vlgmr.msra.gmra.mrb[0].mxu1 %vm323_vm2, %v872_v10  ;;  %v874_v12 = vld [vmem:[%s278_s30 + $0x20] sm:$0xff]   ;;  %v876_v14 = vld [vmem:[%s278_s30 + $0x28] sm:$0xff]   ;;  %v877_v15 = vld [vmem:[%s278_s30 + $0x30] sm:$0xff]  }
  0x14   : > { %825 = vmatpush3.bf16.msra.mxu0 %v468_v6  ;;  %826 = vmatprep.mubr.msk.bf16.mxu0 %vm323_vm2, %v873_v11  ;;  %v878_v16 = vld [vmem:[%s278_s30 + $0x38] sm:$0xff]  }
  0x15   : > { %834 = vmatprep.mubr.msk.bf16.mxu1 %vm323_vm2, %v874_v12 }
  0x1b   : > { %827 = vmatmul.mubr.msk.bf16.vlgmr.msra.gmra.mrb[4].mxu0 %vm323_vm2, %v875_v13  ;;  %835 = vmatmul.mubr.msk.bf16.gmra.mrb[4].mxu1 %vm323_vm2, %v876_v14 }
  0x1c   : > { %838 = vmatprep.mubr.msk.bf16.mxu1 %vm323_vm2, %v877_v15 }
  0x23   : > { %839 = vmatmul.mubr.msk.bf16.gmra.mrb[8].mxu1 %vm323_vm2, %v878_v16 }
  0xe6   : > { %v822_v18 = vpop.f32.mrb[0].mxu0  ;;  %v832_v20 = vpop.f32.mrb[0].mxu1 }
  0xe7   : > { %v981_v19 = vadd.f32 %v822_v18, %v780_v17  ;;  %v371_v21 = vpop.f32.mrb[1].mxu0  ;;  %v520_v23 = vpop.f32.mrb[1].mxu1 }
  0xe8   : > { %v983_v22 = vadd.f32 %v780_v17, %v371_v21  ;;  %v823_v24 = vpop.f32.mrb[2].mxu0  ;;  %v833_v27 = vpop.f32.mrb[2].mxu1 }
  0xe9   : > { %v573_v25 = vadd.f32 %v832_v20, %v981_v19  ;;  %v986_v26 = vadd.f32 %v823_v24, %v780_v17  ;;  %v374_v28 = vpop.f32.mrb[3].mxu0  ;;  %v523_v31 = vpop.f32.mrb[3].mxu1 }
  0xea   : > { %v571_v29 = vadd.f32 %v520_v23, %v983_v22  ;;  %v989_v30 = vadd.f32 %v780_v17, %v374_v28 }
  0xeb   : > { %vm589_vm3 = vcmp.gt.f32.partialorder %v573_v25, 0.0  ;;  %v605_v32 = vmul.f32 0.2, %v573_v25  ;;  %v574_v33 = vadd.f32 %v833_v27, %v986_v26 }
  0xec   : > { %vm587_vm5 = vcmp.gt.f32.partialorder %v571_v29, 0.0  ;;  %v603_v34 = vmul.f32 0.2, %v571_v29  ;;  %v572_v35 = vadd.f32 %v523_v31, %v989_v30 }
  0xed   : > { %v621_v36 = vsel %vm589_vm3, %v573_v25, %v605_v32  ;;  %vm590_vm6 = vcmp.gt.f32.partialorder %v574_v33, 0.0  ;;  %v606_v37 = vmul.f32 0.2, %v574_v33 }
  0xee   : > { %v619_v38 = vsel %vm587_vm5, %v571_v29, %v603_v34  ;;  %vm588_vm7 = vcmp.gt.f32.partialorder %v572_v35, 0.0  ;;  %v604_v39 = vmul.f32 0.2, %v572_v35  ;;  %v828_v40 = vpop.f32.mrb[4].mxu0  ;;  %v647_v41 = vsel %vm631_vm4, %v621_v36, -inf  ;;  %v836_v45 = vpop.f32.mrb[4].mxu1 }
  0xef   : > { %v633_v42 = vsel %vm631_vm4, %v619_v38, -inf  ;;  %v622_v43 = vsel %vm590_vm6, %v574_v33, %v606_v37  ;;  %v569_v44 = vadd.f32 %v828_v40, %v981_v19  ;;  %v504_v46 = vpop.f32.mrb[5].mxu0  ;;  %v577_v49 = vadd.f32 %v836_v45, %v981_v19  ;;  %v536_v51 = vpop.f32.mrb[5].mxu1 }
  0xf0   : > { %v654_v47 = vsel %vm631_vm4, %v622_v43, -inf  ;;  %v620_v48 = vsel %vm588_vm7, %v572_v35, %v604_v39  ;;  %v567_v50 = vadd.f32 %v504_v46, %v983_v22  ;;  %v829_v52 = vpop.f32.mrb[6].mxu0  ;;  %v575_v55 = vadd.f32 %v536_v51, %v983_v22  ;;  %v837_v56 = vpop.f32.mrb[6].mxu1 }
  0xf1   : > { %v1000_v53 = vsel %vm631_vm4, %v620_v48, -inf  ;;  %vm585_vm8 = vcmp.gt.f32.partialorder %v569_v44, 0.0  ;;  %v601_v54 = vmul.f32 0.2, %v569_v44  ;;  %v507_v57 = vpop.f32.mrb[7].mxu0  ;;  %vm593_vm9 = vcmp.gt.f32.partialorder %v577_v49, 0.0 }
  0xf2   : > { %v609_v58 = vmul.f32 0.2, %v577_v49  ;;  %vm583_vm10 = vcmp.gt.f32.partialorder %v567_v50, 0.0  ;;  %v599_v59 = vmul.f32 0.2, %v567_v50  ;;  %vm591_vm11 = vcmp.gt.f32.partialorder %v575_v55, 0.0 }
  0xf3   : > { %v617_v60 = vsel %vm585_vm8, %v569_v44, %v601_v54  ;;  %v607_v61 = vmul.f32 0.2, %v575_v55  ;;  %v570_v62 = vadd.f32 %v829_v52, %v986_v26  ;;  %v539_v63 = vpop.f32.mrb[7].mxu1  ;;  %v578_v3 = vadd.f32 %v837_v56, %v986_v26 }
  0xf4   : > { %v646_v0 = vsel %vm631_vm4, %v617_v60, -inf  ;;  %v625_v1 = vsel %vm593_vm9, %v577_v49, %v609_v58  ;;  %v615_v2 = vsel %vm583_vm10, %v567_v50, %v599_v59  ;;  %v568_v13 = vadd.f32 %v507_v57, %v989_v30 }
  0xf5   : > { %v648_v4 = vmax.f32 %v646_v0, %v647_v41  ;;  %v649_v5 = vsel %vm631_vm4, %v625_v1, -inf  ;;  %v632_v6 = vsel %vm631_vm4, %v615_v2, -inf  ;;  %v623_v7 = vsel %vm591_vm11, %v575_v55, %v607_v61 }
  0xf6   : > { %v634_v8 = vmax.f32 %v632_v6, %v633_v42  ;;  %v635_v9 = vsel %vm631_vm4, %v623_v7, -inf  ;;  %vm586_vm12 = vcmp.gt.f32.partialorder %v570_v62, 0.0  ;;  %v602_v10 = vmul.f32 0.2, %v570_v62  ;;  %v840_v14 = vpop.f32.mrb[8].mxu1 }
  0xf7   : > { %v650_v11 = vmax.f32 %v648_v4, %v649_v5  ;;  %vm594_vm13 = vcmp.gt.f32.partialorder %v578_v3, 0.0  ;;  %v610_v12 = vmul.f32 0.2, %v578_v3  ;;  %v576_v17 = vadd.f32 %v539_v63, %v989_v30  ;;  %v552_v20 = vpop.f32.mrb[9].mxu1 }
  0xf8   : > { %v636_v15 = vmax.f32 %v634_v8, %v635_v9  ;;  %v618_v16 = vsel %vm586_vm12, %v570_v62, %v602_v10  ;;  %v581_v18 = vadd.f32 %v840_v14, %v981_v19  ;;  %vm584_vm14 = vcmp.gt.f32.partialorder %v568_v13, 0.0  ;;  %v841_v25 = vpop.f32.mrb[10].mxu1 }
  0xf9   : > { %v653_v21 = vsel %vm631_vm4, %v618_v16, -inf  ;;  %v626_v23 = vsel %vm594_vm13, %v578_v3, %v610_v12  ;;  %v600_v24 = vmul.f32 0.2, %v568_v13  ;;  %vm592_vm15 = vcmp.gt.f32.partialorder %v576_v17, 0.0  ;;  %v555_v31 = vpop.f32.mrb[11].mxu1 }
  0xfa   : > { %v655_v27 = vmax.f32 %v653_v21, %v654_v47  ;;  %v656_v28 = vsel %vm631_vm4, %v626_v23, -inf  ;;  %v608_v29 = vmul.f32 0.2, %v576_v17  ;;  %vm597_vm0 = vcmp.gt.f32.partialorder %v581_v18, 0.0 }
  0xfb   : > { %v616_v32 = vsel %vm584_vm14, %v568_v13, %v600_v24  ;;  %v613_v33 = vmul.f32 0.2, %v581_v18  ;;  %v579_v34 = vadd.f32 %v552_v20, %v983_v22  ;;  %v582_v37 = vadd.f32 %v841_v25, %v986_v26 }
  0xfc   : > { %v657_v19 = vmax.f32 %v655_v27, %v656_v28  ;;  %v639_v35 = vsel %vm631_vm4, %v616_v32, -inf  ;;  %v624_v36 = vsel %vm592_vm15, %v576_v17, %v608_v29  ;;  %v580_v45 = vadd.f32 %v555_v31, %v989_v30 }
  0xfd   : > { %v641_v38 = vmax.f32 %v639_v35, %v1000_v53  ;;  %v642_v39 = vsel %vm631_vm4, %v624_v36, -inf  ;;  %v629_v40 = vsel %vm597_vm0, %v581_v18, %v613_v33  ;;  %vm595_vm1 = vcmp.gt.f32.partialorder %v579_v34, 0.0 }
  0xfe   : > { %v651_v41 = vsel %vm631_vm4, %v629_v40, -inf  ;;  %v611_v42 = vmul.f32 0.2, %v579_v34  ;;  %vm598_vm2 = vcmp.gt.f32.partialorder %v582_v37, 0.0  ;;  %v614_v22 = vmul.f32 0.2, %v582_v37 }
  0xff   : > { %v643_v43 = vmax.f32 %v641_v38, %v642_v39  ;;  %v652_v44 = vmax.f32 %v650_v11, %v651_v41  ;;  %vm596_vm3 = vcmp.gt.f32.partialorder %v580_v45, 0.0  ;;  %v612_v49 = vmul.f32 0.2, %v580_v45 }
 0x100   : > { %v627_v26 = vsel %vm595_vm1, %v579_v34, %v611_v42  ;;  %v630_v46 = vsel %vm598_vm2, %v582_v37, %v614_v22 }
 0x101   : > { %662 = vst.msk [vmem:[%s298_s14 + $0x10] sm:$0xff] %vm631_vm4, %v652_v44  ;;  %v637_v47 = vsel %vm631_vm4, %v627_v26, -inf  ;;  %v658_v48 = vsel %vm631_vm4, %v630_v46, -inf  ;;  %v628_v52 = vsel %vm596_vm3, %v580_v45, %v612_v49 }
 0x102   : > { %v638_v50 = vmax.f32 %v636_v15, %v637_v47  ;;  %v659_v51 = vmax.f32 %v657_v19, %v658_v48  ;;  %v644_v53 = vsel %vm631_vm4, %v628_v52, -inf }
 0x103   : > { %v645_v30 = vmax.f32 %v643_v43, %v644_v53 }
 0x104   : > { %660 = vst.msk [vmem:[%s298_s14] sm:$0xff] %vm631_vm4, %v638_v50  ;;  %663 = vst.msk [vmem:[%s298_s14 + $0x18] sm:$0xff] %vm631_vm4, %v659_v51 }
 0x105   : > { %661 = vst.msk [vmem:[%s298_s14 + $0x8] sm:$0xff] %vm631_vm4, %v645_v30 }
 0x106 PF: > { %s15_s20 = sadd.s32 1, %s901_s20   ;;  %s1047_s18 = smov %s897_s19 }
 0x107   : > { %p12_p5 = scmp.ge.s32.totalorder %s15_s20, 4   ;;  %s1048_s19 = smov %s1050_s21 }
 0x109   :  { %14 = sbr.rel (!%p12_p5) target bundleno = 2 (0x2), region = 73 }

// kernel: dgcnn_forward.12
= control target key start
LH: loop header
LB: loop body
LE: loop exit
PB: predicated region body
PF: predicated region fallthrough
CT: control target
= control target key end

     0   :  { %s693_s15 = smov 0   ;;  %s695_s16 = smov 0   ;;  %s750_s0 = inlined_call_operand.vmem [shape: bf16[2,32,64], index: 0, kind: input, shape index: {}, may-alias: {0,1}]   ;;  %s751_s1 = inlined_call_operand.vmem [shape: bf16[2,32,64], index: 1, kind: input, shape index: {}, may-alias: {0,1}]   ;;  %s752_s2 = inlined_call_operand.vmem [shape: f32[2,32,1], index: 2, kind: input, shape index: {}]   ;;  %s753_s3 = inlined_call_operand.vmem [shape: f32[2,1,32], index: 3, kind: input, shape index: {}]   ;;  %s754_s4 = inlined_call_operand.vmem [shape: f32[2,32,32], index: 4, kind: output, shape index: {}]  }
   0x1   :  { %s697_s17 = smov 0  }
   0x2 LB: > { %s26_s18 = sadd.s32 1, %s661_s16  ;;  %p576_p0 = scmp.ge.s32.totalorder %s665_s17, 1  ;;  %s665_s17 = sphi %s697_s17, %s14_s17   ;;  %s661_s16 = sphi %s695_s16, %s756_s16   ;;  %s657_s15 = sphi %s693_s15, %s755_s15  }
   0x3   : > { %p28_p1 = scmp.ge.s32.totalorder %s26_s18, 2  ;;  %p218_p2 = scmp.lt.s32.totalorder %s665_s17, 3 }
   0x5   : > { %s758_s18 = smov (%p28_p1, %s26_s18), 0  ;;  %p219_p3 = pnand %p576_p0, %p218_p2 }
   0x6   : > { %p270_p4 = scmp.lt.s32.totalorder (!%p219_p3), %s657_s15, 1  ;;  %v667_v0 = vmov (!%p219_p3), 0   ;;  %vm336_vm0 = vcmask (!%p219_p3), 523264   ;;  %vm441_vm1 = vcmask (!%p219_p3), 261120  }
   0x7   : > { %222 = sbr.rel (%p219_p3) target bundleno = 256 (0x100), region = 36  ;;  %638 = vset.pattern.permute.xlu1 (!%p219_p3), %v667_v0  ;;  %637 = vset.pattern.permute.xlu0 (!%p219_p3), %v667_v0 }
   0xe   : > { %s760_s15 = smov (!%p270_p4, %s657_s15), 1 }
   0xf   : > { %s594_s19 = sshll.u32 %s760_s15, 4  ;;  %s596_s20 = sshll.u32 %s760_s15, 5 }
  0x10   : > { %s283_s23 = scalar_lea.vmem %s751_s1, %s594_s19  ;;  %s277_s26 = scalar_lea.vmem %s750_s0, %s594_s19 }
  0x11   : > { %v639_v1 = vld [vmem:[%s283_s23] sm:$0xff]   ;;  %v640_v2 = vld [vmem:[%s283_s23 + $0x8] sm:$0xff]   ;;  %s292_s29 = scalar_lea.vmem %s752_s2, %s596_s20  ;;  %s296_s6 = scalar_lea.vmem %s753_s3, %s760_s15 }
  0x12   : > { %610 = vmatprep.subr.msk.bf16.mxu0 %vm336_vm0, %v639_v1  ;;  %v344_v3 = vsel %vm336_vm0, %v639_v1, 0  ;;  %v641_v4 = vld [vmem:[%s277_s26] sm:$0xff]   ;;  %v404_v5 = vld [vmem:[%s292_s29 + $0x10] sm:$0xff]  ;;  %v405_v7 = vld [vmem:[%s292_s29 + $0x18] sm:$0xff]  ;;  %v347_v9 = vsel %vm336_vm0, %v640_v2, 0  ;;  %s305_s9 = scalar_lea.vmem %s754_s4, %s596_s20 }
  0x13   : > { %603 = vmatpush3.bf16.xpose.msra.mxu0 %v344_v3  ;;  %606 = vmatprep.mubr.msk.bf16.mxu0 %vm336_vm0, %v641_v4  ;;  %v402_v6 = vld [vmem:[%s292_s29] sm:$0xff]  ;;  %v403_v8 = vld [vmem:[%s292_s29 + $0x8] sm:$0xff] }
  0x14   : > { %611 = vmatprep.subr.msk.bf16.mxu0 %vm336_vm0, %v640_v2  ;;  %418 = vperm.xlu1 %638, %v404_v5   ;;  %v642_v10 = vld [vmem:[%s277_s26 + $0x8] sm:$0xff]   ;;  %v591_v16 = vld [vmem:[%s296_s6] ss:$0 sm:$0xff] }
  0x15   : > { %408 = vperm.xlu0 %637, %v402_v6  }
  0x18   : > { %423 = vperm.xlu1 %638, %v405_v7  }
  0x19   : > { %413 = vperm.xlu0 %637, %v403_v8  }
  0x1b   : > { %605 = vmatpush3.bf16.xpose.msra.mxu0 %v347_v9 }
  0x22   : > { %607 = vmatmul.mubr.msk.bf16.vlgmr.msra.gmra.mrb[0].mxu0 %vm336_vm0, %v642_v10 }
  0x93   : > { %v419_v11 = vpop.permute.xlu1 %418 }
  0x94   : > { %v409_v12 = vpop.permute.xlu0 %408 }
  0x97   : > { %v424_v22 = vpop.permute.xlu1 %423 }
  0x98   : > { %v414_v26 = vpop.permute.xlu0 %413 }
  0xf5   : > { %v608_v13 = vpop.f32.mrb[0].mxu0 }
  0xf6   : > { %v400_v14 = vmul.f32 2.0, %v608_v13  ;;  %v383_v15 = vpop.f32.mrb[1].mxu0 }
  0xf7   : > { %v398_v17 = vmul.f32 2.0, %v383_v15  ;;  %v609_v18 = vpop.f32.mrb[2].mxu0 }
  0xf8   : > { %v428_v19 = vsub.f32 %v400_v14, %v419_v11  ;;  %v401_v20 = vmul.f32 2.0, %v609_v18  ;;  %v386_v21 = vpop.f32.mrb[3].mxu0 }
  0xf9   : > { %v426_v23 = vsub.f32 %v398_v17, %v409_v12  ;;  %v399_v24 = vmul.f32 2.0, %v386_v21 }
  0xfa   : > { %v439_v25 = vsub.f32 %v428_v19, %v591_v16  ;;  %v429_v27 = vsub.f32 %v401_v20, %v424_v22 }
  0xfb   : > { %v437_v28 = vsub.f32 %v426_v23, %v591_v16  ;;  %v427_v29 = vsub.f32 %v399_v24, %v414_v26 }
  0xfc   : > { %444 = vst.msk [vmem:[%s305_s9 + $0x10] sm:$0xff] %vm441_vm1, %v439_v25  ;;  %v440_v30 = vsub.f32 %v429_v27, %v591_v16 }
  0xfd   : > { %442 = vst.msk [vmem:[%s305_s9] sm:$0xff] %vm441_vm1, %v437_v28  ;;  %v438_v31 = vsub.f32 %v427_v29, %v591_v16 }
  0xfe   : > { %445 = vst.msk [vmem:[%s305_s9 + $0x18] sm:$0xff] %vm441_vm1, %v440_v30 }
  0xff   : > { %443 = vst.msk [vmem:[%s305_s9 + $0x8] sm:$0xff] %vm441_vm1, %v438_v31 }
 0x100 PF: > { %s14_s17 = sadd.s32 1, %s665_s17   ;;  %s755_s15 = smov %s661_s16 }
 0x101   : > { %p11_p5 = scmp.ge.s32.totalorder %s14_s17, 4   ;;  %s756_s16 = smov %s758_s18 }
 0x103   :  { %13 = sbr.rel (!%p11_p5) target bundleno = 2 (0x2), region = 75 }

// kernel: dgcnn_forward.13
= control target key start
LH: loop header
LB: loop body
LE: loop exit
PB: predicated region body
PF: predicated region fallthrough
CT: control target
= control target key end

     0   :  { %s1023_s18 = smov 0   ;;  %s1025_s19 = smov 0   ;;  %s1153_s0 = inlined_call_operand.vmem [shape: bf16[2,4,32,64], index: 0, kind: input, shape index: {}]   ;;  %s1154_s1 = inlined_call_operand.vmem [shape: bf16[2,32,64], index: 1, kind: input, shape index: {}]   ;;  %s1155_s2 = inlined_call_operand.vmem [shape: bf16[64,64], index: 2, kind: input, shape index: {}]   ;;  %s1156_s3 = inlined_call_operand.vmem [shape: bf16[64,64], index: 3, kind: input, shape index: {}]   ;;  %s1157_s4 = inlined_call_operand.vmem [shape: f32[1,64], index: 4, kind: input, shape index: {}]   ;;  %s1158_s5 = inlined_call_operand.vmem [shape: f32[2,32,64], index: 5, kind: output, shape index: {}]  }
   0x1   :  { %s1027_s20 = smov 0  }
   0x2 LB: > { %s27_s21 = sadd.s32 1, %s987_s19  ;;  %p824_p0 = scmp.ge.s32.totalorder %s991_s20, 1  ;;  %s991_s20 = sphi %s1027_s20, %s15_s20   ;;  %s987_s19 = sphi %s1025_s19, %s1160_s19   ;;  %s983_s18 = sphi %s1023_s18, %s1159_s18  }
   0x3   : > { %p29_p1 = scmp.ge.s32.totalorder %s27_s21, 2  ;;  %p225_p2 = scmp.lt.s32.totalorder %s991_s20, 3 }
   0x5   : > { %s1162_s21 = smov (%p29_p1, %s27_s21), 0  ;;  %p226_p3 = pnand %p824_p0, %p225_p2 }
   0x6   : > { %v951_v0 = vld [vmem:[%s1156_s3] sm:$0xff] (!%p226_p3)   ;;  %p271_p4 = scmp.lt.s32.totalorder (!%p226_p3), %s983_s18, 1  ;;  %v953_v2 = vld [vmem:[%s1156_s3 + $0x8] sm:$0xff] (!%p226_p3)   ;;  %v955_v4 = vld [vmem:[%s1156_s3 + $0x10] sm:$0xff] (!%p226_p3)   ;;  %vm354_vm0 = vcmask (!%p226_p3), 523264  }
   0x7   : > { %229 = sbr.rel (%p226_p3) target bundleno = 272 (0x110), region = 40  ;;  %v952_v1 = vld [vmem:[%s1155_s2] sm:$0xff] (!%p226_p3)   ;;  %883 = vmatprep.subr.bf16.mxu0 (!%p226_p3), %v951_v0  ;;  %v954_v3 = vld [vmem:[%s1155_s2 + $0x8] sm:$0xff] (!%p226_p3)   ;;  %v956_v5 = vld [vmem:[%s1155_s2 + $0x10] sm:$0xff] (!%p226_p3)  }
   0x8   : > { %919 = vmatprep.subr.bf16.mxu1 (!%p226_p3), %v952_v1  ;;  %884 = vmatpush3.bf16.msra.mxu0 (!%p226_p3), %v951_v0  ;;  %v957_v6 = vld [vmem:[%s1156_s3 + $0x18] sm:$0xff] (!%p226_p3)   ;;  %v831_v18 = vld [vmem:[%s1157_s4] ss:$0 sm:$0xff] (!%p226_p3) }
   0x9   : > { %923 = vmatpush3.bf16.msra.mxu1 (!%p226_p3), %v952_v1  ;;  %885 = vmatprep.subr.bf16.mxu0 (!%p226_p3), %v953_v2  ;;  %v958_v7 = vld [vmem:[%s1155_s2 + $0x18] sm:$0xff] (!%p226_p3)  }
   0xa   : > { %920 = vmatprep.subr.bf16.mxu1 (!%p226_p3), %v954_v3 }
   0xc   : > { %886 = vmatpush3.bf16.msra.mxu0 (!%p226_p3), %v953_v2 }
   0xd   : > { %924 = vmatpush3.bf16.msra.mxu1 (!%p226_p3), %v954_v3  ;;  %887 = vmatprep.subr.bf16.mxu0 (!%p226_p3), %v955_v4 }
   0xe   : > { %s1164_s18 = smov (!%p271_p4, %s983_s18), 1  ;;  %921 = vmatprep.subr.bf16.mxu1 %v956_v5 }
   0xf   : > { %s862_s7 = sshll.u32 %s1164_s18, 6  ;;  %s863_s10 = sshll.u32 %s1164_s18, 4 }
  0x10   : > { %s1069_s15 = scalar_lea.vmem %s1153_s0, %s862_s7  ;;  %s288_s22 = scalar_lea.vmem %s1154_s1, %s863_s10  ;;  %888 = vmatpush3.bf16.msra.mxu0 %v955_v4 }
  0x11   : > { %v959_v8 = vld [vmem:[%s288_s22] sm:$0xff]   ;;  %v960_v9 = vld [vmem:[%s1069_s15 + $0x10] sm:$0xff]   ;;  %925 = vmatpush3.bf16.msra.mxu1 %v956_v5  ;;  %889 = vmatprep.subr.bf16.mxu0 %v957_v6  ;;  %v961_v10 = vld [vmem:[%s288_s22 + $0x8] sm:$0xff]   ;;  %s864_s27 = sshll.u32 %s1164_s18, 5 }
  0x12   : > { %891 = vmatprep.mubr.msk.bf16.mxu0 %vm354_vm0, %v959_v8  ;;  %907 = vmatprep.mubr.msk.bf16.mxu1 %vm354_vm0, %v960_v9  ;;  %v962_v11 = vld [vmem:[%s1069_s15 + $0x18] sm:$0xff]   ;;  %v963_v12 = vld [vmem:[%s1069_s15 + $0x20] sm:$0xff]   ;;  %v964_v14 = vld [vmem:[%s1069_s15 + $0x28] sm:$0xff]   ;;  %s298_s29 = scalar_lea.vmem %s1158_s5, %s864_s27 }
  0x13   : > { %922 = vmatprep.subr.bf16.mxu1 %v958_v7  ;;  %v965_v13 = vld [vmem:[%s1069_s15] sm:$0xff]   ;;  %v966_v15 = vld [vmem:[%s1069_s15 + $0x30] sm:$0xff]   ;;  %v967_v16 = vld [vmem:[%s1069_s15 + $0x8] sm:$0xff]  }
  0x14   : > { %890 = vmatpush3.bf16.msra.mxu0 %v957_v6  ;;  %v968_v17 = vld [vmem:[%s1069_s15 + $0x38] sm:$0xff]  }
  0x15   : > { %926 = vmatpush3.bf16.msra.mxu1 %v958_v7  ;;  %895 = vmatprep.subr.bf16.mxu0 %v952_v1 }
  0x17   : > { %892 = vmatmul.mubr.msk.bf16.vlgmr.msra.gmra.mrb[0].mxu0 %vm354_vm0, %v961_v10 }
  0x18   : > { %908 = vmatmul.mubr.msk.bf16.vlgmr.msra.gmra.mrb[0].mxu1 %vm354_vm0, %v962_v11  ;;  %896 = vmatpush3.bf16.msra.mxu0 %v952_v1 }
  0x19   : > { %897 = vmatprep.subr.bf16.mxu0 %v954_v3  ;;  %911 = vmatprep.mubr.msk.bf16.mxu1 %vm354_vm0, %v963_v12 }
  0x1a   : > { %903 = vmatprep.mubr.msk.bf16.mxu0 %vm354_vm0, %v965_v13 }
  0x1c   : > { %898 = vmatpush3.bf16.msra.mxu0 %v954_v3 }
  0x1d   : > { %899 = vmatprep.subr.bf16.mxu0 %v956_v5 }
  0x20   : > { %912 = vmatmul.mubr.msk.bf16.gmra.mrb[4].mxu1 %vm354_vm0, %v964_v14  ;;  %900 = vmatpush3.bf16.msra.mxu0 %v956_v5 }
  0x21   : > { %901 = vmatprep.subr.bf16.mxu0 %v958_v7  ;;  %915 = vmatprep.mubr.msk.bf16.mxu1 %vm354_vm0, %v966_v15 }
  0x24   : > { %902 = vmatpush3.bf16.msra.mxu0 %v958_v7 }
  0x27   : > { %904 = vmatmul.mubr.msk.bf16.vlgmr.msra.gmra.mrb[4].mxu0 %vm354_vm0, %v967_v16 }
  0x28   : > { %916 = vmatmul.mubr.msk.bf16.gmra.mrb[8].mxu1 %vm354_vm0, %v968_v17 }
  0xea   : > { %v893_v19 = vpop.f32.mrb[0].mxu0 }
  0xeb   : > { %v404_v20 = vadd.f32 %v893_v19, %v831_v18  ;;  %v395_v21 = vpop.f32.mrb[1].mxu0  ;;  %v909_v22 = vpop.f32.mrb[0].mxu1 }
  0xec   : > { %v396_v23 = vadd.f32 %v831_v18, %v395_v21  ;;  %v894_v24 = vpop.f32.mrb[2].mxu0  ;;  %v572_v25 = vpop.f32.mrb[1].mxu1 }
  0xed   : > { %v625_v26 = vadd.f32 %v909_v22, %v404_v20  ;;  %v1098_v27 = vadd.f32 %v894_v24, %v831_v18  ;;  %v398_v28 = vpop.f32.mrb[3].mxu0  ;;  %v910_v29 = vpop.f32.mrb[2].mxu1 }
  0xee   : > { %v623_v30 = vadd.f32 %v572_v25, %v396_v23  ;;  %v1100_v31 = vadd.f32 %v831_v18, %v398_v28  ;;  %v575_v32 = vpop.f32.mrb[3].mxu1 }
  0xef   : > { %v626_v33 = vadd.f32 %v910_v29, %v1098_v27  ;;  %v657_v35 = vmul.f32 0.2, %v625_v26  ;;  %vm641_vm1 = vcmp.gt.f32.partialorder %v625_v26, 0.0 }
  0xf0   : > { %v624_v34 = vadd.f32 %v575_v32, %v1100_v31  ;;  %v655_v36 = vmul.f32 0.2, %v623_v30  ;;  %vm639_vm2 = vcmp.gt.f32.partialorder %v623_v30, 0.0 }
  0xf1   : > { %v658_v37 = vmul.f32 0.2, %v626_v33  ;;  %vm642_vm3 = vcmp.gt.f32.partialorder %v626_v33, 0.0  ;;  %v673_v41 = vsel %vm641_vm1, %v625_v26, %v657_v35 }
  0xf2   : > { %v671_v42 = vsel %vm639_vm2, %v623_v30, %v655_v36  ;;  %v656_v45 = vmul.f32 0.2, %v624_v34  ;;  %vm640_vm6 = vcmp.gt.f32.partialorder %v624_v34, 0.0  ;;  %v698_v55 = vsel %vm354_vm0, %v673_v41, -inf }
  0xf3   : > { %v913_v38 = vpop.f32.mrb[4].mxu1  ;;  %v674_v49 = vsel %vm642_vm3, %v626_v33, %v658_v37  ;;  %v684_v56 = vsel %vm354_vm0, %v671_v42, -inf }
  0xf4   : > { %v629_v39 = vadd.f32 %v913_v38, %v404_v20  ;;  %v588_v40 = vpop.f32.mrb[5].mxu1  ;;  %v705_v57 = vsel %vm354_vm0, %v674_v49, -inf  ;;  %v1111_v60 = vsel %vm640_vm6, %v624_v34, %v656_v45 }
  0xf5   : > { %v627_v43 = vadd.f32 %v588_v40, %v396_v23  ;;  %v914_v44 = vpop.f32.mrb[6].mxu1 }
  0xf6   : > { %vm645_vm4 = vcmp.gt.f32.partialorder %v629_v39, 0.0  ;;  %v661_v46 = vmul.f32 0.2, %v629_v39  ;;  %v630_v47 = vadd.f32 %v914_v44, %v1098_v27  ;;  %v591_v48 = vpop.f32.mrb[7].mxu1 }
  0xf7   : > { %vm643_vm5 = vcmp.gt.f32.partialorder %v627_v43, 0.0  ;;  %v659_v50 = vmul.f32 0.2, %v627_v43  ;;  %v1106_v51 = vadd.f32 %v591_v48, %v1100_v31 }
  0xf8   : > { %v677_v52 = vsel %vm645_vm4, %v629_v39, %v661_v46  ;;  %vm646_vm7 = vcmp.gt.f32.partialorder %v630_v47, 0.0  ;;  %v662_v53 = vmul.f32 0.2, %v630_v47  ;;  %v691_v46 = vsel %vm354_vm0, %v1111_v60, -inf }
  0xf9   : > { %v675_v54 = vsel %vm643_vm5, %v627_v43, %v659_v50  ;;  %v700_v61 = vsel %vm354_vm0, %v677_v52, -inf  ;;  %v660_v62 = vmul.f32 0.2, %v1106_v51  ;;  %vm644_vm8 = vcmp.gt.f32.partialorder %v1106_v51, 0.0 }
  0xfa   : > { %v678_v58 = vsel %vm646_vm7, %v630_v47, %v662_v53  ;;  %v905_v59 = vpop.f32.mrb[4].mxu0  ;;  %v686_v2 = vsel %vm354_vm0, %v675_v54, -inf }
  0xfb   : > { %v621_v63 = vadd.f32 %v905_v59, %v404_v20  ;;  %v917_v0 = vpop.f32.mrb[8].mxu1  ;;  %v556_v1 = vpop.f32.mrb[5].mxu0  ;;  %v707_v3 = vsel %vm354_vm0, %v678_v58, -inf }
  0xfc   : > { %v633_v4 = vadd.f32 %v917_v0, %v404_v20  ;;  %v619_v5 = vadd.f32 %v556_v1, %v396_v23  ;;  %v604_v6 = vpop.f32.mrb[9].mxu1  ;;  %v906_v7 = vpop.f32.mrb[6].mxu0 }
  0xfd   : > { %vm637_vm9 = vcmp.gt.f32.partialorder %v621_v63, 0.0  ;;  %v653_v8 = vmul.f32 0.2, %v621_v63  ;;  %v631_v9 = vadd.f32 %v604_v6, %v396_v23  ;;  %v622_v10 = vadd.f32 %v906_v7, %v1098_v27  ;;  %v918_v11 = vpop.f32.mrb[10].mxu1  ;;  %v559_v12 = vpop.f32.mrb[7].mxu0 }
  0xfe   : > { %vm649_vm10 = vcmp.gt.f32.partialorder %v633_v4, 0.0  ;;  %v665_v13 = vmul.f32 0.2, %v633_v4  ;;  %vm635_vm11 = vcmp.gt.f32.partialorder %v619_v5, 0.0  ;;  %v651_v14 = vmul.f32 0.2, %v619_v5 }
  0xff   : > { %v669_v15 = vsel %vm637_vm9, %v621_v63, %v653_v8  ;;  %vm647_vm12 = vcmp.gt.f32.partialorder %v631_v9, 0.0  ;;  %v663_v16 = vmul.f32 0.2, %v631_v9  ;;  %vm638_vm13 = vcmp.gt.f32.partialorder %v622_v10, 0.0  ;;  %v607_v17 = vpop.f32.mrb[11].mxu1 }
 0x100   : > { %v697_v18 = vsel %vm354_vm0, %v669_v15, -inf  ;;  %v681_v19 = vsel %vm649_vm10, %v633_v4, %v665_v13  ;;  %v667_v20 = vsel %vm635_vm11, %v619_v5, %v651_v14  ;;  %v654_v21 = vmul.f32 0.2, %v622_v10 }
 0x101   : > { %v699_v22 = vmax.f32 %v697_v18, %v698_v55  ;;  %v702_v23 = vsel %vm354_vm0, %v681_v19, -inf  ;;  %v683_v24 = vsel %vm354_vm0, %v667_v20, -inf  ;;  %v679_v25 = vsel %vm647_vm12, %v631_v9, %v663_v16 }
 0x102   : > { %v685_v26 = vmax.f32 %v683_v24, %v684_v56  ;;  %v688_v28 = vsel %vm354_vm0, %v679_v25, -inf  ;;  %v670_v29 = vsel %vm638_vm13, %v622_v10, %v654_v21  ;;  %v634_v30 = vadd.f32 %v918_v11, %v1098_v27 }
 0x103   : > { %v701_v32 = vmax.f32 %v699_v22, %v700_v61  ;;  %v704_v33 = vsel %vm354_vm0, %v670_v29, -inf  ;;  %v620_v34 = vadd.f32 %v559_v12, %v1100_v31  ;;  %v632_v35 = vadd.f32 %v607_v17, %v1100_v31 }
 0x104   : > { %v687_v36 = vmax.f32 %v685_v26, %v686_v2  ;;  %v706_v37 = vmax.f32 %v704_v33, %v705_v57  ;;  %vm650_vm14 = vcmp.gt.f32.partialorder %v634_v30, 0.0  ;;  %v666_v38 = vmul.f32 0.2, %v634_v30 }
 0x105   : > { %v703_v39 = vmax.f32 %v701_v32, %v702_v23  ;;  %vm636_vm15 = vcmp.gt.f32.partialorder %v620_v34, 0.0  ;;  %v652_v40 = vmul.f32 0.2, %v620_v34  ;;  %vm648_vm1 = vcmp.gt.f32.partialorder %v632_v35, 0.0 }
 0x106   : > { %v689_v27 = vmax.f32 %v687_v36, %v688_v28  ;;  %v682_v41 = vsel %vm650_vm14, %v634_v30, %v666_v38  ;;  %v708_v42 = vmax.f32 %v706_v37, %v707_v3  ;;  %v664_v43 = vmul.f32 0.2, %v632_v35 }
 0x107   : > { %v676_v31 = vsel %vm644_vm8, %v1106_v51, %v660_v62  ;;  %713 = vst.msk [vmem:[%s298_s29 + $0x10] sm:$0xff] %vm354_vm0, %v703_v39  ;;  %v709_v44 = vsel %vm354_vm0, %v682_v41, -inf  ;;  %v668_v45 = vsel %vm636_vm15, %v620_v34, %v652_v40 }
 0x108   : > { %711 = vst.msk [vmem:[%s298_s29] sm:$0xff] %vm354_vm0, %v689_v27  ;;  %v710_v47 = vmax.f32 %v708_v42, %v709_v44  ;;  %v690_v48 = vsel %vm354_vm0, %v668_v45, -inf  ;;  %v680_v50 = vsel %vm648_vm1, %v632_v35, %v664_v43  ;;  %v693_v52 = vsel %vm354_vm0, %v676_v31, -inf }
 0x109   : > { %v692_v49 = vmax.f32 %v690_v48, %v691_v46  ;;  %v695_v53 = vsel %vm354_vm0, %v680_v50, -inf }
 0x10a   : > { %714 = vst.msk [vmem:[%s298_s29 + $0x18] sm:$0xff] %vm354_vm0, %v710_v47 }
 0x10b   : > { %v694_v51 = vmax.f32 %v692_v49, %v693_v52 }
 0x10d   : > { %v696_v54 = vmax.f32 %v694_v51, %v695_v53 }
 0x10f   : > { %712 = vst.msk [vmem:[%s298_s29 + $0x8] sm:$0xff] %vm354_vm0, %v696_v54 }
 0x110 PF: > { %s15_s20 = sadd.s32 1, %s991_s20   ;;  %s1159_s18 = smov %s987_s19 }
 0x111   : > { %p12_p5 = scmp.ge.s32.totalorder %s15_s20, 4   ;;  %s1160_s19 = smov %s1162_s21 }
 0x113   :  { %14 = sbr.rel (!%p12_p5) target bundleno = 2 (0x2), region = 73 }

// kernel: dgcnn_forward.15
= control target key start
LH: loop header
LB: loop body
LE: loop exit
PB: predicated region body
PF: predicated region fallthrough
CT: control target
= control target key end

     0   :  { %s1007_s18 = smov 0   ;;  %s1009_s19 = smov 0   ;;  %s1121_s0 = inlined_call_operand.vmem [shape: bf16[2,4,32,64], index: 0, kind: input, shape index: {}]   ;;  %s1122_s1 = inlined_call_operand.vmem [shape: bf16[2,32,64], index: 1, kind: input, shape index: {}]   ;;  %s1123_s2 = inlined_call_operand.vmem [shape: bf16[64,128], index: 2, kind: input, shape index: {}]   ;;  %s1124_s3 = inlined_call_operand.vmem [shape: bf16[64,128], index: 3, kind: input, shape index: {}]   ;;  %s1125_s4 = inlined_call_operand.vmem [shape: f32[1,128], index: 4, kind: input, shape index: {}]   ;;  %s1126_s5 = inlined_call_operand.vmem [shape: f32[2,32,128], index: 5, kind: output, shape index: {}]  }
   0x1   :  { %s1011_s20 = smov 0  }
   0x2 LB: > { %s27_s21 = sadd.s32 1, %s971_s19  ;;  %p808_p0 = scmp.ge.s32.totalorder %s975_s20, 1  ;;  %s975_s20 = sphi %s1011_s20, %s15_s20   ;;  %s971_s19 = sphi %s1009_s19, %s1128_s19   ;;  %s967_s18 = sphi %s1007_s18, %s1127_s18  }
   0x3   : > { %p29_p1 = scmp.ge.s32.totalorder %s27_s21, 2  ;;  %p225_p2 = scmp.lt.s32.totalorder %s975_s20, 3 }
   0x5   : > { %s1130_s21 = smov (%p29_p1, %s27_s21), 0  ;;  %p226_p3 = pnand %p808_p0, %p225_p2 }
   0x6   : > { %v935_v0 = vld [vmem:[%s1124_s3] sm:$0xff] (!%p226_p3)   ;;  %p271_p4 = scmp.lt.s32.totalorder (!%p226_p3), %s967_s18, 1  ;;  %v937_v2 = vld [vmem:[%s1124_s3 + $0x8] sm:$0xff] (!%p226_p3)   ;;  %v939_v4 = vld [vmem:[%s1124_s3 + $0x10] sm:$0xff] (!%p226_p3)   ;;  %vm354_vm0 = vcmask (!%p226_p3), 523264  }
   0x7   : > { %229 = sbr.rel (%p226_p3) target bundleno = 270 (0x10e), region = 40  ;;  %v936_v1 = vld [vmem:[%s1123_s2] sm:$0xff] (!%p226_p3)   ;;  %867 = vmatprep.subr.bf16.mxu0 (!%p226_p3), %v935_v0  ;;  %v938_v3 = vld [vmem:[%s1123_s2 + $0x8] sm:$0xff] (!%p226_p3)   ;;  %v940_v5 = vld [vmem:[%s1123_s2 + $0x10] sm:$0xff] (!%p226_p3)  }
   0x8   : > { %903 = vmatprep.subr.bf16.mxu1 (!%p226_p3), %v936_v1  ;;  %868 = vmatpush3.bf16.msra.mxu0 (!%p226_p3), %v935_v0  ;;  %v941_v6 = vld [vmem:[%s1124_s3 + $0x18] sm:$0xff] (!%p226_p3)   ;;  %v815_v18 = vld [vmem:[%s1125_s4] ss:$0 sm:$0xff] (!%p226_p3) }
   0x9   : > { %907 = vmatpush3.bf16.msra.mxu1 (!%p226_p3), %v936_v1  ;;  %869 = vmatprep.subr.bf16.mxu0 (!%p226_p3), %v937_v2  ;;  %v942_v7 = vld [vmem:[%s1123_s2 + $0x18] sm:$0xff] (!%p226_p3)  }
   0xa   : > { %904 = vmatprep.subr.bf16.mxu1 (!%p226_p3), %v938_v3 }
   0xc   : > { %870 = vmatpush3.bf16.msra.mxu0 (!%p226_p3), %v937_v2 }
   0xd   : > { %908 = vmatpush3.bf16.msra.mxu1 (!%p226_p3), %v938_v3  ;;  %871 = vmatprep.subr.bf16.mxu0 (!%p226_p3), %v939_v4 }
   0xe   : > { %s1132_s18 = smov (!%p271_p4, %s967_s18), 1  ;;  %905 = vmatprep.subr.bf16.mxu1 %v940_v5 }
   0xf   : > { %s846_s7 = sshll.u32 %s1132_s18, 6  ;;  %s847_s10 = sshll.u32 %s1132_s18, 4 }
  0x10   : > { %s1053_s15 = scalar_lea.vmem %s1121_s0, %s846_s7  ;;  %s288_s22 = scalar_lea.vmem %s1122_s1, %s847_s10  ;;  %872 = vmatpush3.bf16.msra.mxu0 %v939_v4 }
  0x11   : > { %v943_v8 = vld [vmem:[%s288_s22] sm:$0xff]   ;;  %v944_v9 = vld [vmem:[%s1053_s15 + $0x10] sm:$0xff]   ;;  %909 = vmatpush3.bf16.msra.mxu1 %v940_v5  ;;  %873 = vmatprep.subr.bf16.mxu0 %v941_v6  ;;  %v945_v10 = vld [vmem:[%s288_s22 + $0x8] sm:$0xff]   ;;  %s848_s27 = sshll.u32 %s1132_s18, 5 }
  0x12   : > { %875 = vmatprep.mubr.msk.bf16.mxu0 %vm354_vm0, %v943_v8  ;;  %891 = vmatprep.mubr.msk.bf16.mxu1 %vm354_vm0, %v944_v9  ;;  %v946_v11 = vld [vmem:[%s1053_s15 + $0x18] sm:$0xff]   ;;  %v947_v12 = vld [vmem:[%s1053_s15 + $0x20] sm:$0xff]   ;;  %v948_v14 = vld [vmem:[%s1053_s15 + $0x28] sm:$0xff]   ;;  %s298_s30 = scalar_lea.vmem %s1126_s5, %s848_s27 }
  0x13   : > { %906 = vmatprep.subr.bf16.mxu1 %v942_v7  ;;  %v949_v13 = vld [vmem:[%s1053_s15] sm:$0xff]   ;;  %v950_v15 = vld [vmem:[%s1053_s15 + $0x30] sm:$0xff]   ;;  %v951_v16 = vld [vmem:[%s1053_s15 + $0x8] sm:$0xff]  }
  0x14   : > { %874 = vmatpush3.bf16.msra.mxu0 %v941_v6  ;;  %v952_v17 = vld [vmem:[%s1053_s15 + $0x38] sm:$0xff]  }
  0x15   : > { %910 = vmatpush3.bf16.msra.mxu1 %v942_v7  ;;  %879 = vmatprep.subr.bf16.mxu0 %v936_v1 }
  0x17   : > { %876 = vmatmul.mubr.msk.bf16.vlgmr.msra.gmra.mrb[0].mxu0 %vm354_vm0, %v945_v10 }
  0x18   : > { %892 = vmatmul.mubr.msk.bf16.vlgmr.msra.gmra.mrb[0].mxu1 %vm354_vm0, %v946_v11  ;;  %880 = vmatpush3.bf16.msra.mxu0 %v936_v1 }
  0x19   : > { %881 = vmatprep.subr.bf16.mxu0 %v938_v3  ;;  %895 = vmatprep.mubr.msk.bf16.mxu1 %vm354_vm0, %v947_v12 }
  0x1a   : > { %887 = vmatprep.mubr.msk.bf16.mxu0 %vm354_vm0, %v949_v13 }
  0x1c   : > { %882 = vmatpush3.bf16.msra.mxu0 %v938_v3 }
  0x1d   : > { %883 = vmatprep.subr.bf16.mxu0 %v940_v5 }
  0x20   : > { %896 = vmatmul.mubr.msk.bf16.gmra.mrb[4].mxu1 %vm354_vm0, %v948_v14  ;;  %884 = vmatpush3.bf16.msra.mxu0 %v940_v5 }
  0x21   : > { %885 = vmatprep.subr.bf16.mxu0 %v942_v7  ;;  %899 = vmatprep.mubr.msk.bf16.mxu1 %vm354_vm0, %v950_v15 }
  0x24   : > { %886 = vmatpush3.bf16.msra.mxu0 %v942_v7 }
  0x27   : > { %888 = vmatmul.mubr.msk.bf16.vlgmr.msra.gmra.mrb[4].mxu0 %vm354_vm0, %v951_v16 }
  0x28   : > { %900 = vmatmul.mubr.msk.bf16.gmra.mrb[8].mxu1 %vm354_vm0, %v952_v17 }
  0xea   : > { %v877_v19 = vpop.f32.mrb[0].mxu0 }
  0xeb   : > { %v404_v20 = vadd.f32 %v877_v19, %v815_v18  ;;  %v395_v21 = vpop.f32.mrb[1].mxu0  ;;  %v893_v22 = vpop.f32.mrb[0].mxu1 }
  0xec   : > { %v396_v23 = vadd.f32 %v815_v18, %v395_v21  ;;  %v878_v24 = vpop.f32.mrb[2].mxu0  ;;  %v572_v25 = vpop.f32.mrb[1].mxu1 }
  0xed   : > { %v625_v26 = vadd.f32 %v893_v22, %v404_v20  ;;  %v1082_v27 = vadd.f32 %v878_v24, %v815_v18  ;;  %v398_v28 = vpop.f32.mrb[3].mxu0  ;;  %v894_v29 = vpop.f32.mrb[2].mxu1 }
  0xee   : > { %v623_v30 = vadd.f32 %v572_v25, %v396_v23  ;;  %v1084_v31 = vadd.f32 %v815_v18, %v398_v28  ;;  %v575_v32 = vpop.f32.mrb[3].mxu1 }
  0xef   : > { %v626_v33 = vadd.f32 %v894_v29, %v1082_v27  ;;  %v657_v38 = vmul.f32 0.2, %v625_v26  ;;  %vm641_vm1 = vcmp.gt.f32.partialorder %v625_v26, 0.0 }
  0xf0   : > { %v1088_v34 = vadd.f32 %v575_v32, %v1084_v31  ;;  %v655_v41 = vmul.f32 0.2, %v623_v30  ;;  %vm639_vm2 = vcmp.gt.f32.partialorder %v623_v30, 0.0 }
  0xf1   : > { %v658_v42 = vmul.f32 0.2, %v626_v33  ;;  %vm642_vm3 = vcmp.gt.f32.partialorder %v626_v33, 0.0  ;;  %v673_v47 = vsel %vm641_vm1, %v625_v26, %v657_v38 }
  0xf2   : > { %v671_v48 = vsel %vm639_vm2, %v623_v30, %v655_v41  ;;  %v656_v50 = vmul.f32 0.2, %v1088_v34  ;;  %vm640_vm5 = vcmp.gt.f32.partialorder %v1088_v34, 0.0 }
  0xf3   : > { %v897_v35 = vpop.f32.mrb[4].mxu1  ;;  %v674_v49 = vsel %vm642_vm3, %v626_v33, %v658_v42 }
  0xf4   : > { %v629_v36 = vadd.f32 %v897_v35, %v404_v20  ;;  %v588_v37 = vpop.f32.mrb[5].mxu1  ;;  %v672_v29 = vsel %vm640_vm5, %v1088_v34, %v656_v50 }
  0xf5   : > { %v627_v39 = vadd.f32 %v588_v37, %v396_v23  ;;  %v898_v40 = vpop.f32.mrb[6].mxu1 }
  0xf6   : > { %v630_v43 = vadd.f32 %v898_v40, %v1082_v27  ;;  %v591_v44 = vpop.f32.mrb[7].mxu1  ;;  %v661_v45 = vmul.f32 0.2, %v629_v36  ;;  %vm645_vm4 = vcmp.gt.f32.partialorder %v629_v36, 0.0 }
  0xf7   : > { %v1092_v46 = vadd.f32 %v591_v44, %v1084_v31  ;;  %v659_v51 = vmul.f32 0.2, %v627_v39  ;;  %vm643_vm6 = vcmp.gt.f32.partialorder %v627_v39, 0.0 }
  0xf8   : > { %v677_v53 = vsel %vm645_vm4, %v629_v36, %v661_v45  ;;  %v662_v54 = vmul.f32 0.2, %v630_v43  ;;  %vm646_vm7 = vcmp.gt.f32.partialorder %v630_v43, 0.0 }
  0xf9   : > { %v660_v58 = vmul.f32 0.2, %v1092_v46  ;;  %v675_v4 = vsel %vm643_vm6, %v627_v39, %v659_v51  ;;  %vm644_vm15 = vcmp.gt.f32.partialorder %v1092_v46, 0.0 }
  0xfa   : > { %v889_v52 = vpop.f32.mrb[4].mxu0  ;;  %v678_v7 = vsel %vm646_vm7, %v630_v43, %v662_v54 }
  0xfb   : > { %v621_v55 = vadd.f32 %v889_v52, %v404_v20  ;;  %v901_v56 = vpop.f32.mrb[8].mxu1  ;;  %v556_v57 = vpop.f32.mrb[5].mxu0  ;;  %v676_v36 = vsel %vm644_vm15, %v1092_v46, %v660_v58 }
  0xfc   : > { %v633_v59 = vadd.f32 %v901_v56, %v404_v20  ;;  %v619_v60 = vadd.f32 %v556_v57, %v396_v23  ;;  %v604_v61 = vpop.f32.mrb[9].mxu1  ;;  %v890_v62 = vpop.f32.mrb[6].mxu0 }
  0xfd   : > { %vm637_vm8 = vcmp.gt.f32.partialorder %v621_v55, 0.0  ;;  %v653_v63 = vmul.f32 0.2, %v621_v55  ;;  %v631_v0 = vadd.f32 %v604_v61, %v396_v23  ;;  %v622_v1 = vadd.f32 %v890_v62, %v1082_v27  ;;  %v902_v2 = vpop.f32.mrb[10].mxu1  ;;  %v559_v3 = vpop.f32.mrb[7].mxu0 }
  0xfe   : > { %v665_v5 = vmul.f32 0.2, %v633_v59  ;;  %vm635_vm9 = vcmp.gt.f32.partialorder %v619_v60, 0.0  ;;  %v651_v6 = vmul.f32 0.2, %v619_v60  ;;  %vm649_vm10 = vcmp.gt.f32.partialorder %v633_v59, 0.0 }
  0xff   : > { %v669_v8 = vsel %vm637_vm8, %v621_v55, %v653_v63  ;;  %vm638_vm11 = vcmp.gt.f32.partialorder %v622_v1, 0.0  ;;  %v607_v9 = vpop.f32.mrb[11].mxu1  ;;  %v663_v12 = vmul.f32 0.2, %v631_v0  ;;  %v654_v13 = vmul.f32 0.2, %v622_v1 }
 0x100   : > { %v689_v10 = vmax.f32 %v669_v8, %v673_v47  ;;  %v667_v11 = vsel %vm635_vm9, %v619_v60, %v651_v6  ;;  %vm647_vm12 = vcmp.gt.f32.partialorder %v631_v0, 0.0  ;;  %v634_v15 = vadd.f32 %v902_v2, %v1082_v27 }
 0x101   : > { %v683_v14 = vmax.f32 %v667_v11, %v671_v48  ;;  %v620_v16 = vadd.f32 %v559_v3, %v1084_v31  ;;  %v681_v17 = vsel %vm649_vm10, %v633_v59, %v665_v5  ;;  %v670_v19 = vsel %vm638_vm11, %v622_v1, %v654_v13 }
 0x102   : > { %v690_v18 = vmax.f32 %v689_v10, %v677_v53  ;;  %v632_v20 = vadd.f32 %v607_v9, %v1084_v31  ;;  %v692_v22 = vmax.f32 %v670_v19, %v674_v49  ;;  %vm650_vm13 = vcmp.gt.f32.partialorder %v634_v15, 0.0 }
 0x103   : > { %v684_v21 = vmax.f32 %v683_v14, %v675_v4  ;;  %v666_v23 = vmul.f32 0.2, %v634_v15  ;;  %v679_v25 = vsel %vm647_vm12, %v631_v0, %v663_v12  ;;  %vm636_vm14 = vcmp.gt.f32.partialorder %v620_v16, 0.0 }
 0x104   : > { %v691_v24 = vmax.f32 %v690_v18, %v681_v17  ;;  %v652_v26 = vmul.f32 0.2, %v620_v16  ;;  %v693_v28 = vmax.f32 %v692_v22, %v678_v7  ;;  %v664_v32 = vmul.f32 0.2, %v632_v20 }
 0x105   : > { %v685_v27 = vmax.f32 %v684_v21, %v679_v25  ;;  %v682_v30 = vsel %vm650_vm13, %v634_v15, %v666_v23  ;;  %vm648_vm0 = vcmp.gt.f32.partialorder %v632_v20, 0.0 }
 0x106   : > { %697 = vst [vmem:[%s298_s30 + $0x10] sm:$0xff] %v691_v24  ;;  %v668_v31 = vsel %vm636_vm14, %v620_v16, %v652_v26  ;;  %v694_v33 = vmax.f32 %v693_v28, %v682_v30  ;;  %v680_v38 = vsel %vm648_vm0, %v632_v20, %v664_v32 }
 0x107   : > { %695 = vst [vmem:[%s298_s30] sm:$0xff] %v685_v27  ;;  %v686_v35 = vmax.f32 %v668_v31, %v672_v29 }
 0x108   : > { %698 = vst [vmem:[%s298_s30 + $0x18] sm:$0xff] %v694_v33 }
 0x109   : > { %v687_v37 = vmax.f32 %v686_v35, %v676_v36 }
 0x10b   : > { %v688_v39 = vmax.f32 %v687_v37, %v680_v38 }
 0x10d   : > { %696 = vst [vmem:[%s298_s30 + $0x8] sm:$0xff] %v688_v39 }
 0x10e PF: > { %s15_s20 = sadd.s32 1, %s975_s20   ;;  %s1127_s18 = smov %s971_s19 }
 0x10f   : > { %p12_p5 = scmp.ge.s32.totalorder %s15_s20, 4   ;;  %s1128_s19 = smov %s1130_s21 }
 0x111   :  { %14 = sbr.rel (!%p12_p5) target bundleno = 2 (0x2), region = 73 }

// kernel: dgcnn_forward.16
= control target key start
LH: loop header
LB: loop body
LE: loop exit
PB: predicated region body
PF: predicated region fallthrough
CT: control target
= control target key end

     0   :  { %s680_s15 = smov 0   ;;  %s682_s16 = smov 0   ;;  %s731_s0 = inlined_call_operand.vmem [shape: bf16[2,32,128], index: 0, kind: input, shape index: {}, may-alias: {0,1}]   ;;  %s732_s1 = inlined_call_operand.vmem [shape: bf16[2,32,128], index: 1, kind: input, shape index: {}, may-alias: {0,1}]   ;;  %s733_s2 = inlined_call_operand.vmem [shape: f32[2,32,1], index: 2, kind: input, shape index: {}]   ;;  %s734_s3 = inlined_call_operand.vmem [shape: f32[2,1,32], index: 3, kind: input, shape index: {}]   ;;  %s735_s4 = inlined_call_operand.vmem [shape: f32[2,32,32], index: 4, kind: output, shape index: {}]  }
   0x1   :  { %s684_s17 = smov 0  }
   0x2 LB: > { %s26_s18 = sadd.s32 1, %s648_s16  ;;  %p567_p0 = scmp.ge.s32.totalorder %s652_s17, 1  ;;  %s652_s17 = sphi %s684_s17, %s14_s17   ;;  %s648_s16 = sphi %s682_s16, %s737_s16   ;;  %s644_s15 = sphi %s680_s15, %s736_s15  }
   0x3   : > { %p28_p1 = scmp.ge.s32.totalorder %s26_s18, 2  ;;  %p218_p2 = scmp.lt.s32.totalorder %s652_s17, 3 }
   0x5   : > { %s739_s18 = smov (%p28_p1, %s26_s18), 0  ;;  %p219_p3 = pnand %p567_p0, %p218_p2 }
   0x6   : > { %p270_p4 = scmp.lt.s32.totalorder (!%p219_p3), %s644_s15, 1  ;;  %v654_v0 = vmov (!%p219_p3), 0   ;;  %vm432_vm0 = vcmask (!%p219_p3), 261120  }
   0x7   : > { %222 = sbr.rel (%p219_p3) target bundleno = 256 (0x100), region = 36  ;;  %625 = vset.pattern.permute.xlu1 (!%p219_p3), %v654_v0  ;;  %624 = vset.pattern.permute.xlu0 (!%p219_p3), %v654_v0 }
   0xe   : > { %s741_s15 = smov (!%p270_p4, %s644_s15), 1 }
   0xf   : > { %s583_s19 = sshll.u32 %s741_s15, 4  ;;  %s585_s20 = sshll.u32 %s741_s15, 5 }
  0x10   : > { %s283_s23 = scalar_lea.vmem %s732_s1, %s583_s19  ;;  %s277_s26 = scalar_lea.vmem %s731_s0, %s583_s19 }
  0x11   : > { %v626_v1 = vld [vmem:[%s283_s23] sm:$0xff]   ;;  %v627_v2 = vld [vmem:[%s283_s23 + $0x8] sm:$0xff]   ;;  %s292_s29 = scalar_lea.vmem %s733_s2, %s585_s20  ;;  %s296_s6 = scalar_lea.vmem %s734_s3, %s741_s15 }
  0x12   : > { %591 = vmatprep.subr.bf16.mxu0 %v626_v1  ;;  %v628_v3 = vld [vmem:[%s277_s26] sm:$0xff]   ;;  %v395_v4 = vld [vmem:[%s292_s29 + $0x10] sm:$0xff]  ;;  %v396_v6 = vld [vmem:[%s292_s29 + $0x18] sm:$0xff]  ;;  %s305_s9 = scalar_lea.vmem %s735_s4, %s585_s20 }
  0x13   : > { %592 = vmatpush3.bf16.xpose.msra.mxu0 %v626_v1  ;;  %595 = vmatprep.mubr.bf16.mxu0 %v628_v3  ;;  %v393_v5 = vld [vmem:[%s292_s29] sm:$0xff]  ;;  %v394_v7 = vld [vmem:[%s292_s29 + $0x8] sm:$0xff] }
  0x14   : > { %593 = vmatprep.subr.bf16.mxu0 %v627_v2  ;;  %409 = vperm.xlu1 %625, %v395_v4   ;;  %v629_v8 = vld [vmem:[%s277_s26 + $0x8] sm:$0xff]   ;;  %v580_v14 = vld [vmem:[%s296_s6] ss:$0 sm:$0xff] }
  0x15   : > { %399 = vperm.xlu0 %624, %v393_v5  }
  0x18   : > { %414 = vperm.xlu1 %625, %v396_v6  }
  0x19   : > { %404 = vperm.xlu0 %624, %v394_v7  }
  0x1b   : > { %594 = vmatpush3.bf16.xpose.msra.mxu0 %v627_v2 }
  0x22   : > { %596 = vmatmul.mubr.bf16.vlgmr.msra.gmra.mrb[0].mxu0 %v629_v8 }
  0x93   : > { %v410_v9 = vpop.permute.xlu1 %409 }
  0x94   : > { %v400_v10 = vpop.permute.xlu0 %399 }
  0x97   : > { %v415_v20 = vpop.permute.xlu1 %414 }
  0x98   : > { %v405_v24 = vpop.permute.xlu0 %404 }
  0xf5   : > { %v597_v11 = vpop.f32.mrb[0].mxu0 }
  0xf6   : > { %v391_v12 = vmul.f32 2.0, %v597_v11  ;;  %v374_v13 = vpop.f32.mrb[1].mxu0 }
  0xf7   : > { %v389_v15 = vmul.f32 2.0, %v374_v13  ;;  %v598_v16 = vpop.f32.mrb[2].mxu0 }
  0xf8   : > { %v419_v17 = vsub.f32 %v391_v12, %v410_v9  ;;  %v392_v18 = vmul.f32 2.0, %v598_v16  ;;  %v377_v19 = vpop.f32.mrb[3].mxu0 }
  0xf9   : > { %v417_v21 = vsub.f32 %v389_v15, %v400_v10  ;;  %v390_v22 = vmul.f32 2.0, %v377_v19 }
  0xfa   : > { %v430_v23 = vsub.f32 %v419_v17, %v580_v14  ;;  %v420_v25 = vsub.f32 %v392_v18, %v415_v20 }
  0xfb   : > { %v428_v26 = vsub.f32 %v417_v21, %v580_v14  ;;  %v418_v27 = vsub.f32 %v390_v22, %v405_v24 }
  0xfc   : > { %435 = vst.msk [vmem:[%s305_s9 + $0x10] sm:$0xff] %vm432_vm0, %v430_v23  ;;  %v431_v28 = vsub.f32 %v420_v25, %v580_v14 }
  0xfd   : > { %433 = vst.msk [vmem:[%s305_s9] sm:$0xff] %vm432_vm0, %v428_v26  ;;  %v429_v29 = vsub.f32 %v418_v27, %v580_v14 }
  0xfe   : > { %436 = vst.msk [vmem:[%s305_s9 + $0x18] sm:$0xff] %vm432_vm0, %v431_v28 }
  0xff   : > { %434 = vst.msk [vmem:[%s305_s9 + $0x8] sm:$0xff] %vm432_vm0, %v429_v29 }
 0x100 PF: > { %s14_s17 = sadd.s32 1, %s652_s17   ;;  %s736_s15 = smov %s648_s16 }
 0x101   : > { %p11_p5 = scmp.ge.s32.totalorder %s14_s17, 4   ;;  %s737_s16 = smov %s739_s18 }
 0x103   :  { %13 = sbr.rel (!%p11_p5) target bundleno = 2 (0x2), region = 75 }

// kernel: dgcnn_forward.17
= control target key start
LH: loop header
LB: loop body
LE: loop exit
PB: predicated region body
PF: predicated region fallthrough
CT: control target
= control target key end

     0   :  { %s1236_s18 = smov 0   ;;  %s1238_s19 = smov 0   ;;  %s1553_s0 = inlined_call_operand.vmem [shape: bf16[2,4,32,128], index: 0, kind: input, shape index: {}]   ;;  %s1554_s1 = inlined_call_operand.vmem [shape: bf16[2,32,128], index: 1, kind: input, shape index: {}]   ;;  %s1555_s2 = inlined_call_operand.vmem [shape: bf16[128,256], index: 2, kind: input, shape index: {}]   ;;  %s1556_s3 = inlined_call_operand.vmem [shape: bf16[128,256], index: 3, kind: input, shape index: {}]   ;;  %s1557_s4 = inlined_call_operand.vmem [shape: f32[1,256], index: 4, kind: input, shape index: {}]   ;;  %s1558_s5 = inlined_call_operand.vmem [shape: f32[2,32,256], index: 5, kind: output, shape index: {}]  }
   0x1   :  { %s1240_s20 = smov 0  }
   0x2 LB: > { %s27_s21 = sadd.s32 1, %s1199_s19  ;;  %p1028_p0 = scmp.ge.s32.totalorder %s1203_s20, 1  ;;  %s1203_s20 = sphi %s1240_s20, %s15_s20   ;;  %s1199_s19 = sphi %s1238_s19, %s1560_s19   ;;  %s1195_s18 = sphi %s1236_s18, %s1559_s18  }
   0x3   : > { %p29_p1 = scmp.ge.s32.totalorder %s27_s21, 2  ;;  %p225_p2 = scmp.lt.s32.totalorder %s1203_s20, 3 }
   0x5   : > { %s1562_s21 = smov (%p29_p1, %s27_s21), 0  ;;  %p226_p3 = pnand %p1028_p0, %p225_p2 }
   0x6   : > { %v1123_v0 = vld [vmem:[%s1556_s3 + $0x4] ss:$8 sps:$4 sm:$0xff] (!%p226_p3)   ;;  %v1205_v2 = vmov (!%p226_p3), 0   ;;  %v1127_v3 = vld [vmem:[%s1556_s3] ss:$8 sps:$4 sm:$0xff] (!%p226_p3)   ;;  %p272_p4 = scmp.lt.s32.totalorder (!%p226_p3), %s1195_s18, 1  ;;  %v325_v43 = vlaneseq (!%p226_p3) }
   0x7   : > { %229 = sbr.rel (%p226_p3) target bundleno = 313 (0x139), region = 40  ;;  %v1262_v1 = vld [vmem:[%s1555_s2 + $0x4] ss:$8 sps:$4 sm:$0xff] (!%p226_p3)   ;;  %459 = vmatprep.mubr.bf16.mxu0 (!%p226_p3), %v1205_v2  ;;  %692 = vmatprep.mubr.bf16.mxu1 (!%p226_p3), %v1205_v2  ;;  %v1272_v4 = vld [vmem:[%s1555_s2] ss:$8 sps:$4 sm:$0xff] (!%p226_p3)  }
   0x8   : > { %427 = vmatprep.subr.bf16.mxu0 (!%p226_p3), %v1123_v0  ;;  %1082 = vmatprep.subr.bf16.mxu1 (!%p226_p3), %v1262_v1  ;;  %v1129_v5 = vld [vmem:[%s1556_s3 + $0x14] ss:$8 sps:$4 sm:$0xff] (!%p226_p3)   ;;  %v1133_v7 = vld [vmem:[%s1556_s3 + $0x10] ss:$8 sps:$4 sm:$0xff] (!%p226_p3)   ;;  %v1135_v9 = vld [vmem:[%s1556_s3 + $0x24] ss:$8 sps:$4 sm:$0xff] (!%p226_p3)  }
   0x9   : > { %428 = vmatpush1.bf16.msra.mxu0 (!%p226_p3), %v1127_v3  ;;  %1090 = vmatpush1.bf16.msra.mxu1 (!%p226_p3), %v1272_v4  ;;  %v1282_v6 = vld [vmem:[%s1555_s2 + $0x14] ss:$8 sps:$4 sm:$0xff] (!%p226_p3)   ;;  %v1290_v8 = vld [vmem:[%s1555_s2 + $0x10] ss:$8 sps:$4 sm:$0xff] (!%p226_p3)   ;;  %v1299_v10 = vld [vmem:[%s1555_s2 + $0x24] ss:$8 sps:$4 sm:$0xff] (!%p226_p3)  }
   0xa   : > { %429 = vmatprep.subr.bf16.mxu0 (!%p226_p3), %v1129_v5  ;;  %1083 = vmatprep.subr.bf16.mxu1 (!%p226_p3), %v1282_v6  ;;  %v1139_v11 = vld [vmem:[%s1556_s3 + $0x20] ss:$8 sps:$4 sm:$0xff] (!%p226_p3)   ;;  %v1141_v13 = vld [vmem:[%s1556_s3 + $0x34] ss:$8 sps:$4 sm:$0xff] (!%p226_p3)   ;;  %v1145_v15 = vld [vmem:[%s1556_s3 + $0x30] ss:$8 sps:$4 sm:$0xff] (!%p226_p3)  }
   0xb   : > { %v1307_v12 = vld [vmem:[%s1555_s2 + $0x20] ss:$8 sps:$4 sm:$0xff] (!%p226_p3)   ;;  %v1317_v14 = vld [vmem:[%s1555_s2 + $0x34] ss:$8 sps:$4 sm:$0xff] (!%p226_p3)   ;;  %v1146_v16 = vld [vmem:[%s1555_s2 + $0x30] ss:$8 sps:$4 sm:$0xff] (!%p226_p3)  }
   0xc   : > { %v1147_v17 = vld [vmem:[%s1556_s3 + $0x44] ss:$8 sps:$4 sm:$0xff] (!%p226_p3)   ;;  %v1151_v19 = vld [vmem:[%s1556_s3 + $0x40] ss:$8 sps:$4 sm:$0xff] (!%p226_p3)   ;;  %v1153_v21 = vld [vmem:[%s1556_s3 + $0x54] ss:$8 sps:$4 sm:$0xff] (!%p226_p3)  }
   0xd   : > { %430 = vmatpush1.bf16.msra.mxu0 (!%p226_p3), %v1133_v7  ;;  %1091 = vmatpush1.bf16.msra.mxu1 (!%p226_p3), %v1290_v8  ;;  %v1149_v18 = vld [vmem:[%s1555_s2 + $0x44] ss:$8 sps:$4 sm:$0xff] (!%p226_p3)   ;;  %v1152_v20 = vld [vmem:[%s1555_s2 + $0x40] ss:$8 sps:$4 sm:$0xff] (!%p226_p3)   ;;  %v1155_v22 = vld [vmem:[%s1555_s2 + $0x54] ss:$8 sps:$4 sm:$0xff] (!%p226_p3)  }
   0xe   : > { %431 = vmatprep.subr.bf16.mxu0 %v1135_v9  ;;  %1084 = vmatprep.subr.bf16.mxu1 %v1299_v10  ;;  %s1564_s18 = smov (!%p272_p4, %s1195_s18), 1  ;;  %v1157_v23 = vld [vmem:[%s1556_s3 + $0x50] ss:$8 sps:$4 sm:$0xff]   ;;  %v1159_v25 = vld [vmem:[%s1556_s3 + $0x64] ss:$8 sps:$4 sm:$0xff]   ;;  %v326_v44 = vshrl.u32 %v325_v43, 7 }
   0xf   : > { %s1080_s24 = sshll.u32 %s1564_s18, 4  ;;  %s1079_s25 = sshll.u32 %s1564_s18, 6  ;;  %v1158_v24 = vld [vmem:[%s1555_s2 + $0x50] ss:$8 sps:$4 sm:$0xff]   ;;  %v1161_v26 = vld [vmem:[%s1555_s2 + $0x64] ss:$8 sps:$4 sm:$0xff]  }
  0x10   : > { %s289_s9 = scalar_lea.vmem %s1554_s1, %s1080_s24  ;;  %s1371_s14 = scalar_lea.vmem %s1553_s0, %s1079_s25  ;;  %v1163_v27 = vld [vmem:[%s1556_s3 + $0x60] ss:$8 sps:$4 sm:$0xff]   ;;  %v1165_v29 = vld [vmem:[%s1556_s3 + $0x74] ss:$8 sps:$4 sm:$0xff]   ;;  %v1169_v31 = vld [vmem:[%s1556_s3 + $0x70] ss:$8 sps:$4 sm:$0xff]  }
  0x11   : > { %432 = vmatpush1.bf16.msra.mxu0 %v1139_v11  ;;  %1092 = vmatpush1.bf16.msra.mxu1 %v1307_v12  ;;  %v1164_v28 = vld [vmem:[%s1555_s2 + $0x60] ss:$8 sps:$4 sm:$0xff]   ;;  %v1167_v30 = vld [vmem:[%s1555_s2 + $0x74] ss:$8 sps:$4 sm:$0xff]   ;;  %v1170_v32 = vld [vmem:[%s1555_s2 + $0x70] ss:$8 sps:$4 sm:$0xff]   ;;  %s1504_s11 = scalar_lea.vmem %s1558_s5, %s1079_s25 }
  0x12   : > { %433 = vmatprep.subr.bf16.mxu0 %v1141_v13  ;;  %1085 = vmatprep.subr.bf16.mxu1 %v1317_v14  ;;  %v1171_v33 = vld [vmem:[%s289_s9] sm:$0xff]   ;;  %v1172_v34 = vld [vmem:[%s1371_s14 + $0x10] sm:$0xff]   ;;  %v1173_v35 = vld [vmem:[%s289_s9 + $0x8] sm:$0xff]   ;;  %v327_v45 = vsub.s32 0, %v326_v44  ;;  %v331_v47 = vsub.s32 1, %v326_v44 }
  0x13   : > { %v1174_v36 = vld [vmem:[%s1371_s14 + $0x18] sm:$0xff]   ;;  %v1175_v37 = vld [vmem:[%s1371_s14 + $0x20] sm:$0xff]   ;;  %v1176_v38 = vld [vmem:[%s1371_s14 + $0x28] sm:$0xff]  }
  0x14   : > { %v1177_v39 = vld [vmem:[%s1371_s14] sm:$0xff]   ;;  %v1178_v40 = vld [vmem:[%s1371_s14 + $0x30] sm:$0xff]   ;;  %v1179_v41 = vld [vmem:[%s1371_s14 + $0x8] sm:$0xff]  }
  0x15   : > { %434 = vmatpush1.bf16.msra.mxu0 %v1145_v15  ;;  %1093 = vmatpush1.bf16.msra.mxu1 %v1146_v16  ;;  %v1180_v42 = vld [vmem:[%s1371_s14 + $0x38] sm:$0xff]   ;;  %v323_v46 = vld [vmem:[%s1557_s4] sm:$0x3] }
  0x16   : > { %435 = vmatprep.subr.bf16.mxu0 %v1147_v17  ;;  %1086 = vmatprep.subr.bf16.mxu1 %v1149_v18  ;;  %v328_v48 = vrot.slane %v323_v46, %v327_v45  ;;  %v332_v49 = vrot.slane %v323_v46, %v331_v47 }
  0x19   : > { %436 = vmatpush1.bf16.msra.mxu0 %v1151_v19  ;;  %1094 = vmatpush1.bf16.msra.mxu1 %v1152_v20 }
  0x1a   : > { %437 = vmatprep.subr.bf16.mxu0 %v1153_v21  ;;  %1087 = vmatprep.subr.bf16.mxu1 %v1155_v22 }
  0x1d   : > { %438 = vmatpush1.bf16.msra.mxu0 %v1157_v23  ;;  %1095 = vmatpush1.bf16.msra.mxu1 %v1158_v24 }
  0x1e   : > { %439 = vmatprep.subr.bf16.mxu0 %v1159_v25  ;;  %1088 = vmatprep.subr.bf16.mxu1 %v1161_v26 }
  0x21   : > { %440 = vmatpush1.bf16.msra.mxu0 %v1163_v27  ;;  %1096 = vmatpush1.bf16.msra.mxu1 %v1164_v28 }
  0x22   : > { %441 = vmatprep.subr.bf16.mxu0 %v1165_v29  ;;  %1089 = vmatprep.subr.bf16.mxu1 %v1167_v30 }
  0x25   : > { %442 = vmatpush1.bf16.msra.mxu0 %v1169_v31  ;;  %1097 = vmatpush1.bf16.msra.mxu1 %v1170_v32 }
  0x26   : > { %640 = vmatprep.subr.bf16.mxu0 %v1262_v1 }
  0x28   : > { %460 = vmatmul.mubr.bf16.vlgmr.msra.gmra.mrb[0].mxu0 %v1171_v33  ;;  %693 = vmatmul.mubr.bf16.vlgmr.msra.gmra.mrb[0].mxu1 %v1172_v34 }
  0x29   : > { %641 = vmatpush1.bf16.msra.mxu0 %v1272_v4  ;;  %469 = vmatprep.mubr.bf16.mxu0 %v1205_v2 }
  0x2a   : > { %642 = vmatprep.subr.bf16.mxu0 %v1282_v6  ;;  %702 = vmatprep.mubr.bf16.mxu1 %v1205_v2 }
  0x2d   : > { %643 = vmatpush1.bf16.msra.mxu0 %v1290_v8 }
  0x2e   : > { %644 = vmatprep.subr.bf16.mxu0 %v1299_v10 }
  0x30   : > { %470 = vmatmul.mubr.bf16.gmra.mrb[4].mxu0 %v1173_v35  ;;  %703 = vmatmul.mubr.bf16.gmra.mrb[4].mxu1 %v1174_v36 }
  0x31   : > { %645 = vmatpush1.bf16.msra.mxu0 %v1307_v12  ;;  %712 = vmatprep.mubr.bf16.mxu1 %v1205_v2 }
  0x32   : > { %646 = vmatprep.subr.bf16.mxu0 %v1317_v14  ;;  %672 = vmatprep.mubr.bf16.mxu0 %v1205_v2 }
  0x35   : > { %647 = vmatpush1.bf16.msra.mxu0 %v1146_v16 }
  0x36   : > { %648 = vmatprep.subr.bf16.mxu0 %v1149_v18 }
  0x38   : > { %713 = vmatmul.mubr.bf16.gmra.mrb[8].mxu1 %v1175_v37 }
  0x39   : > { %649 = vmatpush1.bf16.msra.mxu0 %v1152_v20  ;;  %722 = vmatprep.mubr.bf16.mxu1 %v1205_v2 }
  0x3a   : > { %650 = vmatprep.subr.bf16.mxu0 %v1155_v22 }
  0x3d   : > { %651 = vmatpush1.bf16.msra.mxu0 %v1158_v24 }
  0x3e   : > { %652 = vmatprep.subr.bf16.mxu0 %v1161_v26 }
  0x40   : > { %723 = vmatmul.mubr.bf16.gmra.mrb[12].mxu1 %v1176_v38 }
  0x41   : > { %653 = vmatpush1.bf16.msra.mxu0 %v1164_v28  ;;  %732 = vmatprep.mubr.bf16.mxu1 %v1205_v2 }
  0x42   : > { %654 = vmatprep.subr.bf16.mxu0 %v1167_v30 }
  0x45   : > { %655 = vmatpush1.bf16.msra.mxu0 %v1170_v32 }
  0x48   : > { %673 = vmatmul.mubr.bf16.vlgmr.msra.gmra.mrb[8].mxu0 %v1177_v39  ;;  %733 = vmatmul.mubr.bf16.gmra.mrb[16].mxu1 %v1178_v40 }
  0x49   : > { %682 = vmatprep.mubr.bf16.mxu0 %v1205_v2  ;;  %742 = vmatprep.mubr.bf16.mxu1 %v1205_v2 }
  0x50   : > { %683 = vmatmul.mubr.bf16.gmra.mrb[12].mxu0 %v1179_v41  ;;  %743 = vmatmul.mubr.bf16.gmra.mrb[20].mxu1 %v1180_v42 }
  0xfb   : > { %v461_v50 = vpop.f32.mrb[0].mxu0  ;;  %v694_v51 = vpop.f32.mrb[0].mxu1 }
  0xfc   : > { %v1417_v52 = vadd.f32 %v461_v50, %v328_v48  ;;  %v463_v53 = vpop.f32.mrb[1].mxu0  ;;  %v696_v54 = vpop.f32.mrb[1].mxu1 }
  0xfd   : > { %v1419_v55 = vadd.f32 %v463_v53, %v332_v49  ;;  %v465_v56 = vpop.f32.mrb[2].mxu0  ;;  %v698_v57 = vpop.f32.mrb[2].mxu1 }
  0xfe   : > { %v761_v58 = vadd.f32 %v694_v51, %v1417_v52  ;;  %v1422_v59 = vadd.f32 %v465_v56, %v328_v48  ;;  %v467_v60 = vpop.f32.mrb[3].mxu0  ;;  %v700_v61 = vpop.f32.mrb[3].mxu1 }
  0xff   : > { %v762_v62 = vadd.f32 %v696_v54, %v1419_v55  ;;  %v1425_v63 = vadd.f32 %v467_v60, %v332_v49 }
 0x100   : > { %v763_v0 = vadd.f32 %v698_v57, %v1422_v59  ;;  %v825_v23 = vmul.f32 0.2, %v761_v58  ;;  %vm793_vm0 = vcmp.gt.f32.partialorder %v761_v58, 0.0 }
 0x101   : > { %v764_v1 = vadd.f32 %v700_v61, %v1425_v63  ;;  %v826_v26 = vmul.f32 0.2, %v762_v62  ;;  %vm794_vm1 = vcmp.gt.f32.partialorder %v762_v62, 0.0 }
 0x102   : > { %v1445_v28 = vsel %vm793_vm0, %v761_v58, %v825_v23  ;;  %vm795_vm2 = vcmp.gt.f32.partialorder %v763_v0, 0.0  ;;  %v827_v30 = vmul.f32 0.2, %v763_v0 }
 0x103   : > { %v471_v2 = vpop.f32.mrb[4].mxu0  ;;  %v704_v3 = vpop.f32.mrb[4].mxu1  ;;  %v1447_v29 = vsel %vm794_vm1, %v762_v62, %v826_v26  ;;  %vm796_vm3 = vcmp.gt.f32.partialorder %v764_v1, 0.0  ;;  %v828_v32 = vmul.f32 0.2, %v764_v1 }
 0x104   : > { %v1429_v4 = vadd.f32 %v471_v2, %v328_v48  ;;  %v473_v5 = vpop.f32.mrb[5].mxu0  ;;  %v706_v6 = vpop.f32.mrb[5].mxu1 }
 0x105   : > { %v1431_v7 = vadd.f32 %v473_v5, %v332_v49  ;;  %v475_v8 = vpop.f32.mrb[6].mxu0  ;;  %v708_v9 = vpop.f32.mrb[6].mxu1 }
 0x106   : > { %v765_v10 = vadd.f32 %v704_v3, %v1429_v4  ;;  %v1434_v11 = vadd.f32 %v475_v8, %v328_v48  ;;  %v477_v12 = vpop.f32.mrb[7].mxu0  ;;  %v710_v13 = vpop.f32.mrb[7].mxu1  ;;  %v1460_v48 = vsel %vm795_vm2, %v763_v0, %v827_v30 }
 0x107   : > { %v766_v14 = vadd.f32 %v706_v6, %v1431_v7  ;;  %v1437_v15 = vadd.f32 %v477_v12, %v332_v49  ;;  %v1463_v49 = vsel %vm796_vm3, %v764_v1, %v828_v32 }
 0x108   : > { %v767_v16 = vadd.f32 %v708_v9, %v1434_v11  ;;  %vm797_vm4 = vcmp.gt.f32.partialorder %v765_v10, 0.0  ;;  %v829_v33 = vmul.f32 0.2, %v765_v10 }
 0x109   : > { %v768_v17 = vadd.f32 %v710_v13, %v1437_v15  ;;  %vm798_vm5 = vcmp.gt.f32.partialorder %v766_v14, 0.0  ;;  %v830_v36 = vmul.f32 0.2, %v766_v14 }
 0x10a   : > { %vm799_vm6 = vcmp.gt.f32.partialorder %v767_v16, 0.0  ;;  %v831_v39 = vmul.f32 0.2, %v767_v16  ;;  %v1466_v51 = vsel %vm797_vm4, %v765_v10, %v829_v33 }
 0x10b   : > { %v714_v18 = vpop.f32.mrb[8].mxu1  ;;  %vm800_vm7 = vcmp.gt.f32.partialorder %v768_v17, 0.0  ;;  %v832_v40 = vmul.f32 0.2, %v768_v17  ;;  %v1469_v53 = vsel %vm798_vm5, %v766_v14, %v830_v36 }
 0x10c   : > { %v769_v19 = vadd.f32 %v714_v18, %v1417_v52  ;;  %v716_v20 = vpop.f32.mrb[9].mxu1  ;;  %v1472_v54 = vsel %vm799_vm6, %v767_v16, %v831_v39 }
 0x10d   : > { %v770_v21 = vadd.f32 %v716_v20, %v1419_v55  ;;  %v718_v22 = vpop.f32.mrb[10].mxu1  ;;  %v1475_v56 = vsel %vm800_vm7, %v768_v17, %v832_v40 }
 0x10e   : > { %v771_v24 = vadd.f32 %v718_v22, %v1422_v59  ;;  %v720_v25 = vpop.f32.mrb[11].mxu1  ;;  %v833_v43 = vmul.f32 0.2, %v769_v19  ;;  %vm801_vm8 = vcmp.gt.f32.partialorder %v769_v19, 0.0 }
 0x10f   : > { %v772_v27 = vadd.f32 %v720_v25, %v1425_v63  ;;  %v834_v44 = vmul.f32 0.2, %v770_v21  ;;  %vm802_vm9 = vcmp.gt.f32.partialorder %v770_v21, 0.0 }
 0x110   : > { %v835_v45 = vmul.f32 0.2, %v771_v24  ;;  %vm803_vm10 = vcmp.gt.f32.partialorder %v771_v24, 0.0  ;;  %v865_v57 = vsel %vm801_vm8, %v769_v19, %v833_v43 }
 0x111   : > { %v836_v47 = vmul.f32 0.2, %v772_v27  ;;  %vm804_vm11 = vcmp.gt.f32.partialorder %v772_v27, 0.0  ;;  %v866_v58 = vsel %vm802_vm9, %v770_v21, %v834_v44 }
 0x112   : > { %v1477_v60 = vsel %vm803_vm10, %v771_v24, %v835_v45 }
 0x113   : > { %v724_v31 = vpop.f32.mrb[12].mxu1  ;;  %v1479_v0 = vsel %vm804_vm11, %v772_v27, %v836_v47 }
 0x114   : > { %v773_v34 = vadd.f32 %v724_v31, %v1429_v4  ;;  %v726_v35 = vpop.f32.mrb[13].mxu1 }
 0x115   : > { %v1451_v37 = vadd.f32 %v726_v35, %v1431_v7  ;;  %v728_v38 = vpop.f32.mrb[14].mxu1 }
 0x116   : > { %v1454_v41 = vadd.f32 %v728_v38, %v1434_v11  ;;  %v730_v42 = vpop.f32.mrb[15].mxu1  ;;  %v837_v50 = vmul.f32 0.2, %v773_v34  ;;  %vm805_vm12 = vcmp.gt.f32.partialorder %v773_v34, 0.0 }
 0x117   : > { %v1457_v46 = vadd.f32 %v730_v42, %v1437_v15  ;;  %v1482_v1 = vmul.f32 0.2, %v1451_v37  ;;  %vm806_vm1 = vcmp.gt.f32.partialorder %v1451_v37, 0.0 }
 0x118   : > { %v1486_v8 = vsel %vm805_vm12, %v773_v34, %v837_v50  ;;  %v1489_v9 = vmul.f32 0.2, %v1454_v41  ;;  %vm807_vm5 = vcmp.gt.f32.partialorder %v1454_v41, 0.0 }
 0x11b   : > { %v674_v61 = vpop.f32.mrb[8].mxu0  ;;  %v734_v62 = vpop.f32.mrb[16].mxu1 }
 0x11c   : > { %v753_v2 = vadd.f32 %v674_v61, %v1417_v52  ;;  %v777_v3 = vadd.f32 %v734_v62, %v1417_v52  ;;  %v676_v5 = vpop.f32.mrb[9].mxu0  ;;  %v736_v6 = vpop.f32.mrb[17].mxu1 }
 0x11d   : > { %v754_v10 = vadd.f32 %v676_v5, %v1419_v55  ;;  %v778_v12 = vadd.f32 %v736_v6, %v1419_v55  ;;  %v678_v13 = vpop.f32.mrb[10].mxu0  ;;  %v738_v14 = vpop.f32.mrb[18].mxu1 }
 0x11e   : > { %vm785_vm13 = vcmp.gt.f32.partialorder %v753_v2, 0.0  ;;  %v817_v16 = vmul.f32 0.2, %v753_v2  ;;  %vm809_vm14 = vcmp.gt.f32.partialorder %v777_v3, 0.0  ;;  %v841_v17 = vmul.f32 0.2, %v777_v3 }
 0x11f   : > { %vm786_vm15 = vcmp.gt.f32.partialorder %v754_v10, 0.0  ;;  %v818_v18 = vmul.f32 0.2, %v754_v10  ;;  %vm810_vm0 = vcmp.gt.f32.partialorder %v778_v12, 0.0  ;;  %v842_v52 = vmul.f32 0.2, %v778_v12 }
 0x120   : > { %v849_v19 = vsel %vm785_vm13, %v753_v2, %v817_v16  ;;  %v873_v20 = vsel %vm809_vm14, %v777_v3, %v841_v17  ;;  %v755_v21 = vadd.f32 %v678_v13, %v1422_v59  ;;  %v779_v22 = vadd.f32 %v738_v14, %v1422_v59  ;;  %v680_v55 = vpop.f32.mrb[11].mxu0  ;;  %v740_v23 = vpop.f32.mrb[19].mxu1 }
 0x121   : > { %v881_v24 = vmax.f32 %v849_v19, %v1445_v28  ;;  %v850_v25 = vsel %vm786_vm15, %v754_v10, %v818_v18  ;;  %v874_v26 = vsel %vm810_vm0, %v778_v12, %v842_v52  ;;  %v756_v27 = vadd.f32 %v680_v55, %v1425_v63 }
 0x122   : > { %v884_v30 = vmax.f32 %v850_v25, %v1447_v29  ;;  %vm787_vm2 = vcmp.gt.f32.partialorder %v755_v21, 0.0  ;;  %v819_v31 = vmul.f32 0.2, %v755_v21  ;;  %vm811_vm3 = vcmp.gt.f32.partialorder %v779_v22, 0.0 }
 0x123   : > { %v882_v32 = vmax.f32 %v881_v24, %v865_v57  ;;  %v843_v33 = vmul.f32 0.2, %v779_v22  ;;  %vm788_vm4 = vcmp.gt.f32.partialorder %v756_v27, 0.0  ;;  %v820_v34 = vmul.f32 0.2, %v756_v27  ;;  %v684_v35 = vpop.f32.mrb[12].mxu0 }
 0x124   : > { %v885_v59 = vmax.f32 %v884_v30, %v866_v58  ;;  %v851_v28 = vsel %vm787_vm2, %v755_v21, %v819_v31  ;;  %v780_v36 = vadd.f32 %v740_v23, %v1425_v63  ;;  %v757_v29 = vadd.f32 %v684_v35, %v1429_v4  ;;  %v744_v38 = vpop.f32.mrb[20].mxu1  ;;  %v686_v39 = vpop.f32.mrb[13].mxu0 }
 0x125   : > { %v883_v40 = vmax.f32 %v882_v32, %v873_v20  ;;  %v887_v42 = vmax.f32 %v851_v28, %v1460_v48  ;;  %v875_v43 = vsel %vm811_vm3, %v779_v22, %v843_v33  ;;  %v852_v44 = vsel %vm788_vm4, %v756_v27, %v820_v34  ;;  %v746_v45 = vpop.f32.mrb[21].mxu1  ;;  %v688_v47 = vpop.f32.mrb[14].mxu0 }
 0x126   : > { %v886_v50 = vmax.f32 %v885_v59, %v874_v26  ;;  %v890_v57 = vmax.f32 %v852_v44, %v1463_v49  ;;  %vm812_vm6 = vcmp.gt.f32.partialorder %v780_v36, 0.0  ;;  %v844_v63 = vmul.f32 0.2, %v780_v36  ;;  %v748_v58 = vpop.f32.mrb[22].mxu1  ;;  %v690_v61 = vpop.f32.mrb[15].mxu0 }
 0x127   : > { %905 = vst [vmem:[%s1504_s11] sm:$0xff] %v883_v40  ;;  %v888_v62 = vmax.f32 %v887_v42, %v1477_v60  ;;  %vm789_vm7 = vcmp.gt.f32.partialorder %v757_v29, 0.0  ;;  %v821_v2 = vmul.f32 0.2, %v757_v29  ;;  %v781_v48 = vadd.f32 %v744_v38, %v1429_v4  ;;  %v750_v3 = vpop.f32.mrb[23].mxu1 }
 0x128   : > { %906 = vst [vmem:[%s1504_s11 + $0x8] sm:$0xff] %v886_v50  ;;  %v876_v5 = vsel %vm812_vm6, %v780_v36, %v844_v63  ;;  %v891_v6 = vmax.f32 %v890_v57, %v1479_v0  ;;  %v758_v49 = vadd.f32 %v686_v39, %v1431_v7  ;;  %v782_v10 = vadd.f32 %v746_v45, %v1431_v7 }
 0x129   : > { %v889_v12 = vmax.f32 %v888_v62, %v875_v43  ;;  %v853_v13 = vsel %vm789_vm7, %v757_v29, %v821_v2  ;;  %vm813_vm8 = vcmp.gt.f32.partialorder %v781_v48, 0.0  ;;  %v845_v14 = vmul.f32 0.2, %v781_v48 }
 0x12a   : > { %v892_v60 = vmax.f32 %v891_v6, %v876_v5  ;;  %v893_v16 = vmax.f32 %v853_v13, %v1466_v51  ;;  %vm790_vm9 = vcmp.gt.f32.partialorder %v758_v49, 0.0  ;;  %v822_v4 = vmul.f32 0.2, %v758_v49 }
 0x12b   : > { %v870_v17 = vsel %vm806_vm1, %v1451_v37, %v1482_v1  ;;  %907 = vst [vmem:[%s1504_s11 + $0x10] sm:$0xff] %v889_v12  ;;  %v877_v0 = vsel %vm813_vm8, %v781_v48, %v845_v14  ;;  %v846_v18 = vmul.f32 0.2, %v782_v10  ;;  %v759_v52 = vadd.f32 %v688_v47, %v1434_v11 }
 0x12c   : > { %908 = vst [vmem:[%s1504_s11 + $0x18] sm:$0xff] %v892_v60  ;;  %v894_v7 = vmax.f32 %v893_v16, %v1486_v8  ;;  %v854_v19 = vsel %vm790_vm9, %v758_v49, %v822_v4  ;;  %v783_v20 = vadd.f32 %v748_v58, %v1434_v11  ;;  %v760_v51 = vadd.f32 %v690_v61, %v1437_v15 }
 0x12d   : > { %v896_v21 = vmax.f32 %v854_v19, %v1469_v53  ;;  %vm814_vm10 = vcmp.gt.f32.partialorder %v782_v10, 0.0  ;;  %vm791_vm11 = vcmp.gt.f32.partialorder %v759_v52, 0.0  ;;  %v823_v22 = vmul.f32 0.2, %v759_v52 }
 0x12e   : > { %v840_v37 = vmul.f32 0.2, %v1457_v46  ;;  %v895_v1 = vmax.f32 %v894_v7, %v877_v0  ;;  %v847_v55 = vmul.f32 0.2, %v783_v20  ;;  %vm792_vm12 = vcmp.gt.f32.partialorder %v760_v51, 0.0 }
 0x12f   : > { %v897_v23 = vmax.f32 %v896_v21, %v870_v17  ;;  %v855_v24 = vsel %vm791_vm11, %v759_v52, %v823_v22  ;;  %v824_v8 = vmul.f32 0.2, %v760_v51  ;;  %v784_v25 = vadd.f32 %v750_v3, %v1437_v15 }
 0x130   : > { %vm808_vm13 = vcmp.gt.f32.partialorder %v1457_v46, 0.0  ;;  %909 = vst [vmem:[%s1504_s11 + $0x20] sm:$0xff] %v895_v1  ;;  %v878_v11 = vsel %vm814_vm10, %v782_v10, %v846_v18  ;;  %v899_v53 = vmax.f32 %v855_v24, %v1472_v54  ;;  %vm815_vm14 = vcmp.gt.f32.partialorder %v783_v20, 0.0 }
 0x131   : > { %v871_v26 = vsel %vm807_vm5, %v1454_v41, %v1489_v9  ;;  %v898_v27 = vmax.f32 %v897_v23, %v878_v11  ;;  %v856_v30 = vsel %vm792_vm12, %v760_v51, %v824_v8  ;;  %v848_v31 = vmul.f32 0.2, %v784_v25 }
 0x132   : > { %v900_v32 = vmax.f32 %v899_v53, %v871_v26  ;;  %v902_v15 = vmax.f32 %v856_v30, %v1475_v56  ;;  %vm816_vm15 = vcmp.gt.f32.partialorder %v784_v25, 0.0  ;;  %v872_v33 = vsel %vm808_vm13, %v1457_v46, %v840_v37 }
 0x133   : > { %910 = vst [vmem:[%s1504_s11 + $0x28] sm:$0xff] %v898_v27  ;;  %v879_v34 = vsel %vm815_vm14, %v783_v20, %v847_v55  ;;  %v880_v59 = vsel %vm816_vm15, %v784_v25, %v848_v31 }
 0x134   : > { %v901_v35 = vmax.f32 %v900_v32, %v879_v34  ;;  %v903_v54 = vmax.f32 %v902_v15, %v872_v33 }
 0x136   : > { %911 = vst [vmem:[%s1504_s11 + $0x30] sm:$0xff] %v901_v35  ;;  %v904_v28 = vmax.f32 %v903_v54, %v880_v59 }
 0x138   : > { %912 = vst [vmem:[%s1504_s11 + $0x38] sm:$0xff] %v904_v28 }
 0x139 PF: > { %s15_s20 = sadd.s32 1, %s1203_s20   ;;  %s1559_s18 = smov %s1199_s19 }
 0x13a   : > { %p12_p5 = scmp.ge.s32.totalorder %s15_s20, 4   ;;  %s1560_s19 = smov %s1562_s21 }
 0x13c   :  { %14 = sbr.rel (!%p12_p5) target bundleno = 2 (0x2), region = 73 }

// kernel: dgcnn_forward.19
= control target key start
LH: loop header
LB: loop body
LE: loop exit
PB: predicated region body
PF: predicated region fallthrough
CT: control target
= control target key end

     0   :  { %v1038_v7 = vmov 0.0   ;;  %s1849_s0 = inlined_call_operand.vmem [shape: f32[2,128], index: 0, kind: input, shape index: {}]   ;;  %s1850_s1 = inlined_call_operand.vmem [shape: f32[128,512], index: 1, kind: input, shape index: {}]   ;;  %s1851_s2 = inlined_call_operand.vmem [shape: f32[1,512], index: 2, kind: input, shape index: {}]   ;;  %s1852_s3 = inlined_call_operand.vmem [shape: f32[1,512], index: 3, kind: input, shape index: {}]   ;;  %s1853_s4 = inlined_call_operand.vmem [shape: f32[512,256], index: 4, kind: input, shape index: {}]   ;;  %s1854_s5 = inlined_call_operand.vmem [shape: f32[1,256], index: 5, kind: input, shape index: {}]   ;;  %s1855_s6 = inlined_call_operand.vmem [shape: f32[1,256], index: 6, kind: input, shape index: {}]   ;;  %s1856_s7 = inlined_call_operand.vmem [shape: f32[1,256], index: 7, kind: input, shape index: {}]   ;;  %s1857_s8 = inlined_call_operand.vmem [shape: f32[256,8], index: 8, kind: input, shape index: {}]   ;;  %s1858_s9 = inlined_call_operand.vmem [shape: f32[1,8], index: 9, kind: input, shape index: {}]   ;;  %s1859_s10 = inlined_call_operand.hbm [shape: f32[2,8], index: 10, kind: output, shape index: {}]  }
   0x1   :  { %v38_v0 = vld [vmem:[%s1850_s1 + $0x8] sm:$0xff]  ;;  %v37_v2 = vld [vmem:[%s1850_s1] sm:$0xff]  ;;  %165 = vmatprep.mubr.f32.mxu1 %v1038_v7  ;;  %v310_v45 = vld [vmem:[%s1853_s4 + $0x18] sm:$0xff] }
   0x2   :  { %v42_v1 = vld [vmem:[%s1850_s1 + $0x28] sm:$0xff]  ;;  %v41_v4 = vld [vmem:[%s1850_s1 + $0x20] sm:$0xff]  ;;  %v309_v47 = vld [vmem:[%s1853_s4 + $0x10] sm:$0xff] }
   0x3   :  { %v784_v3 = vpack.c.bf16 %v42_v1, %v38_v0  ;;  %v46_v5 = vld [vmem:[%s1850_s1 + $0x48] sm:$0xff]  ;;  %v786_v8 = vpack.c.bf16 %v41_v4, %v37_v2  ;;  %v45_v10 = vld [vmem:[%s1850_s1 + $0x40] sm:$0xff]  ;;  %v314_v51 = vld [vmem:[%s1853_s4 + $0x38] sm:$0xff] }
   0x4   :  { %v50_v6 = vld [vmem:[%s1850_s1 + $0x68] sm:$0xff]  ;;  %v49_v11 = vld [vmem:[%s1850_s1 + $0x60] sm:$0xff]  ;;  %v313_v55 = vld [vmem:[%s1853_s4 + $0x30] sm:$0xff] }
   0x5   :  { %v788_v9 = vpack.c.bf16 %v50_v6, %v46_v5  ;;  %v54_v12 = vld [vmem:[%s1850_s1 + $0x88] sm:$0xff]  ;;  %785 = vmatprep.subr.bf16.mxu1 %v784_v3  ;;  %v790_v14 = vpack.c.bf16 %v49_v11, %v45_v10  ;;  %v53_v16 = vld [vmem:[%s1850_s1 + $0x80] sm:$0xff]  ;;  %v318_v57 = vld [vmem:[%s1853_s4 + $0x58] sm:$0xff] }
   0x6   :  { %v58_v13 = vld [vmem:[%s1850_s1 + $0xa8] sm:$0xff]  ;;  %787 = vmatpush1.bf16.msra.mxu1 %v786_v8  ;;  %v57_v17 = vld [vmem:[%s1850_s1 + $0xa0] sm:$0xff]  ;;  %v40_v61 = vld [vmem:[%s1850_s1 + $0x18] sm:$0xff] }
   0x7   :  { %789 = vmatprep.subr.bf16.mxu1 %v788_v9  ;;  %v792_v15 = vpack.c.bf16 %v58_v13, %v54_v12  ;;  %v62_v18 = vld [vmem:[%s1850_s1 + $0xc8] sm:$0xff]  ;;  %v794_v20 = vpack.c.bf16 %v57_v17, %v53_v16  ;;  %v61_v22 = vld [vmem:[%s1850_s1 + $0xc0] sm:$0xff]  ;;  %v44_v62 = vld [vmem:[%s1850_s1 + $0x38] sm:$0xff] }
   0x8   :  { %v66_v19 = vld [vmem:[%s1850_s1 + $0xe8] sm:$0xff]  ;;  %v65_v23 = vld [vmem:[%s1850_s1 + $0xe0] sm:$0xff]  ;;  %v317_v2 = vld [vmem:[%s1853_s4 + $0x50] sm:$0xff]  ;;  %v816_v6 = vpack.c.bf16 %v44_v62, %v40_v61 }
   0x9   :  { %v796_v21 = vpack.c.bf16 %v66_v19, %v62_v18  ;;  %v70_v24 = vld [vmem:[%s1850_s1 + $0x108] sm:$0xff]  ;;  %v798_v26 = vpack.c.bf16 %v65_v23, %v61_v22  ;;  %v69_v28 = vld [vmem:[%s1850_s1 + $0x100] sm:$0xff]  ;;  %v322_v5 = vld [vmem:[%s1853_s4 + $0x78] sm:$0xff] }
   0xa   :  { %791 = vmatpush1.bf16.msra.mxu1 %v790_v14  ;;  %v74_v25 = vld [vmem:[%s1850_s1 + $0x128] sm:$0xff]  ;;  %v73_v29 = vld [vmem:[%s1850_s1 + $0x120] sm:$0xff]  ;;  %v39_v8 = vld [vmem:[%s1850_s1 + $0x10] sm:$0xff] }
   0xb   :  { %793 = vmatprep.subr.bf16.mxu1 %v792_v15  ;;  %v800_v27 = vpack.c.bf16 %v74_v25, %v70_v24  ;;  %v78_v30 = vld [vmem:[%s1850_s1 + $0x148] sm:$0xff]  ;;  %v802_v32 = vpack.c.bf16 %v73_v29, %v69_v28  ;;  %v77_v34 = vld [vmem:[%s1850_s1 + $0x140] sm:$0xff]  ;;  %v43_v9 = vld [vmem:[%s1850_s1 + $0x30] sm:$0xff] }
   0xc   :  { %v82_v31 = vld [vmem:[%s1850_s1 + $0x168] sm:$0xff]  ;;  %v81_v35 = vld [vmem:[%s1850_s1 + $0x160] sm:$0xff]  ;;  %v48_v10 = vld [vmem:[%s1850_s1 + $0x58] sm:$0xff]  ;;  %v818_v17 = vpack.c.bf16 %v43_v9, %v39_v8 }
   0xd   :  { %v804_v33 = vpack.c.bf16 %v82_v31, %v78_v30  ;;  %v86_v36 = vld [vmem:[%s1850_s1 + $0x188] sm:$0xff]  ;;  %v806_v38 = vpack.c.bf16 %v81_v35, %v77_v34  ;;  %v85_v39 = vld [vmem:[%s1850_s1 + $0x180] sm:$0xff]  ;;  %v52_v11 = vld [vmem:[%s1850_s1 + $0x78] sm:$0xff] }
   0xe   :  { %795 = vmatpush1.bf16.msra.mxu1 %v794_v20  ;;  %v90_v37 = vld [vmem:[%s1850_s1 + $0x1a8] sm:$0xff]  ;;  %v89_v40 = vld [vmem:[%s1850_s1 + $0x1a0] sm:$0xff]  ;;  %v321_v15 = vld [vmem:[%s1853_s4 + $0x70] sm:$0xff]  ;;  %v820_v20 = vpack.c.bf16 %v52_v11, %v48_v10 }
   0xf   :  { %797 = vmatprep.subr.bf16.mxu1 %v796_v21  ;;  %v808_v41 = vpack.c.bf16 %v90_v37, %v86_v36  ;;  %v94_v42 = vld [vmem:[%s1850_s1 + $0x1c8] sm:$0xff]  ;;  %v307_v46 = vld [vmem:[%s1853_s4] sm:$0xff]  ;;  %v810_v53 = vpack.c.bf16 %v89_v40, %v85_v39  ;;  %v326_v19 = vld [vmem:[%s1853_s4 + $0x98] sm:$0xff] }
  0x10   :  { %v98_v43 = vld [vmem:[%s1850_s1 + $0x1e8] sm:$0xff]  ;;  %v850_v49 = vpack.c.bf16 %v309_v47, %v307_v46  ;;  %v311_v52 = vld [vmem:[%s1853_s4 + $0x20] sm:$0xff]  ;;  %v47_v21 = vld [vmem:[%s1850_s1 + $0x50] sm:$0xff] }
  0x11   :  { %v308_v44 = vld [vmem:[%s1853_s4 + $0x8] sm:$0xff]  ;;  %v812_v58 = vpack.c.bf16 %v98_v43, %v94_v42  ;;  %v93_v59 = vld [vmem:[%s1850_s1 + $0x1c0] sm:$0xff]  ;;  %v854_v63 = vpack.c.bf16 %v313_v55, %v311_v52  ;;  %v51_v22 = vld [vmem:[%s1850_s1 + $0x70] sm:$0xff] }
  0x12   :  { %799 = vmatpush1.bf16.msra.mxu1 %v798_v26  ;;  %v848_v48 = vpack.c.bf16 %v310_v45, %v308_v44  ;;  %v312_v50 = vld [vmem:[%s1853_s4 + $0x28] sm:$0xff]  ;;  %v97_v60 = vld [vmem:[%s1850_s1 + $0x1e0] sm:$0xff]  ;;  %v56_v23 = vld [vmem:[%s1850_s1 + $0x98] sm:$0xff]  ;;  %v822_v29 = vpack.c.bf16 %v51_v22, %v47_v21 }
  0x13   :  { %801 = vmatprep.subr.bf16.mxu1 %v800_v27  ;;  %v852_v54 = vpack.c.bf16 %v314_v51, %v312_v50  ;;  %v316_v56 = vld [vmem:[%s1853_s4 + $0x48] sm:$0xff]  ;;  %v315_v1 = vld [vmem:[%s1853_s4 + $0x40] sm:$0xff]  ;;  %v814_v3 = vpack.c.bf16 %v97_v60, %v93_v59  ;;  %v60_v24 = vld [vmem:[%s1850_s1 + $0xb8] sm:$0xff] }
  0x14   :  { %849 = vmatprep.subr.bf16.mxu0 %v848_v48  ;;  %v856_v0 = vpack.c.bf16 %v318_v57, %v316_v56  ;;  %v320_v4 = vld [vmem:[%s1853_s4 + $0x68] sm:$0xff]  ;;  %v858_v12 = vpack.c.bf16 %v317_v2, %v315_v1  ;;  %v319_v14 = vld [vmem:[%s1853_s4 + $0x60] sm:$0xff]  ;;  %v325_v28 = vld [vmem:[%s1853_s4 + $0x90] sm:$0xff] }
  0x15   :  { %851 = vmatpush1.bf16.msra.mxu0 %v850_v49  ;;  %v860_v13 = vpack.c.bf16 %v322_v5, %v320_v4  ;;  %v1261_v16 = vld [vmem:[%s1849_s0] sm:$0x3]  ;;  %v324_v18 = vld [vmem:[%s1853_s4 + $0x88] sm:$0xff]  ;;  %v862_v25 = vpack.c.bf16 %v321_v15, %v319_v14  ;;  %v330_v31 = vld [vmem:[%s1853_s4 + $0xb8] sm:$0xff] }
  0x16   :  { %803 = vmatpush1.bf16.msra.mxu1 %v802_v32  ;;  %853 = vmatprep.subr.bf16.mxu0 %v852_v54  ;;  %v864_v26 = vpack.c.bf16 %v326_v19, %v324_v18  ;;  %v323_v27 = vld [vmem:[%s1853_s4 + $0x80] sm:$0xff]  ;;  %v328_v30 = vld [vmem:[%s1853_s4 + $0xa8] sm:$0xff]  ;;  %v824_v32 = vpack.c.bf16 %v60_v24, %v56_v23  ;;  %v59_v34 = vld [vmem:[%s1850_s1 + $0xb0] sm:$0xff] }
  0x17   :  { %805 = vmatprep.subr.bf16.mxu1 %v804_v33  ;;  %v55_v33 = vld [vmem:[%s1850_s1 + $0x90] sm:$0xff]  ;;  %v68_v35 = vld [vmem:[%s1850_s1 + $0xf8] sm:$0xff]  ;;  %v866_v36 = vpack.c.bf16 %v325_v28, %v323_v27  ;;  %v868_v37 = vpack.c.bf16 %v330_v31, %v328_v30 }
  0x18   :  { %v329_v39 = vld [vmem:[%s1853_s4 + $0xb0] sm:$0xff]  ;;  %v826_v40 = vpack.c.bf16 %v59_v34, %v55_v33  ;;  %v334_v42 = vld [vmem:[%s1853_s4 + $0xd8] sm:$0xff] }
  0x19   :  { %855 = vmatpush1.bf16.msra.mxu0 %v854_v63 }
  0x1a   :  { %807 = vmatpush1.bf16.msra.mxu1 %v806_v38  ;;  %857 = vmatprep.subr.bf16.mxu0 %v856_v0  ;;  %v327_v38 = vld [vmem:[%s1853_s4 + $0xa0] sm:$0xff] }
  0x1b   :  { %809 = vmatprep.subr.bf16.mxu1 %v808_v41  ;;  %v332_v41 = vld [vmem:[%s1853_s4 + $0xc8] sm:$0xff] }
  0x1d   :  { %859 = vmatpush1.bf16.msra.mxu0 %v858_v12 }
  0x1e   :  { %811 = vmatpush1.bf16.msra.mxu1 %v810_v53  ;;  %861 = vmatprep.subr.bf16.mxu0 %v860_v13 }
  0x1f   :  { %813 = vmatprep.subr.bf16.mxu1 %v812_v58 }
  0x21   :  { %863 = vmatpush1.bf16.msra.mxu0 %v862_v25 }
  0x22   :  { %815 = vmatpush1.bf16.msra.mxu1 %v814_v3  ;;  %865 = vmatprep.subr.bf16.mxu0 %v864_v26 }
  0x23   :  { %817 = vmatprep.subr.bf16.mxu1 %v816_v6 }
  0x25   :  { %166 = vmatmul.mubr.f32.vlgmr.msra.gmra.mrb[0].mxu1 %v1261_v16 }
  0x26   :  { %819 = vmatpush1.bf16.msra.mxu1 %v818_v17  ;;  %236 = vmatprep.mubr.f32.mxu1 %v1038_v7  ;;  %v64_v7 = vld [vmem:[%s1850_s1 + $0xd8] sm:$0xff] }
  0x27   :  { %821 = vmatprep.subr.bf16.mxu1 %v820_v20 }
  0x2a   :  { %823 = vmatpush1.bf16.msra.mxu1 %v822_v29 }
  0x2b   :  { %15 = vsyncpa [#allocation3], 0  ;;  %825 = vmatprep.subr.bf16.mxu1 %v824_v32  ;;  %v828_v43 = vpack.c.bf16 %v68_v35, %v64_v7  ;;  %v63_v44 = vld [vmem:[%s1850_s1 + $0xd0] sm:$0xff]  ;;  %v72_v46 = vld [vmem:[%s1850_s1 + $0x118] sm:$0xff]  ;;  %867 = vmatpush1.bf16.msra.mxu0 %v866_v36  ;;  %v870_v48 = vpack.c.bf16 %v329_v39, %v327_v38  ;;  %v872_v49 = vpack.c.bf16 %v334_v42, %v332_v41  ;;  %vm732_vm6 = vcmask 58368  }
  0x2c   :  { %v67_v45 = vld [vmem:[%s1850_s1 + $0xf0] sm:$0xff]  ;;  %v76_v47 = vld [vmem:[%s1850_s1 + $0x138] sm:$0xff]  ;;  %869 = vmatprep.subr.bf16.mxu0 %v868_v37  ;;  %v331_v50 = vld [vmem:[%s1853_s4 + $0xc0] sm:$0xff] }
  0x2d   :  { %v333_v51 = vld [vmem:[%s1853_s4 + $0xd0] sm:$0xff]  ;;  %v830_v52 = vpack.c.bf16 %v67_v45, %v63_v44  ;;  %v336_v53 = vld [vmem:[%s1853_s4 + $0xe8] sm:$0xff]  ;;  %v338_v54 = vld [vmem:[%s1853_s4 + $0xf8] sm:$0xff]  ;;  %v832_v55 = vpack.c.bf16 %v76_v47, %v72_v46 }
  0x2e   :  { %827 = vmatpush1.bf16.msra.mxu1 %v826_v40  ;;  %v71_v56 = vld [vmem:[%s1850_s1 + $0x110] sm:$0xff]  ;;  %v80_v58 = vld [vmem:[%s1850_s1 + $0x158] sm:$0xff]  ;;  %v874_v60 = vpack.c.bf16 %v333_v51, %v331_v50  ;;  %v876_v61 = vpack.c.bf16 %v338_v54, %v336_v53  ;;  %v335_v62 = vld [vmem:[%s1853_s4 + $0xe0] sm:$0xff] }
  0x2f   :  { %829 = vmatprep.subr.bf16.mxu1 %v828_v43  ;;  %v75_v57 = vld [vmem:[%s1850_s1 + $0x130] sm:$0xff]  ;;  %v84_v59 = vld [vmem:[%s1850_s1 + $0x178] sm:$0xff]  ;;  %871 = vmatpush1.bf16.msra.mxu0 %v870_v48  ;;  %v340_v1 = vld [vmem:[%s1853_s4 + $0x108] sm:$0xff] }
  0x30   :  { %873 = vmatprep.subr.bf16.mxu0 %v872_v49  ;;  %v337_v63 = vld [vmem:[%s1853_s4 + $0xf0] sm:$0xff]  ;;  %v834_v0 = vpack.c.bf16 %v75_v57, %v71_v56  ;;  %v342_v2 = vld [vmem:[%s1853_s4 + $0x118] sm:$0xff]  ;;  %v836_v3 = vpack.c.bf16 %v84_v59, %v80_v58  ;;  %v339_v11 = vld [vmem:[%s1853_s4 + $0x100] sm:$0xff] }
  0x31   :  { %v79_v4 = vld [vmem:[%s1850_s1 + $0x150] sm:$0xff]  ;;  %v88_v6 = vld [vmem:[%s1850_s1 + $0x198] sm:$0xff]  ;;  %v878_v9 = vpack.c.bf16 %v337_v63, %v335_v62  ;;  %v880_v10 = vpack.c.bf16 %v342_v2, %v340_v1  ;;  %v344_v14 = vld [vmem:[%s1853_s4 + $0x128] sm:$0xff] }
  0x32   :  { %831 = vmatpush1.bf16.msra.mxu1 %v830_v52  ;;  %v83_v5 = vld [vmem:[%s1850_s1 + $0x170] sm:$0xff]  ;;  %v92_v8 = vld [vmem:[%s1850_s1 + $0x1b8] sm:$0xff]  ;;  %v343_v24 = vld [vmem:[%s1853_s4 + $0x120] sm:$0xff] }
  0x33   :  { %833 = vmatprep.subr.bf16.mxu1 %v832_v55  ;;  %875 = vmatpush1.bf16.msra.mxu0 %v874_v60  ;;  %v341_v12 = vld [vmem:[%s1853_s4 + $0x110] sm:$0xff]  ;;  %v838_v13 = vpack.c.bf16 %v83_v5, %v79_v4  ;;  %v346_v15 = vld [vmem:[%s1853_s4 + $0x138] sm:$0xff]  ;;  %v840_v17 = vpack.c.bf16 %v92_v8, %v88_v6  ;;  %v348_v27 = vld [vmem:[%s1853_s4 + $0x148] sm:$0xff]  ;;  %v245_v5 = vlaneseq }
  0x34   :  { %877 = vmatprep.subr.bf16.mxu0 %v876_v61  ;;  %v87_v18 = vld [vmem:[%s1850_s1 + $0x190] sm:$0xff]  ;;  %v96_v20 = vld [vmem:[%s1850_s1 + $0x1d8] sm:$0xff]  ;;  %v882_v22 = vpack.c.bf16 %v341_v12, %v339_v11  ;;  %v884_v23 = vpack.c.bf16 %v346_v15, %v344_v14  ;;  %v347_v34 = vld [vmem:[%s1853_s4 + $0x140] sm:$0xff] }
  0x35   :  { %v91_v19 = vld [vmem:[%s1850_s1 + $0x1b0] sm:$0xff]  ;;  %v100_v21 = vld [vmem:[%s1850_s1 + $0x1f8] sm:$0xff]  ;;  %v352_v36 = vld [vmem:[%s1853_s4 + $0x168] sm:$0xff]  ;;  %v1494_v6 = vshrl.u32 %v245_v5, 7 }
  0x36   :  { %835 = vmatpush1.bf16.msra.mxu1 %v834_v0  ;;  %v345_v25 = vld [vmem:[%s1853_s4 + $0x130] sm:$0xff]  ;;  %v842_v26 = vpack.c.bf16 %v91_v19, %v87_v18  ;;  %v350_v28 = vld [vmem:[%s1853_s4 + $0x158] sm:$0xff]  ;;  %v844_v29 = vpack.c.bf16 %v100_v21, %v96_v20  ;;  %v351_v40 = vld [vmem:[%s1853_s4 + $0x160] sm:$0xff] }
  0x37   :  { %837 = vmatprep.subr.bf16.mxu1 %v836_v3  ;;  %879 = vmatpush1.bf16.msra.mxu0 %v878_v9  ;;  %v95_v30 = vld [vmem:[%s1850_s1 + $0x1d0] sm:$0xff]  ;;  %v886_v32 = vpack.c.bf16 %v345_v25, %v343_v24  ;;  %v888_v33 = vpack.c.bf16 %v350_v28, %v348_v27  ;;  %v354_v37 = vld [vmem:[%s1853_s4 + $0x178] sm:$0xff]  ;;  %v356_v42 = vld [vmem:[%s1853_s4 + $0x188] sm:$0xff]  ;;  %v255_v8 = vsub.s32 2, %v1494_v6 }
  0x38   :  { %881 = vmatprep.subr.bf16.mxu0 %v880_v10  ;;  %v99_v31 = vld [vmem:[%s1850_s1 + $0x1f0] sm:$0xff]  ;;  %v892_v39 = vpack.c.bf16 %v354_v37, %v352_v36  ;;  %v358_v43 = vld [vmem:[%s1853_s4 + $0x198] sm:$0xff]  ;;  %v355_v46 = vld [vmem:[%s1853_s4 + $0x180] sm:$0xff] }
  0x39   :  { %v349_v7 = vld [vmem:[%s1853_s4 + $0x150] sm:$0xff]  ;;  %v846_v35 = vpack.c.bf16 %v99_v31, %v95_v30  ;;  %v896_v45 = vpack.c.bf16 %v358_v43, %v356_v42  ;;  %v360_v48 = vld [vmem:[%s1853_s4 + $0x1a8] sm:$0xff]  ;;  %v362_v49 = vld [vmem:[%s1853_s4 + $0x1b8] sm:$0xff]  ;;  %v1574_v43 = vsub.s32 0, %v1494_v6 }
  0x3a   :  { %839 = vmatpush1.bf16.msra.mxu1 %v838_v13  ;;  %v890_v38 = vpack.c.bf16 %v349_v7, %v347_v34  ;;  %v353_v41 = vld [vmem:[%s1853_s4 + $0x170] sm:$0xff]  ;;  %v900_v50 = vpack.c.bf16 %v362_v49, %v360_v48  ;;  %v359_v51 = vld [vmem:[%s1853_s4 + $0x1a0] sm:$0xff]  ;;  %v364_v54 = vld [vmem:[%s1853_s4 + $0x1c8] sm:$0xff] }
  0x3b   :  { %841 = vmatprep.subr.bf16.mxu1 %v840_v17  ;;  %883 = vmatpush1.bf16.msra.mxu0 %v882_v22  ;;  %v894_v44 = vpack.c.bf16 %v353_v41, %v351_v40  ;;  %v357_v47 = vld [vmem:[%s1853_s4 + $0x190] sm:$0xff]  ;;  %v366_v55 = vld [vmem:[%s1853_s4 + $0x1d8] sm:$0xff]  ;;  %v363_v57 = vld [vmem:[%s1853_s4 + $0x1c0] sm:$0xff] }
  0x3c   :  { %885 = vmatprep.subr.bf16.mxu0 %v884_v23  ;;  %v361_v52 = vld [vmem:[%s1853_s4 + $0x1b0] sm:$0xff]  ;;  %v904_v56 = vpack.c.bf16 %v366_v55, %v364_v54  ;;  %v368_v60 = vld [vmem:[%s1853_s4 + $0x1e8] sm:$0xff]  ;;  %v370_v61 = vld [vmem:[%s1853_s4 + $0x1f8] sm:$0xff] }
  0x3d   :  { %v902_v53 = vpack.c.bf16 %v361_v52, %v359_v51  ;;  %v365_v58 = vld [vmem:[%s1853_s4 + $0x1d0] sm:$0xff]  ;;  %v908_v62 = vpack.c.bf16 %v370_v61, %v368_v60  ;;  %v367_v63 = vld [vmem:[%s1853_s4 + $0x1e0] sm:$0xff]  ;;  %v372_v2 = vld [vmem:[%s1853_s4 + $0x208] sm:$0xff] }
  0x3e   :  { %843 = vmatpush1.bf16.msra.mxu1 %v842_v26  ;;  %v906_v59 = vpack.c.bf16 %v365_v58, %v363_v57  ;;  %v369_v0 = vld [vmem:[%s1853_s4 + $0x1f0] sm:$0xff]  ;;  %v374_v3 = vld [vmem:[%s1853_s4 + $0x218] sm:$0xff]  ;;  %v1500_v9 = vld [vmem:[%s1851_s2] sm:$0xf] }
  0x3f   :  { %845 = vmatprep.subr.bf16.mxu1 %v844_v29  ;;  %887 = vmatpush1.bf16.msra.mxu0 %v886_v32  ;;  %v910_v1 = vpack.c.bf16 %v369_v0, %v367_v63  ;;  %v912_v4 = vpack.c.bf16 %v374_v3, %v372_v2  ;;  %v1505_v10 = vld [vmem:[%s1852_s3] sm:$0xf]  ;;  %v1508_v11 = vrot.slane %v1500_v9, %v255_v8  ;;  %v640_v14 = vld [vmem:[%s1857_s8 + $0x88] sm:$0xff]  ;;  %v641_v19 = vld [vmem:[%s1857_s8 + $0x90] sm:$0xff] }
  0x40   :  { %889 = vmatprep.subr.bf16.mxu0 %v888_v33  ;;  %v1511_v12 = vrot.slane %v1505_v10, %v255_v8  ;;  %v639_v13 = vld [vmem:[%s1857_s8 + $0x80] sm:$0xff]  ;;  %v624_v18 = vld [vmem:[%s1857_s8 + $0x8] sm:$0xff]  ;;  %v642_v20 = vld [vmem:[%s1857_s8 + $0x98] sm:$0xff] }
  0x41   :  { %v623_v15 = vld [vmem:[%s1857_s8] sm:$0xff]  ;;  %v976_v17 = vpack.c.bf16 %v640_v14, %v639_v13  ;;  %v980_v22 = vpack.c.bf16 %v642_v20, %v641_v19  ;;  %v625_v23 = vld [vmem:[%s1857_s8 + $0x10] sm:$0xff]  ;;  %v626_v24 = vld [vmem:[%s1857_s8 + $0x18] sm:$0xff] }
  0x42   :  { %847 = vmatpush1.bf16.msra.mxu1 %v846_v35  ;;  %v978_v21 = vpack.c.bf16 %v624_v18, %v623_v15  ;;  %v643_v25 = vld [vmem:[%s1857_s8 + $0xa0] sm:$0xff]  ;;  %v644_v26 = vld [vmem:[%s1857_s8 + $0xa8] sm:$0xff]  ;;  %v982_v27 = vpack.c.bf16 %v626_v24, %v625_v23  ;;  %v645_v31 = vld [vmem:[%s1857_s8 + $0xb0] sm:$0xff] }
  0x43   :  { %891 = vmatpush1.bf16.msra.mxu0 %v890_v38  ;;  %977 = vmatprep.subr.bf16.mxu1 %v976_v17  ;;  %v984_v28 = vpack.c.bf16 %v644_v26, %v643_v25  ;;  %v627_v29 = vld [vmem:[%s1857_s8 + $0x20] sm:$0xff]  ;;  %v628_v30 = vld [vmem:[%s1857_s8 + $0x28] sm:$0xff]  ;;  %v646_v32 = vld [vmem:[%s1857_s8 + $0xb8] sm:$0xff] }
  0x44   :  { %893 = vmatprep.subr.bf16.mxu0 %v892_v39  ;;  %v986_v33 = vpack.c.bf16 %v628_v30, %v627_v29  ;;  %v988_v34 = vpack.c.bf16 %v646_v32, %v645_v31  ;;  %v629_v7 = vld [vmem:[%s1857_s8 + $0x30] sm:$0xff]  ;;  %v630_v35 = vld [vmem:[%s1857_s8 + $0x38] sm:$0xff]  ;;  %v647_v36 = vld [vmem:[%s1857_s8 + $0xc0] sm:$0xff] }
  0x45   :  { %237 = vmatmul.mubr.f32.vlgmr.msra.gmra.mrb[2].mxu1 %v1261_v16  ;;  %v898_v16 = vpack.c.bf16 %v357_v47, %v355_v46  ;;  %v648_v37 = vld [vmem:[%s1857_s8 + $0xc8] sm:$0xff]  ;;  %v990_v38 = vpack.c.bf16 %v630_v35, %v629_v7  ;;  %v631_v40 = vld [vmem:[%s1857_s8 + $0x40] sm:$0xff]  ;;  %v274_v47 = vrot.slane %v1505_v10, %v1574_v43  ;;  %v373_v55 = vld [vmem:[%s1853_s4 + $0x210] sm:$0xff]  ;;  %v259_v7 = vsub.s32 3, %v1494_v6 }
  0x46   :  { %979 = vmatpush3.bf16.msra.mxu1 %v978_v21  ;;  %v992_v39 = vpack.c.bf16 %v648_v37, %v647_v36  ;;  %v632_v41 = vld [vmem:[%s1857_s8 + $0x48] sm:$0xff]  ;;  %v371_v54 = vld [vmem:[%s1853_s4 + $0x200] sm:$0xff]  ;;  %v378_v58 = vld [vmem:[%s1853_s4 + $0x238] sm:$0xff] }
  0x47   :  { %895 = vmatpush1.bf16.msra.mxu0 %v894_v44  ;;  %981 = vmatprep.subr.bf16.mxu1 %v980_v22  ;;  %v994_v42 = vpack.c.bf16 %v632_v41, %v631_v40  ;;  %v1577_v44 = vsub.s32 1, %v1494_v6  ;;  %v376_v57 = vld [vmem:[%s1853_s4 + $0x228] sm:$0xff]  ;;  %v914_v60 = vpack.c.bf16 %v373_v55, %v371_v54  ;;  %v375_v63 = vld [vmem:[%s1853_s4 + $0x220] sm:$0xff]  ;;  %v377_v0 = vld [vmem:[%s1853_s4 + $0x230] sm:$0xff]  ;;  %v260_v40 = vrot.slane %v1500_v9, %v259_v7 }
  0x48   :  { %897 = vmatprep.subr.bf16.mxu0 %v896_v45  ;;  %v248_v45 = vrot.slane %v1500_v9, %v1574_v43  ;;  %v380_v2 = vld [vmem:[%s1853_s4 + $0x248] sm:$0xff]  ;;  %v382_v3 = vld [vmem:[%s1853_s4 + $0x258] sm:$0xff]  ;;  %v379_v8 = vld [vmem:[%s1853_s4 + $0x240] sm:$0xff] }
  0x49   :  { %v252_v46 = vrot.slane %v1500_v9, %v1577_v44  ;;  %v278_v49 = vrot.slane %v1505_v10, %v1577_v44  ;;  %v920_v5 = vpack.c.bf16 %v382_v3, %v380_v2  ;;  %v381_v13 = vld [vmem:[%s1853_s4 + $0x250] sm:$0xff]  ;;  %v384_v14 = vld [vmem:[%s1853_s4 + $0x268] sm:$0xff]  ;;  %v386_v15 = vld [vmem:[%s1853_s4 + $0x278] sm:$0xff] }
  0x4a   :  { %983 = vmatpush3.bf16.msra.mxu1 %v982_v27  ;;  %v922_v17 = vpack.c.bf16 %v381_v13, %v379_v8  ;;  %v924_v18 = vpack.c.bf16 %v386_v15, %v384_v14  ;;  %v383_v19 = vld [vmem:[%s1853_s4 + $0x260] sm:$0xff]  ;;  %v385_v20 = vld [vmem:[%s1853_s4 + $0x270] sm:$0xff]  ;;  %v388_v21 = vld [vmem:[%s1853_s4 + $0x288] sm:$0xff] }
  0x4b   :  { %899 = vmatpush1.bf16.msra.mxu0 %v898_v16  ;;  %985 = vmatprep.subr.bf16.mxu1 %v984_v28  ;;  %v390_v22 = vld [vmem:[%s1853_s4 + $0x298] sm:$0xff]  ;;  %v926_v23 = vpack.c.bf16 %v385_v20, %v383_v19  ;;  %v387_v25 = vld [vmem:[%s1853_s4 + $0x280] sm:$0xff]  ;;  %v389_v26 = vld [vmem:[%s1853_s4 + $0x290] sm:$0xff] }
  0x4c   :  { %901 = vmatprep.subr.bf16.mxu0 %v900_v50  ;;  %v928_v24 = vpack.c.bf16 %v390_v22, %v388_v21  ;;  %v392_v27 = vld [vmem:[%s1853_s4 + $0x2a8] sm:$0xff]  ;;  %v394_v28 = vld [vmem:[%s1853_s4 + $0x2b8] sm:$0xff]  ;;  %v930_v29 = vpack.c.bf16 %v389_v26, %v387_v25  ;;  %v391_v31 = vld [vmem:[%s1853_s4 + $0x2a0] sm:$0xff] }
  0x4d   :  { %v932_v30 = vpack.c.bf16 %v394_v28, %v392_v27  ;;  %v393_v32 = vld [vmem:[%s1853_s4 + $0x2b0] sm:$0xff]  ;;  %v395_v37 = vld [vmem:[%s1853_s4 + $0x2c0] sm:$0xff]  ;;  %v402_v6 = vld [vmem:[%s1853_s4 + $0x2f8] sm:$0xff] }
  0x4e   :  { %987 = vmatpush3.bf16.msra.mxu1 %v986_v33  ;;  %v396_v33 = vld [vmem:[%s1853_s4 + $0x2c8] sm:$0xff]  ;;  %v934_v35 = vpack.c.bf16 %v393_v32, %v391_v31  ;;  %v406_v9 = vld [vmem:[%s1853_s4 + $0x318] sm:$0xff]  ;;  %v405_v55 = vld [vmem:[%s1853_s4 + $0x310] sm:$0xff] }
  0x4f   :  { %903 = vmatpush1.bf16.msra.mxu0 %v902_v53  ;;  %989 = vmatprep.subr.bf16.mxu1 %v988_v34  ;;  %v398_v34 = vld [vmem:[%s1853_s4 + $0x2d8] sm:$0xff]  ;;  %v411_v3 = vld [vmem:[%s1853_s4 + $0x340] sm:$0xff] }
  0x50   :  { %905 = vmatprep.subr.bf16.mxu0 %v904_v56  ;;  %v936_v36 = vpack.c.bf16 %v398_v34, %v396_v33  ;;  %v418_v8 = vld [vmem:[%s1853_s4 + $0x378] sm:$0xff]  ;;  %v415_v15 = vld [vmem:[%s1853_s4 + $0x360] sm:$0xff] }
  0x51   :  { %v422_v19 = vld [vmem:[%s1853_s4 + $0x398] sm:$0xff]  ;;  %v419_v22 = vld [vmem:[%s1853_s4 + $0x380] sm:$0xff] }
  0x52   :  { %991 = vmatpush3.bf16.msra.mxu1 %v990_v38  ;;  %v397_v38 = vld [vmem:[%s1853_s4 + $0x2d0] sm:$0xff]  ;;  %v426_v25 = vld [vmem:[%s1853_s4 + $0x3b8] sm:$0xff]  ;;  %v423_v28 = vld [vmem:[%s1853_s4 + $0x3a0] sm:$0xff] }
  0x53   :  { %907 = vmatpush1.bf16.msra.mxu0 %v906_v59  ;;  %993 = vmatprep.subr.bf16.mxu1 %v992_v39  ;;  %v400_v39 = vld [vmem:[%s1853_s4 + $0x2e8] sm:$0xff]  ;;  %v938_v41 = vpack.c.bf16 %v397_v38, %v395_v37  ;;  %v430_v31 = vld [vmem:[%s1853_s4 + $0x3d8] sm:$0xff]  ;;  %v427_v34 = vld [vmem:[%s1853_s4 + $0x3c0] sm:$0xff] }
  0x54   :  { %909 = vmatprep.subr.bf16.mxu0 %v908_v62  ;;  %v916_v62 = vpack.c.bf16 %v378_v58, %v376_v57 }
  0x56   :  { %995 = vmatpush3.bf16.msra.mxu1 %v994_v42  ;;  %v940_v42 = vpack.c.bf16 %v402_v6, %v400_v39  ;;  %v431_v39 = vld [vmem:[%s1853_s4 + $0x3e0] sm:$0xff]  ;;  %v433_v6 = vld [vmem:[%s1853_s4 + $0x3f0] sm:$0xff] }
  0x57   :  { %911 = vmatpush1.bf16.msra.mxu0 %v910_v1 }
  0x58   :  { %913 = vmatprep.subr.bf16.mxu0 %v912_v4  ;;  %v918_v4 = vpack.c.bf16 %v377_v0, %v375_v63  ;;  %v412_v63 = vld [vmem:[%s1853_s4 + $0x348] sm:$0xff]  ;;  %v414_v0 = vld [vmem:[%s1853_s4 + $0x358] sm:$0xff] }
  0x59   :  { %v952_v2 = vpack.c.bf16 %v414_v0, %v412_v63 }
  0xf8   :  { %v167_v48 = vpop.f32.mrb[0].mxu1 }
  0xf9   :  { %v265_v16 = vmul.f32 %v248_v45, %v167_v48  ;;  %v169_v50 = vpop.f32.mrb[1].mxu1  ;;  %v399_v45 = vld [vmem:[%s1853_s4 + $0x2e0] sm:$0xff]  ;;  %v286_v48 = vrot.slane %v1505_v10, %v259_v7  ;;  %v429_v7 = vld [vmem:[%s1853_s4 + $0x3d0] sm:$0xff] }
  0xfa   :  { %v266_v51 = vmul.f32 %v252_v46, %v169_v50  ;;  %v401_v46 = vld [vmem:[%s1853_s4 + $0x2f0] sm:$0xff]  ;;  %v403_v10 = vld [vmem:[%s1853_s4 + $0x300] sm:$0xff]  ;;  %v970_v37 = vpack.c.bf16 %v429_v7, %v427_v34 }
  0xfb   :  { %v291_v52 = vadd.f32 %v274_v47, %v265_v16  ;;  %v946_v58 = vpack.c.bf16 %v405_v55, %v403_v10  ;;  %v653_v10 = vld [vmem:[%s1857_s8 + $0xf0] sm:$0xff]  ;;  %v654_v55 = vld [vmem:[%s1857_s8 + $0xf8] sm:$0xff] }
  0xfc   :  { %v292_v53 = vadd.f32 %v278_v49, %v266_v51  ;;  %v404_v49 = vld [vmem:[%s1853_s4 + $0x308] sm:$0xff] }
  0xfd   :  { %v299_v56 = vmul.f32 0.2, %v291_v52  ;;  %vm295_vm1 = vcmp.gt.f32.partialorder %v291_v52, 0.0  ;;  %v944_v54 = vpack.c.bf16 %v406_v9, %v404_v49  ;;  %v634_v49 = vld [vmem:[%s1857_s8 + $0x58] sm:$0xff] }
  0xfe   :  { %vm296_vm0 = vcmp.gt.f32.partialorder %v292_v53, 0.0  ;;  %v300_v59 = vmul.f32 0.2, %v292_v53 }
  0xff   :  { %v303_v1 = vsel %vm295_vm1, %v291_v52, %v299_v56  ;;  %v942_v52 = vpack.c.bf16 %v401_v46, %v399_v45  ;;  %v649_v45 = vld [vmem:[%s1857_s8 + $0xd0] sm:$0xff]  ;;  %v650_v46 = vld [vmem:[%s1857_s8 + $0xd8] sm:$0xff] }
 0x100   :  { %v304_v61 = vsel %vm296_vm0, %v292_v53, %v300_v59 }
 0x101   :  { %511 = vmatprep.mubr.f32.mxu0 %v304_v61  ;;  %v409_v61 = vld [vmem:[%s1853_s4 + $0x330] sm:$0xff] }
 0x102   :  { %512 = vmatmul.mubr.f32.vlgmr.msra.gmra.mrb[0].mxu0 %v303_v1 }
 0x103   :  { %915 = vmatpush1.bf16.msra.mxu0 %v914_v60  ;;  %v407_v60 = vld [vmem:[%s1853_s4 + $0x320] sm:$0xff] }
 0x104   :  { %917 = vmatprep.subr.bf16.mxu0 %v916_v62  ;;  %v950_v1 = vpack.c.bf16 %v409_v61, %v407_v60  ;;  %v603_v61 = vld [vmem:[%s1856_s7] sm:$0x3]  ;;  %s1039_s7 = smov [#allocation2]  }
 0x107   :  { %919 = vmatpush1.bf16.msra.mxu0 %v918_v4  ;;  %v413_v4 = vld [vmem:[%s1853_s4 + $0x350] sm:$0xff] }
 0x108   :  { %921 = vmatprep.subr.bf16.mxu0 %v920_v5  ;;  %v416_v5 = vld [vmem:[%s1853_s4 + $0x368] sm:$0xff]  ;;  %v954_v13 = vpack.c.bf16 %v413_v4, %v411_v3  ;;  %v608_v3 = vrot.slane %v603_v61, %v1574_v43 }
 0x109   :  { %v956_v14 = vpack.c.bf16 %v418_v8, %v416_v5  ;;  %v612_v8 = vrot.slane %v603_v61, %v1577_v44 }
 0x10b   :  { %923 = vmatpush1.bf16.msra.mxu0 %v922_v17  ;;  %v417_v17 = vld [vmem:[%s1853_s4 + $0x370] sm:$0xff] }
 0x10c   :  { %925 = vmatprep.subr.bf16.mxu0 %v924_v18  ;;  %v420_v18 = vld [vmem:[%s1853_s4 + $0x388] sm:$0xff]  ;;  %v958_v20 = vpack.c.bf16 %v417_v17, %v415_v15 }
 0x10d   :  { %v960_v21 = vpack.c.bf16 %v422_v19, %v420_v18 }
 0x10f   :  { %927 = vmatpush1.bf16.msra.mxu0 %v926_v23  ;;  %v421_v23 = vld [vmem:[%s1853_s4 + $0x390] sm:$0xff] }
 0x110   :  { %929 = vmatprep.subr.bf16.mxu0 %v928_v24  ;;  %v424_v24 = vld [vmem:[%s1853_s4 + $0x3a8] sm:$0xff]  ;;  %v962_v26 = vpack.c.bf16 %v421_v23, %v419_v22 }
 0x111   :  { %v964_v27 = vpack.c.bf16 %v426_v25, %v424_v24 }
 0x113   :  { %931 = vmatpush1.bf16.msra.mxu0 %v930_v29  ;;  %v425_v29 = vld [vmem:[%s1853_s4 + $0x3b0] sm:$0xff] }
 0x114   :  { %933 = vmatprep.subr.bf16.mxu0 %v932_v30  ;;  %v428_v30 = vld [vmem:[%s1853_s4 + $0x3c8] sm:$0xff]  ;;  %v966_v32 = vpack.c.bf16 %v425_v29, %v423_v28 }
 0x115   :  { %v968_v33 = vpack.c.bf16 %v430_v31, %v428_v30 }
 0x117   :  { %935 = vmatpush1.bf16.msra.mxu0 %v934_v35  ;;  %v432_v35 = vld [vmem:[%s1853_s4 + $0x3e8] sm:$0xff] }
 0x118   :  { %937 = vmatprep.subr.bf16.mxu0 %v936_v36  ;;  %v238_v47 = vpop.f32.mrb[2].mxu1  ;;  %v434_v36 = vld [vmem:[%s1853_s4 + $0x3f8] sm:$0xff] }
 0x119   :  { %v267_v16 = vmul.f32 %v1508_v11, %v238_v47  ;;  %v240_v50 = vpop.f32.mrb[3].mxu1  ;;  %v408_v11 = vld [vmem:[%s1853_s4 + $0x328] sm:$0xff]  ;;  %v972_v38 = vpack.c.bf16 %v434_v36, %v432_v35  ;;  %v996_v47 = vpack.c.bf16 %v650_v46, %v649_v45 }
 0x11a   :  { %v268_v51 = vmul.f32 %v260_v40, %v240_v50  ;;  %v974_v40 = vpack.c.bf16 %v433_v6, %v431_v39  ;;  %v652_v50 = vld [vmem:[%s1857_s8 + $0xe8] sm:$0xff] }
 0x11b   :  { %939 = vmatpush1.bf16.msra.mxu0 %v938_v41  ;;  %v1688_v53 = vadd.f32 %v1511_v12, %v267_v16  ;;  %v410_v12 = vld [vmem:[%s1853_s4 + $0x338] sm:$0xff]  ;;  %997 = vmatprep.subr.bf16.mxu1 %v996_v47  ;;  %v651_v16 = vld [vmem:[%s1857_s8 + $0xe0] sm:$0xff] }
 0x11c   :  { %941 = vmatprep.subr.bf16.mxu0 %v940_v42  ;;  %v294_v56 = vadd.f32 %v286_v48, %v268_v51  ;;  %v948_v59 = vpack.c.bf16 %v410_v12, %v408_v11  ;;  %v633_v48 = vld [vmem:[%s1857_s8 + $0x50] sm:$0xff]  ;;  %v1000_v51 = vpack.c.bf16 %v652_v50, %v651_v16  ;;  %v638_v12 = vld [vmem:[%s1857_s8 + $0x78] sm:$0xff] }
 0x11d   :  { %v301_v41 = vmul.f32 0.2, %v1688_v53  ;;  %vm297_vm3 = vcmp.gt.f32.partialorder %v1688_v53, 0.0  ;;  %v998_v9 = vpack.c.bf16 %v634_v49, %v633_v48  ;;  %v637_v11 = vld [vmem:[%s1857_s8 + $0x70] sm:$0xff] }
 0x11e   :  { %vm298_vm2 = vcmp.gt.f32.partialorder %v294_v56, 0.0  ;;  %v302_v57 = vmul.f32 0.2, %v294_v56 }
 0x11f   :  { %943 = vmatpush1.bf16.msra.mxu0 %v942_v52  ;;  %v305_v42 = vsel %vm297_vm3, %v1688_v53, %v301_v41  ;;  %999 = vmatpush3.bf16.msra.mxu1 %v998_v9  ;;  %v635_v52 = vld [vmem:[%s1857_s8 + $0x60] sm:$0xff]  ;;  %v636_v53 = vld [vmem:[%s1857_s8 + $0x68] sm:$0xff]  ;;  %s740_s8 = sshll.u32 %s1039_s7, 4  ;;  %s741_s8 = int_to_ptr.vmem [resolvable:$true] %s740_s8 }
 0x120   :  { %945 = vmatprep.subr.bf16.mxu0 %v944_v54  ;;  %v306_v62 = vsel %vm298_vm2, %v294_v56, %v302_v57  ;;  %v1002_v54 = vpack.c.bf16 %v636_v53, %v635_v52  ;;  %1001 = vmatprep.subr.bf16.mxu1 %v1000_v51  ;;  %v1004_v56 = vpack.c.bf16 %v654_v55, %v653_v10  ;;  %s1014_s29 = scalar_lea.vmem %s741_s8, 32  ;;  %p1019_p1 = scmp.lt.s32.totalorder %s741_s8, %s741_s8 }
 0x121   :  { %582 = vmatprep.mubr.f32.mxu0 %v306_v62  ;;  %v1006_v57 = vpack.c.bf16 %v638_v12, %v637_v11  ;;  %p1015_p0 = scmp.ne.s32.totalorder %s741_s8, %s1014_s29  ;;  %p1020_p2 = scmp.lt.s32.totalorder %s1014_s29, %s1014_s29 }
 0x123   :  { %947 = vmatpush1.bf16.msra.mxu0 %v946_v58  ;;  %1003 = vmatpush3.bf16.msra.mxu1 %v1002_v54  ;;  %v435_v58 = vld [vmem:[%s1854_s5] sm:$0x3]  ;;  %p1021_p3 = por %p1020_p2, %p1019_p1 }
 0x124   :  { %949 = vmatprep.subr.bf16.mxu0 %v948_v59  ;;  %1005 = vmatprep.subr.bf16.mxu1 %v1004_v56  ;;  %v589_v59 = vld [vmem:[%s1855_s6] sm:$0x3]  ;;  %v440_v60 = vrot.slane %v435_v58, %v1574_v43  ;;  %v444_v62 = vrot.slane %v435_v58, %v1577_v44 }
 0x125   :  { %v594_v63 = vrot.slane %v589_v59, %v1574_v43  ;;  %v748_v43 = vld [vmem:[%s1858_s9] ss:$0 sm:$0xff]  ;;  %p1022_p4 = pnand %p1021_p3, %p1015_p0 }
 0x127   :  { %951 = vmatpush1.bf16.msra.mxu0 %v950_v1  ;;  %1007 = vmatpush3.bf16.msra.mxu1 %v1006_v57  ;;  %v598_v1 = vrot.slane %v589_v59, %v1577_v44 }
 0x128   :  { %953 = vmatprep.subr.bf16.mxu0 %v952_v2 }
 0x12b   :  { %955 = vmatpush1.bf16.msra.mxu0 %v954_v13 }
 0x12c   :  { %957 = vmatprep.subr.bf16.mxu0 %v956_v14 }
 0x12f   :  { %959 = vmatpush1.bf16.msra.mxu0 %v958_v20 }
 0x130   :  { %961 = vmatprep.subr.bf16.mxu0 %v960_v21 }
 0x133   :  { %963 = vmatpush1.bf16.msra.mxu0 %v962_v26 }
 0x134   :  { %965 = vmatprep.subr.bf16.mxu0 %v964_v27 }
 0x137   :  { %967 = vmatpush1.bf16.msra.mxu0 %v966_v32 }
 0x138   :  { %969 = vmatprep.subr.bf16.mxu0 %v968_v33 }
 0x13b   :  { %971 = vmatpush1.bf16.msra.mxu0 %v970_v37 }
 0x13c   :  { %973 = vmatprep.subr.bf16.mxu0 %v972_v38 }
 0x13f   :  { %975 = vmatpush1.bf16.msra.mxu0 %v974_v40 }
 0x142   :  { %583 = vmatmul.mubr.f32.vlgmr.msra.gmra.mrb[0].mxu0 %v305_v42 }
 0x215   :  { %v584_v0 = vpop.f32.mrb[0].mxu0 }
 0x216   :  { %v1008_v2 = vadd.f32 %v584_v0, %v440_v60  ;;  %v586_v4 = vpop.f32.mrb[1].mxu0 }
 0x217   :  { %v1009_v5 = vadd.f32 %v586_v4, %v444_v62 }
 0x218   :  { %v601_v13 = vmul.f32 %v1008_v2, %v594_v63 }
 0x219   :  { %v602_v14 = vmul.f32 %v1009_v5, %v598_v1 }
 0x21a   :  { %v615_v15 = vadd.f32 %v608_v3, %v601_v13 }
 0x21b   :  { %v616_v17 = vadd.f32 %v612_v8, %v602_v14 }
 0x21c   :  { %v619_v18 = vmul.f32 0.2, %v615_v15  ;;  %vm617_vm5 = vcmp.gt.f32.partialorder %v615_v15, 0.0 }
 0x21d   :  { %vm618_vm4 = vcmp.gt.f32.partialorder %v616_v17, 0.0  ;;  %v620_v19 = vmul.f32 0.2, %v616_v17 }
 0x21e   :  { %v621_v21 = vsel %vm617_vm5, %v615_v15, %v619_v18 }
 0x21f   :  { %v622_v20 = vsel %vm618_vm4, %v616_v17, %v620_v19 }
 0x220   :  { %726 = vmatprep.mubr.f32.mxu1 %v622_v20 }
 0x221   :  { %727 = vmatmul.mubr.f32.vlgmr.msra.gmra.mrb[4].mxu1 %v621_v21 }
 0x2f4   :  { %v781_v22 = vpop.f32.mrb[4].mxu1 }
 0x2f5   :  { %v782_v23 = vpop.f32.mrb[5].mxu1 }
 0x2f6   :  { %v783_v44 = vadd.f32 %v782_v23, %v781_v22 }
 0x2f8   :  { %v729_v24 = vadd.f32 %v783_v44, %v748_v43 }
 0x2fa   :  { %733 = vst.msk [vmem:[#allocation2] sm:$0x3] %vm732_vm6, %v729_v24 }
 0x2fb   :  { %1025 = shalt.err (!%p1022_p4)
}
 0x2fc   :  { %s1026_s11 = scalar_lea.hbm %s1859_s10, 32 }
 0x2fd   :  { %p1027_p5 = scmp.ne.s32.totalorder %s1859_s10, %s1026_s11  ;;  %p1030_p6 = scmp.lt.u32.totalorder %s1026_s11, %s1859_s10 }
 0x2ff   :  { %p1032_p7 = pnand %p1030_p6, %p1027_p5 }
 0x301   :  { %1035 = shalt.err (!%p1032_p7)
}
 0x302   :  { %743 = dma.vmem_to_hbm [thread:$0]  %s741_s8, 32, %s1859_s10, [#allocation3]  }
 0x303   :  { %1036 = dma.done.wait [#allocation3], 32  }
 0x304   :  { %1037 = vsyncadd [#allocation3], 4294967264 }
 0x305   :  { %747 = vsyncpa [#allocation3], 1 }

// kernel: dgcnn_forward.18
= control target key start
LH: loop header
LB: loop body
LE: loop exit
PB: predicated region body
PF: predicated region fallthrough
CT: control target
= control target key end

     0   :  { %s1412_s13 = smov 0   ;;  %s1563_s0 = inlined_call_operand.vmem [shape: bf16[2,32,64], index: 0, kind: input, shape index: {}]   ;;  %s1564_s1 = inlined_call_operand.vmem [shape: bf16[2,32,64], index: 1, kind: input, shape index: {}]   ;;  %s1565_s2 = inlined_call_operand.vmem [shape: bf16[2,32,128], index: 2, kind: input, shape index: {}]   ;;  %s1566_s3 = inlined_call_operand.vmem [shape: bf16[2,32,256], index: 3, kind: input, shape index: {}]   ;;  %s1567_s4 = inlined_call_operand.vmem [shape: bf16[64,64], index: 4, kind: input, shape index: {}]   ;;  %s1568_s5 = inlined_call_operand.vmem [shape: bf16[64,64], index: 5, kind: input, shape index: {}]   ;;  %s1569_s6 = inlined_call_operand.vmem [shape: bf16[128,64], index: 6, kind: input, shape index: {}]   ;;  %s1570_s7 = inlined_call_operand.vmem [shape: bf16[256,64], index: 7, kind: input, shape index: {}]   ;;  %s1571_s8 = inlined_call_operand.vmem [shape: f32[1,64], index: 8, kind: input, shape index: {}]   ;;  %s1572_s9 = inlined_call_operand.vmem [shape: f32[2,1,64], index: 9, kind: output, shape index: {0}]   ;;  %s1573_s10 = inlined_call_operand.vmem [shape: f32[2,1,64], index: 10, kind: output, shape index: {1}]  }
   0x1 LB: > { %s1129_s14 = sadd.s32 4294967295, %s1355_s13   ;;  %p1133_p0 = scmp.ge.s32.totalorder %s1355_s13, 1  ;;  %s1355_s13 = sphi %s1412_s13, %s21_s13  }
   0x2   : > { %p345_p1 = scmp.lt.s32.totalorder %s1355_s13, 3 }
   0x4   : > { %p346_p2 = pnand %p1133_p0, %p345_p1 }
   0x5   : > { %v1305_v0 = vld [vmem:[%s1568_s5] sm:$0xff] (!%p346_p2)   ;;  %p399_p3 = scmp.lt.s32.totalorder (!%p346_p2), %s1129_s14, 1  ;;  %v1307_v2 = vld [vmem:[%s1568_s5 + $0x8] sm:$0xff] (!%p346_p2)   ;;  %v1309_v4 = vld [vmem:[%s1568_s5 + $0x10] sm:$0xff] (!%p346_p2)   ;;  %vm484_vm0 = vcmask (!%p346_p2), 523264   ;;  %vm1003_vm5 = vcmask (!%p346_p2), 516096  }
   0x6   : > { %349 = sbr.rel (%p346_p2) target bundleno = 304 (0x130), region = 56  ;;  %v1306_v1 = vld [vmem:[%s1567_s4] sm:$0xff] (!%p346_p2)   ;;  %1245 = vmatprep.subr.bf16.mxu1 (!%p346_p2), %v1305_v0  ;;  %v1308_v3 = vld [vmem:[%s1567_s4 + $0x8] sm:$0xff] (!%p346_p2)   ;;  %v1310_v5 = vld [vmem:[%s1567_s4 + $0x10] sm:$0xff] (!%p346_p2)  }
   0x7   : > { %1257 = vmatprep.subr.bf16.mxu0 (!%p346_p2), %v1306_v1  ;;  %1246 = vmatpush3.bf16.msra.mxu1 (!%p346_p2), %v1305_v0  ;;  %v1311_v6 = vld [vmem:[%s1568_s5 + $0x18] sm:$0xff] (!%p346_p2)   ;;  %v1317_v11 = vld [vmem:[%s1570_s7 + $0x40] sm:$0xff] (!%p346_p2)   ;;  %v1321_v15 = vld [vmem:[%s1570_s7 + $0x48] sm:$0xff] (!%p346_p2)  }
   0x8   : > { %1258 = vmatpush3.bf16.msra.mxu0 (!%p346_p2), %v1306_v1  ;;  %1247 = vmatprep.subr.bf16.mxu1 (!%p346_p2), %v1307_v2  ;;  %v1312_v8 = vld [vmem:[%s1567_s4 + $0x18] sm:$0xff] (!%p346_p2)   ;;  %v1316_v12 = vld [vmem:[%s1569_s6] sm:$0xff] (!%p346_p2)   ;;  %v1320_v16 = vld [vmem:[%s1569_s6 + $0x8] sm:$0xff] (!%p346_p2)  }
   0x9   : > { %1259 = vmatprep.subr.bf16.mxu0 (!%p346_p2), %v1308_v3  ;;  %v1319_v14 = vld [vmem:[%s1570_s7] sm:$0xff] (!%p346_p2)   ;;  %v1322_v17 = vld [vmem:[%s1570_s7 + $0x8] sm:$0xff] (!%p346_p2)   ;;  %v1324_v18 = vld [vmem:[%s1570_s7 + $0x50] sm:$0xff] (!%p346_p2)  }
   0xa   : > { %v1323_v19 = vld [vmem:[%s1569_s6 + $0x10] sm:$0xff] (!%p346_p2)   ;;  %v1327_v21 = vld [vmem:[%s1570_s7 + $0x58] sm:$0xff] (!%p346_p2)   ;;  %v1330_v24 = vld [vmem:[%s1570_s7 + $0x60] sm:$0xff] (!%p346_p2)  }
   0xb   : > { %1248 = vmatpush3.bf16.msra.mxu1 (!%p346_p2), %v1307_v2  ;;  %v1325_v20 = vld [vmem:[%s1570_s7 + $0x10] sm:$0xff] (!%p346_p2)   ;;  %v1326_v22 = vld [vmem:[%s1569_s6 + $0x18] sm:$0xff] (!%p346_p2)   ;;  %v1329_v25 = vld [vmem:[%s1569_s6 + $0x20] sm:$0xff] (!%p346_p2)  }
   0xc   : > { %1260 = vmatpush3.bf16.msra.mxu0 (!%p346_p2), %v1308_v3  ;;  %1249 = vmatprep.subr.bf16.mxu1 (!%p346_p2), %v1309_v4  ;;  %v1328_v23 = vld [vmem:[%s1570_s7 + $0x18] sm:$0xff] (!%p346_p2)   ;;  %v1331_v26 = vld [vmem:[%s1570_s7 + $0x20] sm:$0xff] (!%p346_p2)   ;;  %v1333_v27 = vld [vmem:[%s1570_s7 + $0x68] sm:$0xff] (!%p346_p2)  }
   0xd   : > { %s1575_s14 = smov (!%p399_p3, %s1129_s14), 1  ;;  %1261 = vmatprep.subr.bf16.mxu0 %v1310_v5  ;;  %v1332_v28 = vld [vmem:[%s1569_s6 + $0x28] sm:$0xff]   ;;  %v1336_v30 = vld [vmem:[%s1570_s7 + $0x70] sm:$0xff]   ;;  %v1339_v35 = vld [vmem:[%s1570_s7 + $0x78] sm:$0xff]  }
   0xe   : > { %s1438_s25 = sshll.u32 %s1575_s14, 4  ;;  %s1194_s18 = sshll.u32 %s1575_s14, 5  ;;  %v1334_v29 = vld [vmem:[%s1570_s7 + $0x28] sm:$0xff]   ;;  %v1335_v32 = vld [vmem:[%s1569_s6 + $0x30] sm:$0xff]   ;;  %v1338_v36 = vld [vmem:[%s1569_s6 + $0x38] sm:$0xff]  }
   0xf   : > { %s408_s30 = scalar_lea.vmem %s1564_s1, %s1438_s25  ;;  %s403_s17 = scalar_lea.vmem %s1563_s0, %s1438_s25  ;;  %1250 = vmatpush3.bf16.msra.mxu1 %v1309_v4  ;;  %v1337_v34 = vld [vmem:[%s1570_s7 + $0x30] sm:$0xff]   ;;  %v1340_v37 = vld [vmem:[%s1570_s7 + $0x38] sm:$0xff]   ;;  %v1188_v56 = vld [vmem:[%s1571_s8] ss:$0 sm:$0xff] }
  0x10   : > { %v1313_v7 = vld [vmem:[%s408_s30] sm:$0xff]   ;;  %1262 = vmatpush3.bf16.msra.mxu0 %v1310_v5  ;;  %1251 = vmatprep.subr.bf16.mxu1 %v1311_v6  ;;  %v1314_v10 = vld [vmem:[%s408_s30 + $0x8] sm:$0xff]   ;;  %s413_s23 = scalar_lea.vmem %s1565_s2, %s1438_s25  ;;  %s418_s11 = scalar_lea.vmem %s1566_s3, %s1194_s18 }
  0x11   : > { %1253 = vmatprep.mubr.msk.bf16.mxu1 %vm484_vm0, %v1313_v7  ;;  %v1315_v9 = vld [vmem:[%s403_s17] sm:$0xff]   ;;  %1263 = vmatprep.subr.bf16.mxu0 %v1312_v8  ;;  %v1318_v13 = vld [vmem:[%s403_s17 + $0x8] sm:$0xff]   ;;  %v1346_v40 = vld [vmem:[%s418_s11 + $0x14] ss:$8 sps:$4 sm:$0xff]   ;;  %s421_s28 = scalar_lea.vmem %s1572_s9, %s1575_s14 }
  0x12   : > { %1265 = vmatprep.mubr.msk.bf16.mxu0 %vm484_vm0, %v1315_v9  ;;  %v1341_v31 = vld [vmem:[%s413_s23] sm:$0xff]   ;;  %v1345_v39 = vld [vmem:[%s413_s23 + $0x8] sm:$0xff]   ;;  %v1348_v41 = vld [vmem:[%s418_s11 + $0x10] ss:$8 sps:$4 sm:$0xff]  }
  0x13   : > { %1252 = vmatpush3.bf16.msra.mxu1 %v1311_v6  ;;  %v1344_v33 = vld [vmem:[%s418_s11 + $0x4] ss:$8 sps:$4 sm:$0xff]   ;;  %v1342_v38 = vld [vmem:[%s418_s11] ss:$8 sps:$4 sm:$0xff]   ;;  %s424_s11 = scalar_lea.vmem %s1573_s10, %s1575_s14 }
  0x14   : > { %1264 = vmatpush3.bf16.msra.mxu0 %v1312_v8  ;;  %1217 = vmatprep.subr.bf16.mxu1 %v1317_v11 }
  0x15   : > { %1269 = vmatprep.subr.bf16.mxu0 %v1316_v12 }
  0x16   : > { %1254 = vmatmul.mubr.msk.bf16.vlgmr.msra.gmra.mrb[0].mxu1 %vm484_vm0, %v1314_v10 }
  0x17   : > { %1266 = vmatmul.mubr.msk.bf16.vlgmr.msra.gmra.mrb[0].mxu0 %vm484_vm0, %v1318_v13  ;;  %1218 = vmatpush3.bf16.msra.mxu1 %v1319_v14 }
  0x18   : > { %1270 = vmatpush3.bf16.msra.mxu0 %v1316_v12  ;;  %1219 = vmatprep.subr.bf16.mxu1 %v1321_v15 }
  0x19   : > { %1271 = vmatprep.subr.bf16.mxu0 %v1320_v16  ;;  %1285 = vmatprep.mubr.bf16.mxu0 %v1341_v31 }
  0x1a   : > { %946 = vmatprep.mubr.bf16.mxu1 %v1344_v33 }
  0x1b   : > { %1220 = vmatpush3.bf16.msra.mxu1 %v1322_v17 }
  0x1c   : > { %1272 = vmatpush3.bf16.msra.mxu0 %v1320_v16  ;;  %1221 = vmatprep.subr.bf16.mxu1 %v1324_v18 }
  0x1d   : > { %1273 = vmatprep.subr.bf16.mxu0 %v1323_v19 }
  0x1f   : > { %1222 = vmatpush3.bf16.msra.mxu1 %v1325_v20 }
  0x20   : > { %1274 = vmatpush3.bf16.msra.mxu0 %v1323_v19  ;;  %1223 = vmatprep.subr.bf16.mxu1 %v1327_v21 }
  0x21   : > { %1275 = vmatprep.subr.bf16.mxu0 %v1326_v22 }
  0x23   : > { %1224 = vmatpush3.bf16.msra.mxu1 %v1328_v23 }
  0x24   : > { %1276 = vmatpush3.bf16.msra.mxu0 %v1326_v22  ;;  %1225 = vmatprep.subr.bf16.mxu1 %v1330_v24 }
  0x25   : > { %1277 = vmatprep.subr.bf16.mxu0 %v1329_v25 }
  0x27   : > { %1226 = vmatpush3.bf16.msra.mxu1 %v1331_v26 }
  0x28   : > { %1278 = vmatpush3.bf16.msra.mxu0 %v1329_v25  ;;  %1227 = vmatprep.subr.bf16.mxu1 %v1333_v27 }
  0x29   : > { %1279 = vmatprep.subr.bf16.mxu0 %v1332_v28 }
  0x2b   : > { %1228 = vmatpush3.bf16.msra.mxu1 %v1334_v29 }
  0x2c   : > { %1280 = vmatpush3.bf16.msra.mxu0 %v1332_v28  ;;  %1229 = vmatprep.subr.bf16.mxu1 %v1336_v30 }
  0x2d   : > { %1281 = vmatprep.subr.bf16.mxu0 %v1335_v32 }
  0x2f   : > { %1230 = vmatpush3.bf16.msra.mxu1 %v1337_v34 }
  0x30   : > { %1282 = vmatpush3.bf16.msra.mxu0 %v1335_v32  ;;  %1231 = vmatprep.subr.bf16.mxu1 %v1339_v35 }
  0x31   : > { %1283 = vmatprep.subr.bf16.mxu0 %v1338_v36 }
  0x33   : > { %1232 = vmatpush3.bf16.msra.mxu1 %v1340_v37 }
  0x34   : > { %1284 = vmatpush3.bf16.msra.mxu0 %v1338_v36 }
  0x36   : > { %947 = vmatmul.mubr.bf16.vlgmr.msra.gmra.mrb[4].mxu1 %v1342_v38 }
  0x37   : > { %1286 = vmatmul.mubr.bf16.vlgmr.msra.gmra.mrb[0].mxu0 %v1345_v39  ;;  %954 = vmatprep.mubr.bf16.mxu1 %v1346_v40 }
  0x3e   : > { %955 = vmatmul.mubr.bf16.gmra.mrb[8].mxu1 %v1348_v41 }
  0xe9   : > { %v1255_v42 = vpop.f32.mrb[0].mxu1 }
  0xea   : > { %v525_v43 = vpop.f32.mrb[1].mxu1 }
  0xeb   : > { %v1256_v44 = vpop.f32.mrb[2].mxu1 }
  0xec   : > { %v528_v45 = vpop.f32.mrb[3].mxu1 }
 0x109   : > { %v1233_v46 = vpop.f32.mrb[4].mxu1 }
 0x10a   : > { %v1287_v47 = vpop.f32.mrb[0].mxu0  ;;  %v1234_v48 = vpop.f32.mrb[5].mxu1 }
 0x10b   : > { %v1289_v49 = vadd.f32 %v1287_v47, %v1255_v42  ;;  %v743_v50 = vpop.f32.mrb[1].mxu0  ;;  %v1235_v51 = vadd.f32 %v1234_v48, %v1233_v46  ;;  %v1236_v52 = vpop.f32.mrb[6].mxu1 }
 0x10c   : > { %v1290_v53 = vadd.f32 %v743_v50, %v525_v43  ;;  %v1288_v54 = vpop.f32.mrb[2].mxu0  ;;  %v1237_v55 = vpop.f32.mrb[7].mxu1 }
 0x10d   : > { %v1291_v57 = vadd.f32 %v1288_v54, %v1256_v44  ;;  %v746_v58 = vpop.f32.mrb[3].mxu0  ;;  %v1238_v59 = vadd.f32 %v1237_v55, %v1236_v52 }
 0x10e   : > { %v963_v60 = vadd.f32 %v1290_v53, %v1235_v51  ;;  %v1292_v61 = vadd.f32 %v746_v58, %v528_v45 }
 0x110   : > { %v974_v62 = vadd.f32 %v1188_v56, %v963_v60  ;;  %v964_v63 = vadd.f32 %v1292_v61, %v1238_v59 }
 0x111   : > { %v1239_v0 = vpop.f32.mrb[8].mxu1 }
 0x112   : > { %vm978_vm1 = vcmp.gt.f32.partialorder %v974_v62, 0.0  ;;  %v982_v1 = vmul.f32 0.2, %v974_v62  ;;  %v975_v2 = vadd.f32 %v1188_v56, %v964_v63  ;;  %v1240_v3 = vpop.f32.mrb[9].mxu1 }
 0x113   : > { %v1241_v4 = vadd.f32 %v1240_v3, %v1239_v0  ;;  %v1242_v5 = vpop.f32.mrb[10].mxu1 }
 0x114   : > { %v986_v6 = vsel %vm978_vm1, %v974_v62, %v982_v1  ;;  %vm979_vm2 = vcmp.gt.f32.partialorder %v975_v2, 0.0  ;;  %v983_v7 = vmul.f32 0.2, %v975_v2  ;;  %v1243_v8 = vpop.f32.mrb[11].mxu1 }
 0x115   : > { %v965_v9 = vadd.f32 %v1289_v49, %v1241_v4  ;;  %v1244_v10 = vadd.f32 %v1243_v8, %v1242_v5  ;;  %v990_v11 = vsel %vm484_vm0, %v986_v6, -inf  ;;  %v1005_v12 = vsel %vm484_vm0, %v986_v6, 0.0 }
 0x116   : > { %v987_v13 = vsel %vm979_vm2, %v975_v2, %v983_v7 }
 0x117   : > { %v991_v14 = vsel %vm484_vm0, %v987_v13, -inf  ;;  %v1006_v15 = vsel %vm484_vm0, %v987_v13, 0.0  ;;  %v976_v16 = vadd.f32 %v1188_v56, %v965_v9  ;;  %v966_v17 = vadd.f32 %v1291_v57, %v1244_v10 }
 0x118   : > { %v994_v18 = vmax.f32 %v990_v11, %v991_v14  ;;  %v1007_v19 = vadd.f32 %v1006_v15, %v1005_v12 }
 0x119   : > { %vm980_vm3 = vcmp.gt.f32.partialorder %v976_v16, 0.0  ;;  %v984_v20 = vmul.f32 0.2, %v976_v16  ;;  %v977_v21 = vadd.f32 %v1188_v56, %v966_v17 }
 0x11b   : > { %v988_v22 = vsel %vm980_vm3, %v976_v16, %v984_v20  ;;  %vm981_vm4 = vcmp.gt.f32.partialorder %v977_v21, 0.0  ;;  %v985_v23 = vmul.f32 0.2, %v977_v21 }
 0x11c   : > { %v1008_v24 = vsel %vm484_vm0, %v988_v22, 0.0  ;;  %v992_v27 = vsel %vm484_vm0, %v988_v22, -inf }
 0x11d   : > { %v1009_v25 = vadd.f32 %v1008_v24, %v1007_v19  ;;  %v989_v26 = vsel %vm981_vm4, %v977_v21, %v985_v23 }
 0x11e   : > { %v993_v28 = vsel %vm484_vm0, %v989_v26, -inf  ;;  %v1010_v29 = vsel %vm484_vm0, %v989_v26, 0.0 }
 0x11f   : > { %v995_v30 = vmax.f32 %v992_v27, %v993_v28  ;;  %v1011_v31 = vadd.f32 %v1010_v29, %v1009_v25 }
 0x121   : > { %v996_v32 = vmax.f32 %v994_v18, %v995_v30  ;;  %v1012_v33 = vrot.slane %v1011_v31, 4 }
 0x123   : > { %v997_v34 = vrot.slane %v996_v32, 4  ;;  %v1013_v35 = vadd.f32 %v1012_v33, %v1011_v31 }
 0x125   : > { %v998_v36 = vmax.f32 %v996_v32, %v997_v34  ;;  %v1014_v37 = vrot.slane %v1013_v35, 2 }
 0x127   : > { %v999_v38 = vrot.slane %v998_v36, 2  ;;  %v1015_v39 = vadd.f32 %v1014_v37, %v1013_v35 }
 0x129   : > { %v1000_v40 = vmax.f32 %v998_v36, %v999_v38  ;;  %v1016_v41 = vrot.slane %v1015_v39, 1 }
 0x12b   : > { %v1001_v42 = vrot.slane %v1000_v40, 1  ;;  %v1017_v43 = vadd.f32 %v1016_v41, %v1015_v39 }
 0x12d   : > { %v1002_v44 = vmax.f32 %v1000_v40, %v1001_v42  ;;  %v1019_v45 = vmul.f32 0.03125, %v1017_v43 }
 0x12f   : > { %1004 = vst.msk [vmem:[%s421_s28] sm:$0x1] %vm1003_vm5, %v1002_v44  ;;  %1020 = vst.msk [vmem:[%s424_s11] sm:$0x1] %vm1003_vm5, %v1019_v45 }
 0x130 PF: > { %s21_s13 = sadd.s32 1, %s1355_s13  }
 0x131   : > { %p18_p4 = scmp.ge.s32.totalorder %s21_s13, 4  }
 0x133   :  { %20 = sbr.rel (!%p18_p4) target bundleno = 1 (0x1), region = 107 }

</bundles_post_ra>
